<compile_context>
chip_gen: v6e
topology: v6e:2x2x1
jax: 0.10.0
libtpu: 0.0.40
codegen_flags: <defaults>
</compile_context>

<pallas_src>
import math
from types import SimpleNamespace

import jax
import jax.numpy as jnp
from jax import lax
from jax.experimental import pallas as pl
from jax.experimental.pallas import tpu as pltpu

_BN_EPS = 1e-5
_NEG_SLOPE = 0.01  # F.leaky_relu default


# ---------------------------------------------------------------------------
# small helpers
# ---------------------------------------------------------------------------
def _round_up(x, m):
    return (x + m - 1) // m * m


def _pick_tm(m, cap=512):
    """Row-tile size: as large as reasonable (cap=512 for v5e/v6e VMEM; still
    comfortably inside v7x's 32 MiB scoped VMEM at these widths), but split
    into at least two tiles when possible so v7x's two TensorCores both work."""
    if m <= 8:
        return m
    return min(cap, _round_up((m + 1) // 2, 8))


def _pick_group(b, cap=16):
    """Graphs per grid step: a divisor of b, <= cap, leaving >= 2 grid steps."""
    if b <= 1:
        return 1
    g = min(cap, max(1, b // 2))
    while g > 1 and b % g:
        g -= 1
    return g


def bn_eval_params(num_features):
    # fresh BatchNorm in eval mode: gamma=1, beta=0, running_mean=0, running_var=1
    scale = jnp.full((num_features,), 1.0 / math.sqrt(1.0 + _BN_EPS), jnp.float32)
    shift = jnp.zeros((num_features,), jnp.float32)
    return scale, shift


def conv1d_as_matrix(w, l_in, padding, stride=1):
    """Effective (Cin*Lin, Cout*Lout) matrix of a bias-free Conv1d applied to a
    length-`l_in` input; both sides flattened channel-major (matches torch
    reshape of an (M, C, L) tensor to (M, C*L)).  Built once in the wrapper
    (constant-folded under jit)."""
    cout, cin, k = w.shape
    eye = jnp.eye(cin * l_in, dtype=jnp.float32).reshape(cin * l_in, cin, l_in)
    y = lax.conv_general_dilated(
        eye, jnp.asarray(w, jnp.float32), window_strides=(stride,),
        padding=[(padding, padding)], dimension_numbers=("NCH", "OIH", "NCH"))
    l_out = y.shape[-1]
    return y.reshape(cin * l_in, cout * l_out), l_out


def make_mask_matrix(num_node, time_length, decay):
    t = jnp.arange(time_length)
    dt = jnp.abs(t[:, None] - t[None, :]).astype(jnp.float32)
    block = decay ** dt                                         # (T, T)
    return jnp.repeat(jnp.repeat(block, num_node, axis=0), num_node, axis=1)


def positional_encoding_table(d_model, max_len):
    position = jnp.arange(max_len, dtype=jnp.float32)[:, None]
    div_term = jnp.exp(jnp.arange(0, d_model, 2, dtype=jnp.float32)
                       * -(math.log(100.0) / d_model))          # matches original
    pe = jnp.zeros((max_len, d_model), jnp.float32)
    pe = pe.at[:, 0::2].set(jnp.sin(position * div_term))
    pe = pe.at[:, 1::2].set(jnp.cos(position * div_term))
    return pe


# ---------------------------------------------------------------------------
# Kernel 1: fused feature chain (conv1+BN+ReLU -> conv2+BN+ReLU -> map2+BN)
# ---------------------------------------------------------------------------
def _feature_chain_kernel(x_ref, m1_ref, s1_ref, m2_ref, s2_ref, m3_ref, b3_ref,
                          o_ref):
    x = x_ref[...].astype(jnp.bfloat16)                         # (tm, K0)
    y1 = jnp.dot(x, m1_ref[...], preferred_element_type=jnp.float32) + s1_ref[...]
    y1 = jnp.maximum(y1, 0.0)                                   # conv1+BN+ReLU
    y2 = jnp.dot(y1.astype(jnp.bfloat16), m2_ref[...],
                 preferred_element_type=jnp.float32) + s2_ref[...]
    y2 = jnp.maximum(y2, 0.0)                                   # conv2+BN+ReLU
    y3 = jnp.dot(y2.astype(jnp.bfloat16), m3_ref[...],
                 preferred_element_type=jnp.float32) + b3_ref[...]
    o_ref[...] = y3                                             # map2+BN


def pallas_feature_chain(x_flat, fp):
    m, k0 = x_flat.shape
    n1 = fp["m1"].shape[1]
    n2 = fp["m2"].shape[1]
    n3 = fp["m3"].shape[1]
    tm = _pick_tm(m)
    grid = (pl.cdiv(m, tm),)
    return pl.pallas_call(
        _feature_chain_kernel,
        out_shape=jax.ShapeDtypeStruct((m, n3), jnp.float32),
        grid_spec=pltpu.PrefetchScalarGridSpec(
            num_scalar_prefetch=0,
            grid=grid,
            in_specs=[
                pl.BlockSpec((tm, k0), lambda i: (i, 0)),
                pl.BlockSpec((k0, n1), lambda i: (0, 0)),
                pl.BlockSpec((1, n1), lambda i: (0, 0)),
                pl.BlockSpec((n1, n2), lambda i: (0, 0)),
                pl.BlockSpec((1, n2), lambda i: (0, 0)),
                pl.BlockSpec((n2, n3), lambda i: (0, 0)),
                pl.BlockSpec((1, n3), lambda i: (0, 0)),
            ],
            out_specs=pl.BlockSpec((tm, n3), lambda i: (i, 0)),
        ),
        compiler_params=pltpu.CompilerParams(dimension_semantics=("parallel",)),
    )(x_flat, fp["m1"], fp["s1"], fp["m2"], fp["s2"], fp["m3"], fp["b3"])


def prepare_feature_params(p, cfg):
    """Fold convs (length-1 input), eval-mode BNs and the map2 BN into three
    small matrices + shift rows.  Weights cast to bf16 for the MXU."""
    l_in = 1  # the model always unsqueezes to feature-dim 1
    m1, l1 = conv1d_as_matrix(p["conv1_w"], l_in, cfg.conv_kernel // 2)
    m2, l2 = conv1d_as_matrix(p["conv2_w"], l1, 1)
    s1 = jnp.repeat(p["bn1_scale"], l1)
    sh1 = jnp.repeat(p["bn1_shift"], l1)
    s2 = jnp.repeat(p["bn2_scale"], l2)
    sh2 = jnp.repeat(p["bn2_shift"], l2)
    m1 = m1 * s1[None, :]
    m2 = m2 * s2[None, :]
    m3 = jnp.asarray(p["map2_w"], jnp.float32).T * p["map2_bn_scale"][None, :]
    b3 = p["map2_b"] * p["map2_bn_scale"] + p["map2_bn_shift"]
    # pad the (tiny) first contraction dim up to 8 lanes
    k0 = m1.shape[0]
    k0p = max(8, _round_up(k0, 8))
    m1 = jnp.pad(m1, ((0, k0p - k0), (0, 0)))
    return dict(
        m1=m1.astype(jnp.bfloat16), s1=sh1.reshape(1, -1).astype(jnp.float32),
        m2=m2.astype(jnp.bfloat16), s2=sh2.reshape(1, -1).astype(jnp.float32),
        m3=m3.astype(jnp.bfloat16), b3=b3.reshape(1, -1).astype(jnp.float32),
        k0=k0, k0p=k0p)


# ---------------------------------------------------------------------------
# Kernel 2: fused graph block (G graphs per grid step)
# ---------------------------------------------------------------------------
def _graph_block_kernel(x_ref, mask_ref, wm_t_ref, bm_ref, bnin_s_ref, bnin_b_ref,
                        wt_t_ref, bt_ref, o_ref):
    g_per_step, n, d = x_ref.shape
    wm = wm_t_ref[...]                                   # (D, D)   bf16
    wt = wt_t_ref[...]                                   # (D, Dout) bf16 (BN folded)
    bm = bm_ref[...]                                     # (1, D)   f32
    bt = bt_ref[...]                                     # (1, Dout) f32 (BN folded)
    bn_s = bnin_s_ref[...]                               # (1, D)
    bn_b = bnin_b_ref[...]
    mask = mask_ref[...]                                 # (N, N)
    ridx = lax.broadcasted_iota(jnp.int32, (n, n), 0)
    cidx = lax.broadcasted_iota(jnp.int32, (n, n), 1)
    eye = (ridx == cidx).astype(jnp.float32)

    # Unrolled over the G graphs of this block (back-to-back MXU work, one DMA).
    for g in range(g_per_step):
        x = x_ref[g]                                     # (N, D) f32
        # Dot_Graph_Construction_weights.mapping
        h = jnp.dot(x.astype(jnp.bfloat16), wm,
                    preferred_element_type=jnp.float32) + bm
        hb = h.astype(jnp.bfloat16)
        s = lax.dot_general(hb, hb, (((1,), (1,)), ((), ())),
                            preferred_element_type=jnp.float32)    # h @ h^T
        s = s - eye * 1e8
        s = jnp.where(s > 0, s, _NEG_SLOPE * s)          # leaky_relu
        p = jnp.exp(s - jnp.max(s, axis=-1, keepdims=True))
        a = p * pl.reciprocal(jnp.sum(p, axis=-1, keepdims=True), approx=True)
        a = (a + eye) * mask                             # +I, then decay mask
        # input BN (eval affine), MPNN k=1, theta (+folded output BN), leaky
        xbn = x * bn_s + bn_b
        z = jnp.dot(a.astype(jnp.bfloat16), xbn.astype(jnp.bfloat16),
                    preferred_element_type=jnp.float32)              # A @ X
        o = jnp.dot(z.astype(jnp.bfloat16), wt,
                    preferred_element_type=jnp.float32) + bt
        o_ref[g] = jnp.where(o > 0, o, _NEG_SLOPE * o)


def pallas_graph_block(x, mask, gp):
    """x: (B, N, D) node features; returns (B, N, Dout)."""
    b, n, d = x.shape
    dout = gp["wt_t"].shape[1]
    g = _pick_group(b)
    grid = (b // g,)
    in_specs = [
        pl.BlockSpec((g, n, d), lambda i: (i, 0, 0)),    # G graphs per step
        pl.BlockSpec((n, n), lambda i: (0, 0)),          # decay mask (shared)
        pl.BlockSpec((d, d), lambda i: (0, 0)),          # mapping weight^T (bf16)
        pl.BlockSpec((1, d), lambda i: (0, 0)),          # mapping bias
        pl.BlockSpec((1, d), lambda i: (0, 0)),          # input BN scale
        pl.BlockSpec((1, d), lambda i: (0, 0)),          # input BN shift
        pl.BlockSpec((d, dout), lambda i: (0, 0)),       # theta weight^T (BN folded)
        pl.BlockSpec((1, dout), lambda i: (0, 0)),       # theta bias (BN folded)
    ]
    return pl.pallas_call(
        _graph_block_kernel,
        out_shape=jax.ShapeDtypeStruct((b, n, dout), jnp.float32),
        grid_spec=pltpu.PrefetchScalarGridSpec(
            num_scalar_prefetch=0,
            grid=grid,
            in_specs=in_specs,
            out_specs=pl.BlockSpec((g, n, dout), lambda i: (i, 0, 0)),
        ),
        compiler_params=pltpu.CompilerParams(dimension_semantics=("parallel",)),
    )(x.astype(jnp.float32), mask.astype(jnp.float32),
      gp["wm_t"], gp["bm"], gp["bn_in_s"], gp["bn_in_b"], gp["wt_t"], gp["bt"])


def prepare_graph_params(p):
    wt_fold = jnp.asarray(p["wt"], jnp.float32).T * p["bn_out_scale"][None, :]
    bt_fold = p["bt"] * p["bn_out_scale"] + p["bn_out_shift"]
    return dict(
        wm_t=jnp.asarray(p["wm"], jnp.float32).T.astype(jnp.bfloat16),
        bm=p["bm"].reshape(1, -1).astype(jnp.float32),
        bn_in_s=p["bn_in_scale"].reshape(1, -1).astype(jnp.float32),
        bn_in_b=p["bn_in_shift"].reshape(1, -1).astype(jnp.float32),
        wt_t=wt_fold.astype(jnp.bfloat16),
        bt=bt_fold.reshape(1, -1).astype(jnp.float32),
    )


def graph_conv_pool_block(x, p, tws, stride, pool_choice):
    """GraphConvpoolMPNN_block_v6.  x: (bs, tlen, ns, fd) -> (bs, nw, ns, dout)."""
    bs, tlen, ns, fd = x.shape
    nw = (tlen - tws) // stride + 1
    # Conv_GraphST + transpose(2,3): window gather -> (bs, nw, tws, ns, fd)
    # NOTE: for large tlen/window configs this gather could instead be expressed
    # through the BlockSpec index_map to avoid duplicating overlapping windows.
    idx = stride * jnp.arange(nw)[:, None] + jnp.arange(tws)[None, :]
    xc = x[:, idx]
    xflat = xc.reshape(bs * nw, tws * ns, fd)
    mask = make_mask_matrix(ns, tws, p["decay"])
    out = pallas_graph_block(xflat, mask, prepare_graph_params(p))
    dout = out.shape[-1]
    out = out.reshape(bs, nw, tws, ns, dout)
    if pool_choice == "mean":
        return jnp.mean(out, axis=2)
    return jnp.max(out, axis=2)


# ---------------------------------------------------------------------------
# Kernel 3: fused FC head (fc1 -> relu -> fc2 -> relu -> fc3 -> relu -> fc4)
# ---------------------------------------------------------------------------
def _fc_head_kernel(x_ref, w1_ref, b1_ref, w2_ref, b2_ref, w3_ref, b3_ref,
                    w4_ref, b4_ref, o_ref):
    h = x_ref[...]
    h = jnp.maximum(jnp.dot(h.astype(jnp.bfloat16), w1_ref[...],
                            preferred_element_type=jnp.float32) + b1_ref[...], 0.0)
    h = jnp.maximum(jnp.dot(h.astype(jnp.bfloat16), w2_ref[...],
                            preferred_element_type=jnp.float32) + b2_ref[...], 0.0)
    h = jnp.maximum(jnp.dot(h.astype(jnp.bfloat16), w3_ref[...],
                            preferred_element_type=jnp.float32) + b3_ref[...], 0.0)
    o_ref[...] = jnp.dot(h.astype(jnp.bfloat16), w4_ref[...],
                         preferred_element_type=jnp.float32) + b4_ref[...]


def pallas_fc_head(x, p):
    m, k = x.shape
    w1 = jnp.asarray(p["fc1_w"], jnp.float32).T.astype(jnp.bfloat16)
    w2 = jnp.asarray(p["fc2_w"], jnp.float32).T.astype(jnp.bfloat16)
    w3 = jnp.asarray(p["fc3_w"], jnp.float32).T.astype(jnp.bfloat16)
    w4 = jnp.asarray(p["fc4_w"], jnp.float32).T.astype(jnp.bfloat16)
    b1 = p["fc1_b"].reshape(1, -1).astype(jnp.float32)
    b2 = p["fc2_b"].reshape(1, -1).astype(jnp.float32)
    b3 = p["fc3_b"].reshape(1, -1).astype(jnp.float32)
    b4 = p["fc4_b"].reshape(1, -1).astype(jnp.float32)
    n1, n2, n3, n4 = w1.shape[1], w2.shape[1], w3.shape[1], w4.shape[1]
    tm = _pick_tm(m)
    grid = (pl.cdiv(m, tm),)
    return pl.pallas_call(
        _fc_head_kernel,
        out_shape=jax.ShapeDtypeStruct((m, n4), jnp.float32),
        grid_spec=pltpu.PrefetchScalarGridSpec(
            num_scalar_prefetch=0,
            grid=grid,
            in_specs=[
                pl.BlockSpec((tm, k), lambda i: (i, 0)),
                pl.BlockSpec((k, n1), lambda i: (0, 0)),
                pl.BlockSpec((1, n1), lambda i: (0, 0)),
                pl.BlockSpec((n1, n2), lambda i: (0, 0)),
                pl.BlockSpec((1, n2), lambda i: (0, 0)),
                pl.BlockSpec((n2, n3), lambda i: (0, 0)),
                pl.BlockSpec((1, n3), lambda i: (0, 0)),
                pl.BlockSpec((n3, n4), lambda i: (0, 0)),
                pl.BlockSpec((1, n4), lambda i: (0, 0)),
            ],
            out_specs=pl.BlockSpec((tm, n4), lambda i: (i, 0)),
        ),
        compiler_params=pltpu.CompilerParams(dimension_semantics=("parallel",)),
    )(x.astype(jnp.float32), w1, b1, w2, b2, w3, b3, w4, b4)


# ---------------------------------------------------------------------------
# Parameters (deterministic synthetic init)
# ---------------------------------------------------------------------------
def init_params(key, cfg):
    def nrm(k, shape, fan_in):
        return jax.random.normal(k, shape, jnp.float32) / math.sqrt(max(fan_in, 1))

    keys = jax.random.split(key, 20)
    d2h = 2 * cfg.hid_dim
    p = {}
    # nonlin_map (Feature_extractor_1DCNN_RUL)
    p["conv1_w"] = nrm(keys[0], (cfg.lstmhidden_dim, cfg.var_len, cfg.conv_kernel),
                       cfg.var_len * cfg.conv_kernel)
    p["bn1_scale"], p["bn1_shift"] = bn_eval_params(cfg.lstmhidden_dim)
    p["conv2_w"] = nrm(keys[1], (cfg.lstmout_dim, cfg.lstmhidden_dim, cfg.conv_kernel),
                       cfg.lstmhidden_dim * cfg.conv_kernel)
    p["bn2_scale"], p["bn2_shift"] = bn_eval_params(cfg.lstmout_dim)
    # nonlin_map2 (Linear + BN)
    fin2 = cfg.lstmout_dim * cfg.conv_out
    p["map2_w"] = nrm(keys[2], (d2h, fin2), fin2)
    p["map2_b"] = 0.01 * jax.random.normal(keys[3], (d2h,), jnp.float32)
    p["map2_bn_scale"], p["map2_bn_shift"] = bn_eval_params(d2h)
    # MPNN blocks
    for i, kk in zip((1, 2), ((4, 5, 6, 7), (8, 9, 10, 11))):
        bs_in, _ = bn_eval_params(d2h)
        bs_out, _ = bn_eval_params(cfg.hid_dim)
        p[f"mpnn{i}"] = {
            "wm": nrm(keys[kk[0]], (d2h, d2h), d2h),
            "bm": 0.01 * jax.random.normal(keys[kk[1]], (d2h,), jnp.float32),
            "bn_in_scale": bs_in, "bn_in_shift": jnp.zeros((d2h,), jnp.float32),
            "wt": nrm(keys[kk[2]], (cfg.hid_dim, d2h), d2h),
            "bt": 0.01 * jax.random.normal(keys[kk[3]], (cfg.hid_dim,), jnp.float32),
            "bn_out_scale": bs_out, "bn_out_shift": jnp.zeros((cfg.hid_dim,), jnp.float32),
            "decay": cfg.decay,
        }
    # fc head.  NOTE: the original module hardcodes 672 = hid_dim*(nw1+nw2);
    # we use the value implied by this config.
    nw1 = (cfg.tlen - cfg.moving_window[0]) // cfg.stride[0] + 1
    nw2 = (cfg.tlen - cfg.moving_window[1]) // cfg.stride[1] + 1
    fc_in = (nw1 + nw2) * cfg.hid_dim
    p["fc1_w"] = nrm(keys[12], (300, fc_in), fc_in)
    p["fc1_b"] = 0.01 * jax.random.normal(keys[13], (300,), jnp.float32)
    p["fc2_w"] = nrm(keys[14], (150, 300), 300)
    p["fc2_b"] = 0.01 * jax.random.normal(keys[15], (150,), jnp.float32)
    p["fc3_w"] = nrm(keys[16], (60, 150), 150)
    p["fc3_b"] = 0.01 * jax.random.normal(keys[17], (60,), jnp.float32)
    p["fc4_w"] = nrm(keys[18], (cfg.output_len, 60), 60)
    p["fc4_b"] = 0.01 * jax.random.normal(keys[19], (cfg.output_len,), jnp.float32)
    return p


# ---------------------------------------------------------------------------
# Full forward
# ---------------------------------------------------------------------------
def fcstgnn_forward(X, p, cfg):
    bs, tlen, num_node = X.shape
    d2h = 2 * cfg.hid_dim
    M0 = bs * tlen * num_node

    # ---- nonlin_map + nonlin_map2, fully fused in one Pallas kernel ----
    fp = prepare_feature_params(p, cfg)
    # X -> unsqueeze(-1) -> (M0, dim=1, 1) -> transpose(-1,-2) -> flatten (M0, Cin*Lin)
    x0 = X.astype(jnp.float32).reshape(M0, 1)
    x0 = jnp.pad(x0, ((0, 0), (0, fp["k0p"] - fp["k0"])))      # pad contraction dim
    a = pallas_feature_chain(x0, fp)                            # (M0, 2*hid)
    a = a.reshape(bs, tlen, num_node, d2h)

    # positional encoding over the time axis (dropout -> eval no-op)
    pe = positional_encoding_table(d2h, tlen)
    a = a + pe[None, :, None, :]

    # ---- two GraphConvpoolMPNN blocks ----
    out1 = graph_conv_pool_block(a, p["mpnn1"], cfg.moving_window[0],
                                 cfg.stride[0], cfg.pool_choice)
    out2 = graph_conv_pool_block(a, p["mpnn2"], cfg.moving_window[1],
                                 cfg.stride[1], cfg.pool_choice)

    f1 = jnp.transpose(out1, (0, 2, 1, 3)).reshape(bs, num_node, -1)
    f2 = jnp.transpose(out2, (0, 2, 1, 3)).reshape(bs, num_node, -1)
    feats = jnp.concatenate([f1, f2], axis=-1)                  # (bs, nn, fc_in)

    # ---- fused fc1..fc4 head ----
    h = pallas_fc_head(feats.reshape(bs * num_node, -1), p)
    h = h.reshape(bs, num_node, -1)
    return jnp.transpose(h, (0, 2, 1))                          # (bs, output_len, nn)


# ---------------------------------------------------------------------------
if __name__ == "__main__":
    cfg = SimpleNamespace(
        var_len=1, conv_out=1, conv_kernel=3,
        lstmhidden_dim=8, lstmout_dim=8,
        hid_dim=16, capacity=4, tlen=8,
        num_windows=7, moving_window=[2, 3], stride=[1, 2],
        decay=0.7, pool_choice="mean", output_len=5,
    )
    key = jax.random.PRNGKey(0)
    k_x, k_p = jax.random.split(key)
    X = jax.random.normal(k_x, (2, cfg.tlen, cfg.capacity), jnp.float32)
    params = init_params(k_p, cfg)

    fwd = jax.jit(lambda x, p: fcstgnn_forward(x, p, cfg))
    out = jax.block_until_ready(fwd(X, params))
    assert out.shape == (2, cfg.output_len, cfg.capacity)
    assert bool(jnp.all(jnp.isfinite(out)))
    print("KERNEL_OK")
</pallas_src>

<mosaic_0001>
module attributes {stable_mosaic.version = 11 : i64} {
  func.func @_feature_chain_kernel(%arg0: i32, %arg1: memref<32x8xf32, #tpu.memory_space<vmem>>, %arg2: memref<8x8xbf16, #tpu.memory_space<vmem>>, %arg3: memref<1x8xf32, #tpu.memory_space<vmem>>, %arg4: memref<8x8xbf16, #tpu.memory_space<vmem>>, %arg5: memref<1x8xf32, #tpu.memory_space<vmem>>, %arg6: memref<8x32xbf16, #tpu.memory_space<vmem>>, %arg7: memref<1x32xf32, #tpu.memory_space<vmem>>, %arg8: memref<32x32xf32, #tpu.memory_space<vmem>>) attributes {dimension_semantics = [#tpu.dimension_semantics<parallel>], iteration_bounds = array<i64: 2>, scalar_prefetch = 0 : i64, scratch_operands = 0 : i64, tpu.core_type = #tpu.core_type<tc>, window_params = [{transform_indices = @transform_0, window_bounds = array<i64: 32, 8>}, {pipeline_mode = #tpu.pipeline_mode<synchronous>, transform_indices = @transform_1, window_bounds = array<i64: 8, 8>}, {pipeline_mode = #tpu.pipeline_mode<synchronous>, transform_indices = @transform_2, window_bounds = array<i64: 1, 8>}, {pipeline_mode = #tpu.pipeline_mode<synchronous>, transform_indices = @transform_3, window_bounds = array<i64: 8, 8>}, {pipeline_mode = #tpu.pipeline_mode<synchronous>, transform_indices = @transform_4, window_bounds = array<i64: 1, 8>}, {pipeline_mode = #tpu.pipeline_mode<synchronous>, transform_indices = @transform_5, window_bounds = array<i64: 8, 32>}, {pipeline_mode = #tpu.pipeline_mode<synchronous>, transform_indices = @transform_6, window_bounds = array<i64: 1, 32>}, {transform_indices = @transform_7, window_bounds = array<i64: 32, 32>}]} {
    %c0 = arith.constant 0 : index
    %c0_0 = arith.constant 0 : index
    %0 = vector.load %arg1[%c0, %c0_0] : memref<32x8xf32, #tpu.memory_space<vmem>>, vector<32x8xf32>
    %1 = arith.truncf %0 : vector<32x8xf32> to vector<32x8xbf16>
    %c0_1 = arith.constant 0 : index
    %c0_2 = arith.constant 0 : index
    %2 = vector.load %arg2[%c0_1, %c0_2] : memref<8x8xbf16, #tpu.memory_space<vmem>>, vector<8x8xbf16>
    %cst = arith.constant dense<0.000000e+00> : vector<32x8xf32>
    %3 = tpu.matmul %1, %2, %cst {dimension_numbers = #tpu.dot_dimension_numbers<[1], [0], [0], [1], [0, 0, 1, 1], [], []>} : vector<32x8xbf16>, vector<8x8xbf16>, vector<32x8xf32> -> vector<32x8xf32>
    %c0_3 = arith.constant 0 : index
    %c0_4 = arith.constant 0 : index
    %4 = vector.load %arg3[%c0_3, %c0_4] : memref<1x8xf32, #tpu.memory_space<vmem>>, vector<1x8xf32>
    %5 = vector.broadcast %4 : vector<1x8xf32> to vector<32x8xf32>
    %6 = arith.addf %3, %5 : vector<32x8xf32>
    %cst_5 = arith.constant 0.000000e+00 : f32
    %7 = vector.broadcast %cst_5 : f32 to vector<32x8xf32>
    %8 = arith.maximumf %6, %7 : vector<32x8xf32>
    %9 = arith.truncf %8 : vector<32x8xf32> to vector<32x8xbf16>
    %c0_6 = arith.constant 0 : index
    %c0_7 = arith.constant 0 : index
    %10 = vector.load %arg4[%c0_6, %c0_7] : memref<8x8xbf16, #tpu.memory_space<vmem>>, vector<8x8xbf16>
    %cst_8 = arith.constant dense<0.000000e+00> : vector<32x8xf32>
    %11 = tpu.matmul %9, %10, %cst_8 {dimension_numbers = #tpu.dot_dimension_numbers<[1], [0], [0], [1], [0, 0, 1, 1], [], []>} : vector<32x8xbf16>, vector<8x8xbf16>, vector<32x8xf32> -> vector<32x8xf32>
    %c0_9 = arith.constant 0 : index
    %c0_10 = arith.constant 0 : index
    %12 = vector.load %arg5[%c0_9, %c0_10] : memref<1x8xf32, #tpu.memory_space<vmem>>, vector<1x8xf32>
    %13 = vector.broadcast %12 : vector<1x8xf32> to vector<32x8xf32>
    %14 = arith.addf %11, %13 : vector<32x8xf32>
    %cst_11 = arith.constant 0.000000e+00 : f32
    %15 = vector.broadcast %cst_11 : f32 to vector<32x8xf32>
    %16 = arith.maximumf %14, %15 : vector<32x8xf32>
    %17 = arith.truncf %16 : vector<32x8xf32> to vector<32x8xbf16>
    %c0_12 = arith.constant 0 : index
    %c0_13 = arith.constant 0 : index
    %18 = vector.load %arg6[%c0_12, %c0_13] : memref<8x32xbf16, #tpu.memory_space<vmem>>, vector<8x32xbf16>
    %cst_14 = arith.constant dense<0.000000e+00> : vector<32x32xf32>
    %19 = tpu.matmul %17, %18, %cst_14 {dimension_numbers = #tpu.dot_dimension_numbers<[1], [0], [0], [1], [0, 0, 1, 1], [], []>} : vector<32x8xbf16>, vector<8x32xbf16>, vector<32x32xf32> -> vector<32x32xf32>
    %c0_15 = arith.constant 0 : index
    %c0_16 = arith.constant 0 : index
    %20 = vector.load %arg7[%c0_15, %c0_16] : memref<1x32xf32, #tpu.memory_space<vmem>>, vector<1x32xf32>
    %21 = vector.broadcast %20 : vector<1x32xf32> to vector<32x32xf32>
    %22 = arith.addf %19, %21 : vector<32x32xf32>
    %c0_17 = arith.constant 0 : index
    %c0_18 = arith.constant 0 : index
    %23 = vector.load %arg8[%c0_17, %c0_18] : memref<32x32xf32, #tpu.memory_space<vmem>>, vector<32x32xf32>
    tpu.vector_store %arg8[%c0_17, %c0_18], %22 {strides = array<i32>} : memref<32x32xf32, #tpu.memory_space<vmem>>, vector<32x32xf32>,
    return
  }
  func.func @transform_0(%arg0: i32) -> (i32, i32) {
    %c0_i32 = arith.constant 0 : i32
    %c0_i32_0 = arith.constant 0 : i32
    return %arg0, %c0_i32 : i32, i32
  }
  func.func @transform_1(%arg0: i32) -> (i32, i32) {
    %c0_i32 = arith.constant 0 : i32
    %c0_i32_0 = arith.constant 0 : i32
    %c0_i32_1 = arith.constant 0 : i32
    return %c0_i32, %c0_i32_0 : i32, i32
  }
  func.func @transform_2(%arg0: i32) -> (i32, i32) {
    %c0_i32 = arith.constant 0 : i32
    %c0_i32_0 = arith.constant 0 : i32
    %c0_i32_1 = arith.constant 0 : i32
    return %c0_i32, %c0_i32_0 : i32, i32
  }
  func.func @transform_3(%arg0: i32) -> (i32, i32) {
    %c0_i32 = arith.constant 0 : i32
    %c0_i32_0 = arith.constant 0 : i32
    %c0_i32_1 = arith.constant 0 : i32
    return %c0_i32, %c0_i32_0 : i32, i32
  }
  func.func @transform_4(%arg0: i32) -> (i32, i32) {
    %c0_i32 = arith.constant 0 : i32
    %c0_i32_0 = arith.constant 0 : i32
    %c0_i32_1 = arith.constant 0 : i32
    return %c0_i32, %c0_i32_0 : i32, i32
  }
  func.func @transform_5(%arg0: i32) -> (i32, i32) {
    %c0_i32 = arith.constant 0 : i32
    %c0_i32_0 = arith.constant 0 : i32
    %c0_i32_1 = arith.constant 0 : i32
    return %c0_i32, %c0_i32_0 : i32, i32
  }
  func.func @transform_6(%arg0: i32) -> (i32, i32) {
    %c0_i32 = arith.constant 0 : i32
    %c0_i32_0 = arith.constant 0 : i32
    %c0_i32_1 = arith.constant 0 : i32
    return %c0_i32, %c0_i32_0 : i32, i32
  }
  func.func @transform_7(%arg0: i32) -> (i32, i32) {
    %c0_i32 = arith.constant 0 : i32
    %c0_i32_0 = arith.constant 0 : i32
    return %arg0, %c0_i32 : i32, i32
  }
}

module attributes {stable_mosaic.version = 11 : i64} {
  func.func @_graph_block_kernel(%arg0: i32, %arg1: memref<3x12x32xf32, #tpu.memory_space<vmem>>, %arg2: memref<12x12xf32, #tpu.memory_space<vmem>>, %arg3: memref<32x32xbf16, #tpu.memory_space<vmem>>, %arg4: memref<1x32xf32, #tpu.memory_space<vmem>>, %arg5: memref<1x32xf32, #tpu.memory_space<vmem>>, %arg6: memref<1x32xf32, #tpu.memory_space<vmem>>, %arg7: memref<32x16xbf16, #tpu.memory_space<vmem>>, %arg8: memref<1x16xf32, #tpu.memory_space<vmem>>, %arg9: memref<3x12x16xf32, #tpu.memory_space<vmem>>) attributes {dimension_semantics = [#tpu.dimension_semantics<parallel>], iteration_bounds = array<i64: 2>, scalar_prefetch = 0 : i64, scratch_operands = 0 : i64, tpu.core_type = #tpu.core_type<tc>, window_params = [{transform_indices = @transform_0, window_bounds = array<i64: 3, 12, 32>}, {pipeline_mode = #tpu.pipeline_mode<synchronous>, transform_indices = @transform_1, window_bounds = array<i64: 12, 12>}, {pipeline_mode = #tpu.pipeline_mode<synchronous>, transform_indices = @transform_2, window_bounds = array<i64: 32, 32>}, {pipeline_mode = #tpu.pipeline_mode<synchronous>, transform_indices = @transform_3, window_bounds = array<i64: 1, 32>}, {pipeline_mode = #tpu.pipeline_mode<synchronous>, transform_indices = @transform_4, window_bounds = array<i64: 1, 32>}, {pipeline_mode = #tpu.pipeline_mode<synchronous>, transform_indices = @transform_5, window_bounds = array<i64: 1, 32>}, {pipeline_mode = #tpu.pipeline_mode<synchronous>, transform_indices = @transform_6, window_bounds = array<i64: 32, 16>}, {pipeline_mode = #tpu.pipeline_mode<synchronous>, transform_indices = @transform_7, window_bounds = array<i64: 1, 16>}, {transform_indices = @transform_8, window_bounds = array<i64: 3, 12, 16>}]} {
    %c0 = arith.constant 0 : index
    %c0_0 = arith.constant 0 : index
    %0 = vector.load %arg3[%c0, %c0_0] : memref<32x32xbf16, #tpu.memory_space<vmem>>, vector<32x32xbf16>
    %c0_1 = arith.constant 0 : index
    %c0_2 = arith.constant 0 : index
    %1 = vector.load %arg7[%c0_1, %c0_2] : memref<32x16xbf16, #tpu.memory_space<vmem>>, vector<32x16xbf16>
    %c0_3 = arith.constant 0 : index
    %c0_4 = arith.constant 0 : index
    %2 = vector.load %arg4[%c0_3, %c0_4] : memref<1x32xf32, #tpu.memory_space<vmem>>, vector<1x32xf32>
    %c0_5 = arith.constant 0 : index
    %c0_6 = arith.constant 0 : index
    %3 = vector.load %arg8[%c0_5, %c0_6] : memref<1x16xf32, #tpu.memory_space<vmem>>, vector<1x16xf32>
    %c0_7 = arith.constant 0 : index
    %c0_8 = arith.constant 0 : index
    %4 = vector.load %arg5[%c0_7, %c0_8] : memref<1x32xf32, #tpu.memory_space<vmem>>, vector<1x32xf32>
    %c0_9 = arith.constant 0 : index
    %c0_10 = arith.constant 0 : index
    %5 = vector.load %arg6[%c0_9, %c0_10] : memref<1x32xf32, #tpu.memory_space<vmem>>, vector<1x32xf32>
    %c0_11 = arith.constant 0 : index
    %c0_12 = arith.constant 0 : index
    %6 = vector.load %arg2[%c0_11, %c0_12] : memref<12x12xf32, #tpu.memory_space<vmem>>, vector<12x12xf32>
    %7 = tpu.iota {dimensions = array<i32: 0>} : vector<12x12xi32>
    %8 = tpu.iota {dimensions = array<i32: 1>} : vector<12x12xi32>
    %9 = arith.cmpi eq, %7, %8 : vector<12x12xi32>
    %10 = arith.extui %9 : vector<12x12xi1> to vector<12x12xi32>
    %11 = arith.sitofp %10 : vector<12x12xi32> to vector<12x12xf32>
    %c0_13 = arith.constant 0 : index
    %c0_14 = arith.constant 0 : index
    %c0_15 = arith.constant 0 : index
    %12 = vector.load %arg1[%c0_13, %c0_14, %c0_15] : memref<3x12x32xf32, #tpu.memory_space<vmem>>, vector<1x12x32xf32>
    %13 = vector.shape_cast %12 : vector<1x12x32xf32> to vector<12x32xf32>
    %14 = arith.truncf %13 : vector<12x32xf32> to vector<12x32xbf16>
    %cst = arith.constant dense<0.000000e+00> : vector<12x32xf32>
    %15 = tpu.matmul %14, %0, %cst {dimension_numbers = #tpu.dot_dimension_numbers<[1], [0], [0], [1], [0, 0, 1, 1], [], []>} : vector<12x32xbf16>, vector<32x32xbf16>, vector<12x32xf32> -> vector<12x32xf32>
    %16 = vector.broadcast %2 : vector<1x32xf32> to vector<12x32xf32>
    %17 = arith.addf %15, %16 : vector<12x32xf32>
    %18 = arith.truncf %17 : vector<12x32xf32> to vector<12x32xbf16>
    %cst_16 = arith.constant dense<0.000000e+00> : vector<12x12xf32>
    %19 = tpu.matmul %18, %18, %cst_16 {dimension_numbers = #tpu.dot_dimension_numbers<[1], [1], [0], [0], [0, 0, 1, 0], [], []>} : vector<12x32xbf16>, vector<12x32xbf16>, vector<12x12xf32> -> vector<12x12xf32>
    %cst_17 = arith.constant 1.000000e+08 : f32
    %20 = vector.broadcast %cst_17 : f32 to vector<12x12xf32>
    %21 = arith.mulf %11, %20 : vector<12x12xf32>
    %22 = arith.subf %19, %21 : vector<12x12xf32>
    %cst_18 = arith.constant 0.000000e+00 : f32
    %23 = vector.broadcast %cst_18 : f32 to vector<12x12xf32>
    %24 = arith.cmpf ogt, %22, %23 : vector<12x12xf32>
    %cst_19 = arith.constant 0.00999999977 : f32
    %25 = vector.broadcast %cst_19 : f32 to vector<12x12xf32>
    %26 = arith.mulf %25, %22 : vector<12x12xf32>
    %27 = arith.select %24, %22, %26 : vector<12x12xi1>, vector<12x12xf32>
    %cst_20 = arith.constant dense<0xFF800000> : vector<12xf32>
    %28 = vector.multi_reduction <maximumf>, %27, %cst_20 [1] : vector<12x12xf32> to vector<12xf32>
    %29 = vector.shape_cast %28 : vector<12xf32> to vector<12x1xf32>
    %30 = vector.broadcast %29 : vector<12x1xf32> to vector<12x12xf32>
    %31 = arith.subf %27, %30 : vector<12x12xf32>
    %32 = math.exp %31 : vector<12x12xf32>
    %cst_21 = arith.constant dense<0.000000e+00> : vector<12xf32>
    %33 = vector.multi_reduction <add>, %32, %cst_21 [1] : vector<12x12xf32> to vector<12xf32>
    %34 = vector.shape_cast %33 : vector<12xf32> to vector<12x1xf32>
    %35 = tpu.reciprocal %34 {approx = true} : vector<12x1xf32> -> vector<12x1xf32>
    %36 = vector.broadcast %35 : vector<12x1xf32> to vector<12x12xf32>
    %37 = arith.mulf %32, %36 : vector<12x12xf32>
    %38 = arith.addf %37, %11 : vector<12x12xf32>
    %39 = arith.mulf %38, %6 : vector<12x12xf32>
    %40 = vector.broadcast %4 : vector<1x32xf32> to vector<12x32xf32>
    %41 = arith.mulf %13, %40 : vector<12x32xf32>
    %42 = vector.broadcast %5 : vector<1x32xf32> to vector<12x32xf32>
    %43 = arith.addf %41, %42 : vector<12x32xf32>
    %44 = arith.truncf %39 : vector<12x12xf32> to vector<12x12xbf16>
    %45 = arith.truncf %43 : vector<12x32xf32> to vector<12x32xbf16>
    %cst_22 = arith.constant dense<0.000000e+00> : vector<12x32xf32>
    %46 = tpu.matmul %44, %45, %cst_22 {dimension_numbers = #tpu.dot_dimension_numbers<[1], [0], [0], [1], [0, 0, 1, 1], [], []>} : vector<12x12xbf16>, vector<12x32xbf16>, vector<12x32xf32> -> vector<12x32xf32>
    %47 = arith.truncf %46 : vector<12x32xf32> to vector<12x32xbf16>
    %cst_23 = arith.constant dense<0.000000e+00> : vector<12x16xf32>
    %48 = tpu.matmul %47, %1, %cst_23 {dimension_numbers = #tpu.dot_dimension_numbers<[1], [0], [0], [1], [0, 0, 1, 1], [], []>} : vector<12x32xbf16>, vector<32x16xbf16>, vector<12x16xf32> -> vector<12x16xf32>
    %49 = vector.broadcast %3 : vector<1x16xf32> to vector<12x16xf32>
    %50 = arith.addf %48, %49 : vector<12x16xf32>
    %cst_24 = arith.constant 0.000000e+00 : f32
    %51 = vector.broadcast %cst_24 : f32 to vector<12x16xf32>
    %52 = arith.cmpf ogt, %50, %51 : vector<12x16xf32>
    %cst_25 = arith.constant 0.00999999977 : f32
    %53 = vector.broadcast %cst_25 : f32 to vector<12x16xf32>
    %54 = arith.mulf %53, %50 : vector<12x16xf32>
    %55 = arith.select %52, %50, %54 : vector<12x16xi1>, vector<12x16xf32>
    %c0_26 = arith.constant 0 : index
    %c0_27 = arith.constant 0 : index
    %c0_28 = arith.constant 0 : index
    %56 = vector.load %arg9[%c0_26, %c0_27, %c0_28] : memref<3x12x16xf32, #tpu.memory_space<vmem>>, vector<1x12x16xf32>
    %57 = vector.shape_cast %56 : vector<1x12x16xf32> to vector<12x16xf32>
    %58 = vector.shape_cast %55 : vector<12x16xf32> to vector<1x12x16xf32>
    tpu.vector_store %arg9[%c0_26, %c0_27, %c0_28], %58 {strides = array<i32>} : memref<3x12x16xf32, #tpu.memory_space<vmem>>, vector<1x12x16xf32>,
    %c1 = arith.constant 1 : index
    %c0_29 = arith.constant 0 : index
    %c0_30 = arith.constant 0 : index
    %59 = vector.load %arg1[%c1, %c0_29, %c0_30] : memref<3x12x32xf32, #tpu.memory_space<vmem>>, vector<1x12x32xf32>
    %60 = vector.shape_cast %59 : vector<1x12x32xf32> to vector<12x32xf32>
    %61 = arith.truncf %60 : vector<12x32xf32> to vector<12x32xbf16>
    %cst_31 = arith.constant dense<0.000000e+00> : vector<12x32xf32>
    %62 = tpu.matmul %61, %0, %cst_31 {dimension_numbers = #tpu.dot_dimension_numbers<[1], [0], [0], [1], [0, 0, 1, 1], [], []>} : vector<12x32xbf16>, vector<32x32xbf16>, vector<12x32xf32> -> vector<12x32xf32>
    %63 = vector.broadcast %2 : vector<1x32xf32> to vector<12x32xf32>
    %64 = arith.addf %62, %63 : vector<12x32xf32>
    %65 = arith.truncf %64 : vector<12x32xf32> to vector<12x32xbf16>
    %cst_32 = arith.constant dense<0.000000e+00> : vector<12x12xf32>
    %66 = tpu.matmul %65, %65, %cst_32 {dimension_numbers = #tpu.dot_dimension_numbers<[1], [1], [0], [0], [0, 0, 1, 0], [], []>} : vector<12x32xbf16>, vector<12x32xbf16>, vector<12x12xf32> -> vector<12x12xf32>
    %cst_33 = arith.constant 1.000000e+08 : f32
    %67 = vector.broadcast %cst_33 : f32 to vector<12x12xf32>
    %68 = arith.mulf %11, %67 : vector<12x12xf32>
    %69 = arith.subf %66, %68 : vector<12x12xf32>
    %cst_34 = arith.constant 0.000000e+00 : f32
    %70 = vector.broadcast %cst_34 : f32 to vector<12x12xf32>
    %71 = arith.cmpf ogt, %69, %70 : vector<12x12xf32>
    %cst_35 = arith.constant 0.00999999977 : f32
    %72 = vector.broadcast %cst_35 : f32 to vector<12x12xf32>
    %73 = arith.mulf %72, %69 : vector<12x12xf32>
    %74 = arith.select %71, %69, %73 : vector<12x12xi1>, vector<12x12xf32>
    %cst_36 = arith.constant dense<0xFF800000> : vector<12xf32>
    %75 = vector.multi_reduction <maximumf>, %74, %cst_36 [1] : vector<12x12xf32> to vector<12xf32>
    %76 = vector.shape_cast %75 : vector<12xf32> to vector<12x1xf32>
    %77 = vector.broadcast %76 : vector<12x1xf32> to vector<12x12xf32>
    %78 = arith.subf %74, %77 : vector<12x12xf32>
    %79 = math.exp %78 : vector<12x12xf32>
    %cst_37 = arith.constant dense<0.000000e+00> : vector<12xf32>
    %80 = vector.multi_reduction <add>, %79, %cst_37 [1] : vector<12x12xf32> to vector<12xf32>
    %81 = vector.shape_cast %80 : vector<12xf32> to vector<12x1xf32>
    %82 = tpu.reciprocal %81 {approx = true} : vector<12x1xf32> -> vector<12x1xf32>
    %83 = vector.broadcast %82 : vector<12x1xf32> to vector<12x12xf32>
    %84 = arith.mulf %79, %83 : vector<12x12xf32>
    %85 = arith.addf %84, %11 : vector<12x12xf32>
    %86 = arith.mulf %85, %6 : vector<12x12xf32>
    %87 = vector.broadcast %4 : vector<1x32xf32> to vector<12x32xf32>
    %88 = arith.mulf %60, %87 : vector<12x32xf32>
    %89 = vector.broadcast %5 : vector<1x32xf32> to vector<12x32xf32>
    %90 = arith.addf %88, %89 : vector<12x32xf32>
    %91 = arith.truncf %86 : vector<12x12xf32> to vector<12x12xbf16>
    %92 = arith.truncf %90 : vector<12x32xf32> to vector<12x32xbf16>
    %cst_38 = arith.constant dense<0.000000e+00> : vector<12x32xf32>
    %93 = tpu.matmul %91, %92, %cst_38 {dimension_numbers = #tpu.dot_dimension_numbers<[1], [0], [0], [1], [0, 0, 1, 1], [], []>} : vector<12x12xbf16>, vector<12x32xbf16>, vector<12x32xf32> -> vector<12x32xf32>
    %94 = arith.truncf %93 : vector<12x32xf32> to vector<12x32xbf16>
    %cst_39 = arith.constant dense<0.000000e+00> : vector<12x16xf32>
    %95 = tpu.matmul %94, %1, %cst_39 {dimension_numbers = #tpu.dot_dimension_numbers<[1], [0], [0], [1], [0, 0, 1, 1], [], []>} : vector<12x32xbf16>, vector<32x16xbf16>, vector<12x16xf32> -> vector<12x16xf32>
    %96 = vector.broadcast %3 : vector<1x16xf32> to vector<12x16xf32>
    %97 = arith.addf %95, %96 : vector<12x16xf32>
    %cst_40 = arith.constant 0.000000e+00 : f32
    %98 = vector.broadcast %cst_40 : f32 to vector<12x16xf32>
    %99 = arith.cmpf ogt, %97, %98 : vector<12x16xf32>
    %cst_41 = arith.constant 0.00999999977 : f32
    %100 = vector.broadcast %cst_41 : f32 to vector<12x16xf32>
    %101 = arith.mulf %100, %97 : vector<12x16xf32>
    %102 = arith.select %99, %97, %101 : vector<12x16xi1>, vector<12x16xf32>
    %c1_42 = arith.constant 1 : index
    %c0_43 = arith.constant 0 : index
    %c0_44 = arith.constant 0 : index
    %103 = vector.load %arg9[%c1_42, %c0_43, %c0_44] : memref<3x12x16xf32, #tpu.memory_space<vmem>>, vector<1x12x16xf32>
    %104 = vector.shape_cast %103 : vector<1x12x16xf32> to vector<12x16xf32>
    %105 = vector.shape_cast %102 : vector<12x16xf32> to vector<1x12x16xf32>
    tpu.vector_store %arg9[%c1_42, %c0_43, %c0_44], %105 {strides = array<i32>} : memref<3x12x16xf32, #tpu.memory_space<vmem>>, vector<1x12x16xf32>,
    %c2 = arith.constant 2 : index
    %c0_45 = arith.constant 0 : index
    %c0_46 = arith.constant 0 : index
    %106 = vector.load %arg1[%c2, %c0_45, %c0_46] : memref<3x12x32xf32, #tpu.memory_space<vmem>>, vector<1x12x32xf32>
    %107 = vector.shape_cast %106 : vector<1x12x32xf32> to vector<12x32xf32>
    %108 = arith.truncf %107 : vector<12x32xf32> to vector<12x32xbf16>
    %cst_47 = arith.constant dense<0.000000e+00> : vector<12x32xf32>
    %109 = tpu.matmul %108, %0, %cst_47 {dimension_numbers = #tpu.dot_dimension_numbers<[1], [0], [0], [1], [0, 0, 1, 1], [], []>} : vector<12x32xbf16>, vector<32x32xbf16>, vector<12x32xf32> -> vector<12x32xf32>
    %110 = vector.broadcast %2 : vector<1x32xf32> to vector<12x32xf32>
    %111 = arith.addf %109, %110 : vector<12x32xf32>
    %112 = arith.truncf %111 : vector<12x32xf32> to vector<12x32xbf16>
    %cst_48 = arith.constant dense<0.000000e+00> : vector<12x12xf32>
    %113 = tpu.matmul %112, %112, %cst_48 {dimension_numbers = #tpu.dot_dimension_numbers<[1], [1], [0], [0], [0, 0, 1, 0], [], []>} : vector<12x32xbf16>, vector<12x32xbf16>, vector<12x12xf32> -> vector<12x12xf32>
    %cst_49 = arith.constant 1.000000e+08 : f32
    %114 = vector.broadcast %cst_49 : f32 to vector<12x12xf32>
    %115 = arith.mulf %11, %114 : vector<12x12xf32>
    %116 = arith.subf %113, %115 : vector<12x12xf32>
    %cst_50 = arith.constant 0.000000e+00 : f32
    %117 = vector.broadcast %cst_50 : f32 to vector<12x12xf32>
    %118 = arith.cmpf ogt, %116, %117 : vector<12x12xf32>
    %cst_51 = arith.constant 0.00999999977 : f32
    %119 = vector.broadcast %cst_51 : f32 to vector<12x12xf32>
    %120 = arith.mulf %119, %116 : vector<12x12xf32>
    %121 = arith.select %118, %116, %120 : vector<12x12xi1>, vector<12x12xf32>
    %cst_52 = arith.constant dense<0xFF800000> : vector<12xf32>
    %122 = vector.multi_reduction <maximumf>, %121, %cst_52 [1] : vector<12x12xf32> to vector<12xf32>
    %123 = vector.shape_cast %122 : vector<12xf32> to vector<12x1xf32>
    %124 = vector.broadcast %123 : vector<12x1xf32> to vector<12x12xf32>
    %125 = arith.subf %121, %124 : vector<12x12xf32>
    %126 = math.exp %125 : vector<12x12xf32>
    %cst_53 = arith.constant dense<0.000000e+00> : vector<12xf32>
    %127 = vector.multi_reduction <add>, %126, %cst_53 [1] : vector<12x12xf32> to vector<12xf32>
    %128 = vector.shape_cast %127 : vector<12xf32> to vector<12x1xf32>
    %129 = tpu.reciprocal %128 {approx = true} : vector<12x1xf32> -> vector<12x1xf32>
    %130 = vector.broadcast %129 : vector<12x1xf32> to vector<12x12xf32>
    %131 = arith.mulf %126, %130 : vector<12x12xf32>
    %132 = arith.addf %131, %11 : vector<12x12xf32>
    %133 = arith.mulf %132, %6 : vector<12x12xf32>
    %134 = vector.broadcast %4 : vector<1x32xf32> to vector<12x32xf32>
    %135 = arith.mulf %107, %134 : vector<12x32xf32>
    %136 = vector.broadcast %5 : vector<1x32xf32> to vector<12x32xf32>
    %137 = arith.addf %135, %136 : vector<12x32xf32>
    %138 = arith.truncf %133 : vector<12x12xf32> to vector<12x12xbf16>
    %139 = arith.truncf %137 : vector<12x32xf32> to vector<12x32xbf16>
    %cst_54 = arith.constant dense<0.000000e+00> : vector<12x32xf32>
    %140 = tpu.matmul %138, %139, %cst_54 {dimension_numbers = #tpu.dot_dimension_numbers<[1], [0], [0], [1], [0, 0, 1, 1], [], []>} : vector<12x12xbf16>, vector<12x32xbf16>, vector<12x32xf32> -> vector<12x32xf32>
    %141 = arith.truncf %140 : vector<12x32xf32> to vector<12x32xbf16>
    %cst_55 = arith.constant dense<0.000000e+00> : vector<12x16xf32>
    %142 = tpu.matmul %141, %1, %cst_55 {dimension_numbers = #tpu.dot_dimension_numbers<[1], [0], [0], [1], [0, 0, 1, 1], [], []>} : vector<12x32xbf16>, vector<32x16xbf16>, vector<12x16xf32> -> vector<12x16xf32>
    %143 = vector.broadcast %3 : vector<1x16xf32> to vector<12x16xf32>
    %144 = arith.addf %142, %143 : vector<12x16xf32>
    %cst_56 = arith.constant 0.000000e+00 : f32
    %145 = vector.broadcast %cst_56 : f32 to vector<12x16xf32>
    %146 = arith.cmpf ogt, %144, %145 : vector<12x16xf32>
    %cst_57 = arith.constant 0.00999999977 : f32
    %147 = vector.broadcast %cst_57 : f32 to vector<12x16xf32>
    %148 = arith.mulf %147, %144 : vector<12x16xf32>
    %149 = arith.select %146, %144, %148 : vector<12x16xi1>, vector<12x16xf32>
    %c2_58 = arith.constant 2 : index
    %c0_59 = arith.constant 0 : index
    %c0_60 = arith.constant 0 : index
    %150 = vector.load %arg9[%c2_58, %c0_59, %c0_60] : memref<3x12x16xf32, #tpu.memory_space<vmem>>, vector<1x12x16xf32>
    %151 = vector.shape_cast %150 : vector<1x12x16xf32> to vector<12x16xf32>
    %152 = vector.shape_cast %149 : vector<12x16xf32> to vector<1x12x16xf32>
    tpu.vector_store %arg9[%c2_58, %c0_59, %c0_60], %152 {strides = array<i32>} : memref<3x12x16xf32, #tpu.memory_space<vmem>>, vector<1x12x16xf32>,
    return
  }
  func.func @transform_0(%arg0: i32) -> (i32, i32, i32) {
    %c0_i32 = arith.constant 0 : i32
    %c0_i32_0 = arith.constant 0 : i32
    %c0_i32_1 = arith.constant 0 : i32
    return %arg0, %c0_i32, %c0_i32_0 : i32, i32, i32
  }
  func.func @transform_1(%arg0: i32) -> (i32, i32) {
    %c0_i32 = arith.constant 0 : i32
    %c0_i32_0 = arith.constant 0 : i32
    %c0_i32_1 = arith.constant 0 : i32
    return %c0_i32, %c0_i32_0 : i32, i32
  }
  func.func @transform_2(%arg0: i32) -> (i32, i32) {
    %c0_i32 = arith.constant 0 : i32
    %c0_i32_0 = arith.constant 0 : i32
    %c0_i32_1 = arith.constant 0 : i32
    return %c0_i32, %c0_i32_0 : i32, i32
  }
  func.func @transform_3(%arg0: i32) -> (i32, i32) {
    %c0_i32 = arith.constant 0 : i32
    %c0_i32_0 = arith.constant 0 : i32
    %c0_i32_1 = arith.constant 0 : i32
    return %c0_i32, %c0_i32_0 : i32, i32
  }
  func.func @transform_4(%arg0: i32) -> (i32, i32) {
    %c0_i32 = arith.constant 0 : i32
    %c0_i32_0 = arith.constant 0 : i32
    %c0_i32_1 = arith.constant 0 : i32
    return %c0_i32, %c0_i32_0 : i32, i32
  }
  func.func @transform_5(%arg0: i32) -> (i32, i32) {
    %c0_i32 = arith.constant 0 : i32
    %c0_i32_0 = arith.constant 0 : i32
    %c0_i32_1 = arith.constant 0 : i32
    return %c0_i32, %c0_i32_0 : i32, i32
  }
  func.func @transform_6(%arg0: i32) -> (i32, i32) {
    %c0_i32 = arith.constant 0 : i32
    %c0_i32_0 = arith.constant 0 : i32
    %c0_i32_1 = arith.constant 0 : i32
    return %c0_i32, %c0_i32_0 : i32, i32
  }
  func.func @transform_7(%arg0: i32) -> (i32, i32) {
    %c0_i32 = arith.constant 0 : i32
    %c0_i32_0 = arith.constant 0 : i32
    %c0_i32_1 = arith.constant 0 : i32
    return %c0_i32, %c0_i32_0 : i32, i32
  }
  func.func @transform_8(%arg0: i32) -> (i32, i32, i32) {
    %c0_i32 = arith.constant 0 : i32
    %c0_i32_0 = arith.constant 0 : i32
    %c0_i32_1 = arith.constant 0 : i32
    return %arg0, %c0_i32, %c0_i32_0 : i32, i32, i32
  }
}

module attributes {stable_mosaic.version = 11 : i64} {
  func.func @_graph_block_kernel(%arg0: i32, %arg1: memref<7x8x32xf32, #tpu.memory_space<vmem>>, %arg2: memref<8x8xf32, #tpu.memory_space<vmem>>, %arg3: memref<32x32xbf16, #tpu.memory_space<vmem>>, %arg4: memref<1x32xf32, #tpu.memory_space<vmem>>, %arg5: memref<1x32xf32, #tpu.memory_space<vmem>>, %arg6: memref<1x32xf32, #tpu.memory_space<vmem>>, %arg7: memref<32x16xbf16, #tpu.memory_space<vmem>>, %arg8: memref<1x16xf32, #tpu.memory_space<vmem>>, %arg9: memref<7x8x16xf32, #tpu.memory_space<vmem>>) attributes {dimension_semantics = [#tpu.dimension_semantics<parallel>], iteration_bounds = array<i64: 2>, scalar_prefetch = 0 : i64, scratch_operands = 0 : i64, tpu.core_type = #tpu.core_type<tc>, window_params = [{transform_indices = @transform_0, window_bounds = array<i64: 7, 8, 32>}, {pipeline_mode = #tpu.pipeline_mode<synchronous>, transform_indices = @transform_1, window_bounds = array<i64: 8, 8>}, {pipeline_mode = #tpu.pipeline_mode<synchronous>, transform_indices = @transform_2, window_bounds = array<i64: 32, 32>}, {pipeline_mode = #tpu.pipeline_mode<synchronous>, transform_indices = @transform_3, window_bounds = array<i64: 1, 32>}, {pipeline_mode = #tpu.pipeline_mode<synchronous>, transform_indices = @transform_4, window_bounds = array<i64: 1, 32>}, {pipeline_mode = #tpu.pipeline_mode<synchronous>, transform_indices = @transform_5, window_bounds = array<i64: 1, 32>}, {pipeline_mode = #tpu.pipeline_mode<synchronous>, transform_indices = @transform_6, window_bounds = array<i64: 32, 16>}, {pipeline_mode = #tpu.pipeline_mode<synchronous>, transform_indices = @transform_7, window_bounds = array<i64: 1, 16>}, {transform_indices = @transform_8, window_bounds = array<i64: 7, 8, 16>}]} {
    %c0 = arith.constant 0 : index
    %c0_0 = arith.constant 0 : index
    %0 = vector.load %arg3[%c0, %c0_0] : memref<32x32xbf16, #tpu.memory_space<vmem>>, vector<32x32xbf16>
    %c0_1 = arith.constant 0 : index
    %c0_2 = arith.constant 0 : index
    %1 = vector.load %arg7[%c0_1, %c0_2] : memref<32x16xbf16, #tpu.memory_space<vmem>>, vector<32x16xbf16>
    %c0_3 = arith.constant 0 : index
    %c0_4 = arith.constant 0 : index
    %2 = vector.load %arg4[%c0_3, %c0_4] : memref<1x32xf32, #tpu.memory_space<vmem>>, vector<1x32xf32>
    %c0_5 = arith.constant 0 : index
    %c0_6 = arith.constant 0 : index
    %3 = vector.load %arg8[%c0_5, %c0_6] : memref<1x16xf32, #tpu.memory_space<vmem>>, vector<1x16xf32>
    %c0_7 = arith.constant 0 : index
    %c0_8 = arith.constant 0 : index
    %4 = vector.load %arg5[%c0_7, %c0_8] : memref<1x32xf32, #tpu.memory_space<vmem>>, vector<1x32xf32>
    %c0_9 = arith.constant 0 : index
    %c0_10 = arith.constant 0 : index
    %5 = vector.load %arg6[%c0_9, %c0_10] : memref<1x32xf32, #tpu.memory_space<vmem>>, vector<1x32xf32>
    %c0_11 = arith.constant 0 : index
    %c0_12 = arith.constant 0 : index
    %6 = vector.load %arg2[%c0_11, %c0_12] : memref<8x8xf32, #tpu.memory_space<vmem>>, vector<8x8xf32>
    %7 = tpu.iota {dimensions = array<i32: 0>} : vector<8x8xi32>
    %8 = tpu.iota {dimensions = array<i32: 1>} : vector<8x8xi32>
    %9 = arith.cmpi eq, %7, %8 : vector<8x8xi32>
    %10 = arith.extui %9 : vector<8x8xi1> to vector<8x8xi32>
    %11 = arith.sitofp %10 : vector<8x8xi32> to vector<8x8xf32>
    %c0_13 = arith.constant 0 : index
    %c0_14 = arith.constant 0 : index
    %c0_15 = arith.constant 0 : index
    %12 = vector.load %arg1[%c0_13, %c0_14, %c0_15] : memref<7x8x32xf32, #tpu.memory_space<vmem>>, vector<1x8x32xf32>
    %13 = vector.shape_cast %12 : vector<1x8x32xf32> to vector<8x32xf32>
    %14 = arith.truncf %13 : vector<8x32xf32> to vector<8x32xbf16>
    %cst = arith.constant dense<0.000000e+00> : vector<8x32xf32>
    %15 = tpu.matmul %14, %0, %cst {dimension_numbers = #tpu.dot_dimension_numbers<[1], [0], [0], [1], [0, 0, 1, 1], [], []>} : vector<8x32xbf16>, vector<32x32xbf16>, vector<8x32xf32> -> vector<8x32xf32>
    %16 = vector.broadcast %2 : vector<1x32xf32> to vector<8x32xf32>
    %17 = arith.addf %15, %16 : vector<8x32xf32>
    %18 = arith.truncf %17 : vector<8x32xf32> to vector<8x32xbf16>
    %cst_16 = arith.constant dense<0.000000e+00> : vector<8x8xf32>
    %19 = tpu.matmul %18, %18, %cst_16 {dimension_numbers = #tpu.dot_dimension_numbers<[1], [1], [0], [0], [0, 0, 1, 0], [], []>} : vector<8x32xbf16>, vector<8x32xbf16>, vector<8x8xf32> -> vector<8x8xf32>
    %cst_17 = arith.constant 1.000000e+08 : f32
    %20 = vector.broadcast %cst_17 : f32 to vector<8x8xf32>
    %21 = arith.mulf %11, %20 : vector<8x8xf32>
    %22 = arith.subf %19, %21 : vector<8x8xf32>
    %cst_18 = arith.constant 0.000000e+00 : f32
    %23 = vector.broadcast %cst_18 : f32 to vector<8x8xf32>
    %24 = arith.cmpf ogt, %22, %23 : vector<8x8xf32>
    %cst_19 = arith.constant 0.00999999977 : f32
    %25 = vector.broadcast %cst_19 : f32 to vector<8x8xf32>
    %26 = arith.mulf %25, %22 : vector<8x8xf32>
    %27 = arith.select %24, %22, %26 : vector<8x8xi1>, vector<8x8xf32>
    %cst_20 = arith.constant dense<0xFF800000> : vector<8xf32>
    %28 = vector.multi_reduction <maximumf>, %27, %cst_20 [1] : vector<8x8xf32> to vector<8xf32>
    %29 = vector.shape_cast %28 : vector<8xf32> to vector<8x1xf32>
    %30 = vector.broadcast %29 : vector<8x1xf32> to vector<8x8xf32>
    %31 = arith.subf %27, %30 : vector<8x8xf32>
    %32 = math.exp %31 : vector<8x8xf32>
    %cst_21 = arith.constant dense<0.000000e+00> : vector<8xf32>
    %33 = vector.multi_reduction <add>, %32, %cst_21 [1] : vector<8x8xf32> to vector<8xf32>
    %34 = vector.shape_cast %33 : vector<8xf32> to vector<8x1xf32>
    %35 = tpu.reciprocal %34 {approx = true} : vector<8x1xf32> -> vector<8x1xf32>
    %36 = vector.broadcast %35 : vector<8x1xf32> to vector<8x8xf32>
    %37 = arith.mulf %32, %36 : vector<8x8xf32>
    %38 = arith.addf %37, %11 : vector<8x8xf32>
    %39 = arith.mulf %38, %6 : vector<8x8xf32>
    %40 = vector.broadcast %4 : vector<1x32xf32> to vector<8x32xf32>
    %41 = arith.mulf %13, %40 : vector<8x32xf32>
    %42 = vector.broadcast %5 : vector<1x32xf32> to vector<8x32xf32>
    %43 = arith.addf %41, %42 : vector<8x32xf32>
    %44 = arith.truncf %39 : vector<8x8xf32> to vector<8x8xbf16>
    %45 = arith.truncf %43 : vector<8x32xf32> to vector<8x32xbf16>
    %cst_22 = arith.constant dense<0.000000e+00> : vector<8x32xf32>
    %46 = tpu.matmul %44, %45, %cst_22 {dimension_numbers = #tpu.dot_dimension_numbers<[1], [0], [0], [1], [0, 0, 1, 1], [], []>} : vector<8x8xbf16>, vector<8x32xbf16>, vector<8x32xf32> -> vector<8x32xf32>
    %47 = arith.truncf %46 : vector<8x32xf32> to vector<8x32xbf16>
    %cst_23 = arith.constant dense<0.000000e+00> : vector<8x16xf32>
    %48 = tpu.matmul %47, %1, %cst_23 {dimension_numbers = #tpu.dot_dimension_numbers<[1], [0], [0], [1], [0, 0, 1, 1], [], []>} : vector<8x32xbf16>, vector<32x16xbf16>, vector<8x16xf32> -> vector<8x16xf32>
    %49 = vector.broadcast %3 : vector<1x16xf32> to vector<8x16xf32>
    %50 = arith.addf %48, %49 : vector<8x16xf32>
    %cst_24 = arith.constant 0.000000e+00 : f32
    %51 = vector.broadcast %cst_24 : f32 to vector<8x16xf32>
    %52 = arith.cmpf ogt, %50, %51 : vector<8x16xf32>
    %cst_25 = arith.constant 0.00999999977 : f32
    %53 = vector.broadcast %cst_25 : f32 to vector<8x16xf32>
    %54 = arith.mulf %53, %50 : vector<8x16xf32>
    %55 = arith.select %52, %50, %54 : vector<8x16xi1>, vector<8x16xf32>
    %c0_26 = arith.constant 0 : index
    %c0_27 = arith.constant 0 : index
    %c0_28 = arith.constant 0 : index
    %56 = vector.load %arg9[%c0_26, %c0_27, %c0_28] : memref<7x8x16xf32, #tpu.memory_space<vmem>>, vector<1x8x16xf32>
    %57 = vector.shape_cast %56 : vector<1x8x16xf32> to vector<8x16xf32>
    %58 = vector.shape_cast %55 : vector<8x16xf32> to vector<1x8x16xf32>
    tpu.vector_store %arg9[%c0_26, %c0_27, %c0_28], %58 {strides = array<i32>} : memref<7x8x16xf32, #tpu.memory_space<vmem>>, vector<1x8x16xf32>,
    %c1 = arith.constant 1 : index
    %c0_29 = arith.constant 0 : index
    %c0_30 = arith.constant 0 : index
    %59 = vector.load %arg1[%c1, %c0_29, %c0_30] : memref<7x8x32xf32, #tpu.memory_space<vmem>>, vector<1x8x32xf32>
    %60 = vector.shape_cast %59 : vector<1x8x32xf32> to vector<8x32xf32>
    %61 = arith.truncf %60 : vector<8x32xf32> to vector<8x32xbf16>
    %cst_31 = arith.constant dense<0.000000e+00> : vector<8x32xf32>
    %62 = tpu.matmul %61, %0, %cst_31 {dimension_numbers = #tpu.dot_dimension_numbers<[1], [0], [0], [1], [0, 0, 1, 1], [], []>} : vector<8x32xbf16>, vector<32x32xbf16>, vector<8x32xf32> -> vector<8x32xf32>
    %63 = vector.broadcast %2 : vector<1x32xf32> to vector<8x32xf32>
    %64 = arith.addf %62, %63 : vector<8x32xf32>
    %65 = arith.truncf %64 : vector<8x32xf32> to vector<8x32xbf16>
    %cst_32 = arith.constant dense<0.000000e+00> : vector<8x8xf32>
    %66 = tpu.matmul %65, %65, %cst_32 {dimension_numbers = #tpu.dot_dimension_numbers<[1], [1], [0], [0], [0, 0, 1, 0], [], []>} : vector<8x32xbf16>, vector<8x32xbf16>, vector<8x8xf32> -> vector<8x8xf32>
    %cst_33 = arith.constant 1.000000e+08 : f32
    %67 = vector.broadcast %cst_33 : f32 to vector<8x8xf32>
    %68 = arith.mulf %11, %67 : vector<8x8xf32>
    %69 = arith.subf %66, %68 : vector<8x8xf32>
    %cst_34 = arith.constant 0.000000e+00 : f32
    %70 = vector.broadcast %cst_34 : f32 to vector<8x8xf32>
    %71 = arith.cmpf ogt, %69, %70 : vector<8x8xf32>
    %cst_35 = arith.constant 0.00999999977 : f32
    %72 = vector.broadcast %cst_35 : f32 to vector<8x8xf32>
    %73 = arith.mulf %72, %69 : vector<8x8xf32>
    %74 = arith.select %71, %69, %73 : vector<8x8xi1>, vector<8x8xf32>
    %cst_36 = arith.constant dense<0xFF800000> : vector<8xf32>
    %75 = vector.multi_reduction <maximumf>, %74, %cst_36 [1] : vector<8x8xf32> to vector<8xf32>
    %76 = vector.shape_cast %75 : vector<8xf32> to vector<8x1xf32>
    %77 = vector.broadcast %76 : vector<8x1xf32> to vector<8x8xf32>
    %78 = arith.subf %74, %77 : vector<8x8xf32>
    %79 = math.exp %78 : vector<8x8xf32>
    %cst_37 = arith.constant dense<0.000000e+00> : vector<8xf32>
    %80 = vector.multi_reduction <add>, %79, %cst_37 [1] : vector<8x8xf32> to vector<8xf32>
    %81 = vector.shape_cast %80 : vector<8xf32> to vector<8x1xf32>
    %82 = tpu.reciprocal %81 {approx = true} : vector<8x1xf32> -> vector<8x1xf32>
    %83 = vector.broadcast %82 : vector<8x1xf32> to vector<8x8xf32>
    %84 = arith.mulf %79, %83 : vector<8x8xf32>
    %85 = arith.addf %84, %11 : vector<8x8xf32>
    %86 = arith.mulf %85, %6 : vector<8x8xf32>
    %87 = vector.broadcast %4 : vector<1x32xf32> to vector<8x32xf32>
    %88 = arith.mulf %60, %87 : vector<8x32xf32>
    %89 = vector.broadcast %5 : vector<1x32xf32> to vector<8x32xf32>
    %90 = arith.addf %88, %89 : vector<8x32xf32>
    %91 = arith.truncf %86 : vector<8x8xf32> to vector<8x8xbf16>
    %92 = arith.truncf %90 : vector<8x32xf32> to vector<8x32xbf16>
    %cst_38 = arith.constant dense<0.000000e+00> : vector<8x32xf32>
    %93 = tpu.matmul %91, %92, %cst_38 {dimension_numbers = #tpu.dot_dimension_numbers<[1], [0], [0], [1], [0, 0, 1, 1], [], []>} : vector<8x8xbf16>, vector<8x32xbf16>, vector<8x32xf32> -> vector<8x32xf32>
    %94 = arith.truncf %93 : vector<8x32xf32> to vector<8x32xbf16>
    %cst_39 = arith.constant dense<0.000000e+00> : vector<8x16xf32>
    %95 = tpu.matmul %94, %1, %cst_39 {dimension_numbers = #tpu.dot_dimension_numbers<[1], [0], [0], [1], [0, 0, 1, 1], [], []>} : vector<8x32xbf16>, vector<32x16xbf16>, vector<8x16xf32> -> vector<8x16xf32>
    %96 = vector.broadcast %3 : vector<1x16xf32> to vector<8x16xf32>
    %97 = arith.addf %95, %96 : vector<8x16xf32>
    %cst_40 = arith.constant 0.000000e+00 : f32
    %98 = vector.broadcast %cst_40 : f32 to vector<8x16xf32>
    %99 = arith.cmpf ogt, %97, %98 : vector<8x16xf32>
    %cst_41 = arith.constant 0.00999999977 : f32
    %100 = vector.broadcast %cst_41 : f32 to vector<8x16xf32>
    %101 = arith.mulf %100, %97 : vector<8x16xf32>
    %102 = arith.select %99, %97, %101 : vector<8x16xi1>, vector<8x16xf32>
    %c1_42 = arith.constant 1 : index
    %c0_43 = arith.constant 0 : index
    %c0_44 = arith.constant 0 : index
    %103 = vector.load %arg9[%c1_42, %c0_43, %c0_44] : memref<7x8x16xf32, #tpu.memory_space<vmem>>, vector<1x8x16xf32>
    %104 = vector.shape_cast %103 : vector<1x8x16xf32> to vector<8x16xf32>
    %105 = vector.shape_cast %102 : vector<8x16xf32> to vector<1x8x16xf32>
    tpu.vector_store %arg9[%c1_42, %c0_43, %c0_44], %105 {strides = array<i32>} : memref<7x8x16xf32, #tpu.memory_space<vmem>>, vector<1x8x16xf32>,
    %c2 = arith.constant 2 : index
    %c0_45 = arith.constant 0 : index
    %c0_46 = arith.constant 0 : index
    %106 = vector.load %arg1[%c2, %c0_45, %c0_46] : memref<7x8x32xf32, #tpu.memory_space<vmem>>, vector<1x8x32xf32>
    %107 = vector.shape_cast %106 : vector<1x8x32xf32> to vector<8x32xf32>
    %108 = arith.truncf %107 : vector<8x32xf32> to vector<8x32xbf16>
    %cst_47 = arith.constant dense<0.000000e+00> : vector<8x32xf32>
    %109 = tpu.matmul %108, %0, %cst_47 {dimension_numbers = #tpu.dot_dimension_numbers<[1], [0], [0], [1], [0, 0, 1, 1], [], []>} : vector<8x32xbf16>, vector<32x32xbf16>, vector<8x32xf32> -> vector<8x32xf32>
    %110 = vector.broadcast %2 : vector<1x32xf32> to vector<8x32xf32>
    %111 = arith.addf %109, %110 : vector<8x32xf32>
    %112 = arith.truncf %111 : vector<8x32xf32> to vector<8x32xbf16>
    %cst_48 = arith.constant dense<0.000000e+00> : vector<8x8xf32>
    %113 = tpu.matmul %112, %112, %cst_48 {dimension_numbers = #tpu.dot_dimension_numbers<[1], [1], [0], [0], [0, 0, 1, 0], [], []>} : vector<8x32xbf16>, vector<8x32xbf16>, vector<8x8xf32> -> vector<8x8xf32>
    %cst_49 = arith.constant 1.000000e+08 : f32
    %114 = vector.broadcast %cst_49 : f32 to vector<8x8xf32>
    %115 = arith.mulf %11, %114 : vector<8x8xf32>
    %116 = arith.subf %113, %115 : vector<8x8xf32>
    %cst_50 = arith.constant 0.000000e+00 : f32
    %117 = vector.broadcast %cst_50 : f32 to vector<8x8xf32>
    %118 = arith.cmpf ogt, %116, %117 : vector<8x8xf32>
    %cst_51 = arith.constant 0.00999999977 : f32
    %119 = vector.broadcast %cst_51 : f32 to vector<8x8xf32>
    %120 = arith.mulf %119, %116 : vector<8x8xf32>
    %121 = arith.select %118, %116, %120 : vector<8x8xi1>, vector<8x8xf32>
    %cst_52 = arith.constant dense<0xFF800000> : vector<8xf32>
    %122 = vector.multi_reduction <maximumf>, %121, %cst_52 [1] : vector<8x8xf32> to vector<8xf32>
    %123 = vector.shape_cast %122 : vector<8xf32> to vector<8x1xf32>
    %124 = vector.broadcast %123 : vector<8x1xf32> to vector<8x8xf32>
    %125 = arith.subf %121, %124 : vector<8x8xf32>
    %126 = math.exp %125 : vector<8x8xf32>
    %cst_53 = arith.constant dense<0.000000e+00> : vector<8xf32>
    %127 = vector.multi_reduction <add>, %126, %cst_53 [1] : vector<8x8xf32> to vector<8xf32>
    %128 = vector.shape_cast %127 : vector<8xf32> to vector<8x1xf32>
    %129 = tpu.reciprocal %128 {approx = true} : vector<8x1xf32> -> vector<8x1xf32>
    %130 = vector.broadcast %129 : vector<8x1xf32> to vector<8x8xf32>
    %131 = arith.mulf %126, %130 : vector<8x8xf32>
    %132 = arith.addf %131, %11 : vector<8x8xf32>
    %133 = arith.mulf %132, %6 : vector<8x8xf32>
    %134 = vector.broadcast %4 : vector<1x32xf32> to vector<8x32xf32>
    %135 = arith.mulf %107, %134 : vector<8x32xf32>
    %136 = vector.broadcast %5 : vector<1x32xf32> to vector<8x32xf32>
    %137 = arith.addf %135, %136 : vector<8x32xf32>
    %138 = arith.truncf %133 : vector<8x8xf32> to vector<8x8xbf16>
    %139 = arith.truncf %137 : vector<8x32xf32> to vector<8x32xbf16>
    %cst_54 = arith.constant dense<0.000000e+00> : vector<8x32xf32>
    %140 = tpu.matmul %138, %139, %cst_54 {dimension_numbers = #tpu.dot_dimension_numbers<[1], [0], [0], [1], [0, 0, 1, 1], [], []>} : vector<8x8xbf16>, vector<8x32xbf16>, vector<8x32xf32> -> vector<8x32xf32>
    %141 = arith.truncf %140 : vector<8x32xf32> to vector<8x32xbf16>
    %cst_55 = arith.constant dense<0.000000e+00> : vector<8x16xf32>
    %142 = tpu.matmul %141, %1, %cst_55 {dimension_numbers = #tpu.dot_dimension_numbers<[1], [0], [0], [1], [0, 0, 1, 1], [], []>} : vector<8x32xbf16>, vector<32x16xbf16>, vector<8x16xf32> -> vector<8x16xf32>
    %143 = vector.broadcast %3 : vector<1x16xf32> to vector<8x16xf32>
    %144 = arith.addf %142, %143 : vector<8x16xf32>
    %cst_56 = arith.constant 0.000000e+00 : f32
    %145 = vector.broadcast %cst_56 : f32 to vector<8x16xf32>
    %146 = arith.cmpf ogt, %144, %145 : vector<8x16xf32>
    %cst_57 = arith.constant 0.00999999977 : f32
    %147 = vector.broadcast %cst_57 : f32 to vector<8x16xf32>
    %148 = arith.mulf %147, %144 : vector<8x16xf32>
    %149 = arith.select %146, %144, %148 : vector<8x16xi1>, vector<8x16xf32>
    %c2_58 = arith.constant 2 : index
    %c0_59 = arith.constant 0 : index
    %c0_60 = arith.constant 0 : index
    %150 = vector.load %arg9[%c2_58, %c0_59, %c0_60] : memref<7x8x16xf32, #tpu.memory_space<vmem>>, vector<1x8x16xf32>
    %151 = vector.shape_cast %150 : vector<1x8x16xf32> to vector<8x16xf32>
    %152 = vector.shape_cast %149 : vector<8x16xf32> to vector<1x8x16xf32>
    tpu.vector_store %arg9[%c2_58, %c0_59, %c0_60], %152 {strides = array<i32>} : memref<7x8x16xf32, #tpu.memory_space<vmem>>, vector<1x8x16xf32>,
    %c3 = arith.constant 3 : index
    %c0_61 = arith.constant 0 : index
    %c0_62 = arith.constant 0 : index
    %153 = vector.load %arg1[%c3, %c0_61, %c0_62] : memref<7x8x32xf32, #tpu.memory_space<vmem>>, vector<1x8x32xf32>
    %154 = vector.shape_cast %153 : vector<1x8x32xf32> to vector<8x32xf32>
    %155 = arith.truncf %154 : vector<8x32xf32> to vector<8x32xbf16>
    %cst_63 = arith.constant dense<0.000000e+00> : vector<8x32xf32>
    %156 = tpu.matmul %155, %0, %cst_63 {dimension_numbers = #tpu.dot_dimension_numbers<[1], [0], [0], [1], [0, 0, 1, 1], [], []>} : vector<8x32xbf16>, vector<32x32xbf16>, vector<8x32xf32> -> vector<8x32xf32>
    %157 = vector.broadcast %2 : vector<1x32xf32> to vector<8x32xf32>
    %158 = arith.addf %156, %157 : vector<8x32xf32>
    %159 = arith.truncf %158 : vector<8x32xf32> to vector<8x32xbf16>
    %cst_64 = arith.constant dense<0.000000e+00> : vector<8x8xf32>
    %160 = tpu.matmul %159, %159, %cst_64 {dimension_numbers = #tpu.dot_dimension_numbers<[1], [1], [0], [0], [0, 0, 1, 0], [], []>} : vector<8x32xbf16>, vector<8x32xbf16>, vector<8x8xf32> -> vector<8x8xf32>
    %cst_65 = arith.constant 1.000000e+08 : f32
    %161 = vector.broadcast %cst_65 : f32 to vector<8x8xf32>
    %162 = arith.mulf %11, %161 : vector<8x8xf32>
    %163 = arith.subf %160, %162 : vector<8x8xf32>
    %cst_66 = arith.constant 0.000000e+00 : f32
    %164 = vector.broadcast %cst_66 : f32 to vector<8x8xf32>
    %165 = arith.cmpf ogt, %163, %164 : vector<8x8xf32>
    %cst_67 = arith.constant 0.00999999977 : f32
    %166 = vector.broadcast %cst_67 : f32 to vector<8x8xf32>
    %167 = arith.mulf %166, %163 : vector<8x8xf32>
    %168 = arith.select %165, %163, %167 : vector<8x8xi1>, vector<8x8xf32>
    %cst_68 = arith.constant dense<0xFF800000> : vector<8xf32>
    %169 = vector.multi_reduction <maximumf>, %168, %cst_68 [1] : vector<8x8xf32> to vector<8xf32>
    %170 = vector.shape_cast %169 : vector<8xf32> to vector<8x1xf32>
    %171 = vector.broadcast %170 : vector<8x1xf32> to vector<8x8xf32>
    %172 = arith.subf %168, %171 : vector<8x8xf32>
    %173 = math.exp %172 : vector<8x8xf32>
    %cst_69 = arith.constant dense<0.000000e+00> : vector<8xf32>
    %174 = vector.multi_reduction <add>, %173, %cst_69 [1] : vector<8x8xf32> to vector<8xf32>
    %175 = vector.shape_cast %174 : vector<8xf32> to vector<8x1xf32>
    %176 = tpu.reciprocal %175 {approx = true} : vector<8x1xf32> -> vector<8x1xf32>
    %177 = vector.broadcast %176 : vector<8x1xf32> to vector<8x8xf32>
    %178 = arith.mulf %173, %177 : vector<8x8xf32>
    %179 = arith.addf %178, %11 : vector<8x8xf32>
    %180 = arith.mulf %179, %6 : vector<8x8xf32>
    %181 = vector.broadcast %4 : vector<1x32xf32> to vector<8x32xf32>
    %182 = arith.mulf %154, %181 : vector<8x32xf32>
    %183 = vector.broadcast %5 : vector<1x32xf32> to vector<8x32xf32>
    %184 = arith.addf %182, %183 : vector<8x32xf32>
    %185 = arith.truncf %180 : vector<8x8xf32> to vector<8x8xbf16>
    %186 = arith.truncf %184 : vector<8x32xf32> to vector<8x32xbf16>
    %cst_70 = arith.constant dense<0.000000e+00> : vector<8x32xf32>
    %187 = tpu.matmul %185, %186, %cst_70 {dimension_numbers = #tpu.dot_dimension_numbers<[1], [0], [0], [1], [0, 0, 1, 1], [], []>} : vector<8x8xbf16>, vector<8x32xbf16>, vector<8x32xf32> -> vector<8x32xf32>
    %188 = arith.truncf %187 : vector<8x32xf32> to vector<8x32xbf16>
    %cst_71 = arith.constant dense<0.000000e+00> : vector<8x16xf32>
    %189 = tpu.matmul %188, %1, %cst_71 {dimension_numbers = #tpu.dot_dimension_numbers<[1], [0], [0], [1], [0, 0, 1, 1], [], []>} : vector<8x32xbf16>, vector<32x16xbf16>, vector<8x16xf32> -> vector<8x16xf32>
    %190 = vector.broadcast %3 : vector<1x16xf32> to vector<8x16xf32>
    %191 = arith.addf %189, %190 : vector<8x16xf32>
    %cst_72 = arith.constant 0.000000e+00 : f32
    %192 = vector.broadcast %cst_72 : f32 to vector<8x16xf32>
    %193 = arith.cmpf ogt, %191, %192 : vector<8x16xf32>
    %cst_73 = arith.constant 0.00999999977 : f32
    %194 = vector.broadcast %cst_73 : f32 to vector<8x16xf32>
    %195 = arith.mulf %194, %191 : vector<8x16xf32>
    %196 = arith.select %193, %191, %195 : vector<8x16xi1>, vector<8x16xf32>
    %c3_74 = arith.constant 3 : index
    %c0_75 = arith.constant 0 : index
    %c0_76 = arith.constant 0 : index
    %197 = vector.load %arg9[%c3_74, %c0_75, %c0_76] : memref<7x8x16xf32, #tpu.memory_space<vmem>>, vector<1x8x16xf32>
    %198 = vector.shape_cast %197 : vector<1x8x16xf32> to vector<8x16xf32>
    %199 = vector.shape_cast %196 : vector<8x16xf32> to vector<1x8x16xf32>
    tpu.vector_store %arg9[%c3_74, %c0_75, %c0_76], %199 {strides = array<i32>} : memref<7x8x16xf32, #tpu.memory_space<vmem>>, vector<1x8x16xf32>,
    %c4 = arith.constant 4 : index
    %c0_77 = arith.constant 0 : index
    %c0_78 = arith.constant 0 : index
    %200 = vector.load %arg1[%c4, %c0_77, %c0_78] : memref<7x8x32xf32, #tpu.memory_space<vmem>>, vector<1x8x32xf32>
    %201 = vector.shape_cast %200 : vector<1x8x32xf32> to vector<8x32xf32>
    %202 = arith.truncf %201 : vector<8x32xf32> to vector<8x32xbf16>
    %cst_79 = arith.constant dense<0.000000e+00> : vector<8x32xf32>
    %203 = tpu.matmul %202, %0, %cst_79 {dimension_numbers = #tpu.dot_dimension_numbers<[1], [0], [0], [1], [0, 0, 1, 1], [], []>} : vector<8x32xbf16>, vector<32x32xbf16>, vector<8x32xf32> -> vector<8x32xf32>
    %204 = vector.broadcast %2 : vector<1x32xf32> to vector<8x32xf32>
    %205 = arith.addf %203, %204 : vector<8x32xf32>
    %206 = arith.truncf %205 : vector<8x32xf32> to vector<8x32xbf16>
    %cst_80 = arith.constant dense<0.000000e+00> : vector<8x8xf32>
    %207 = tpu.matmul %206, %206, %cst_80 {dimension_numbers = #tpu.dot_dimension_numbers<[1], [1], [0], [0], [0, 0, 1, 0], [], []>} : vector<8x32xbf16>, vector<8x32xbf16>, vector<8x8xf32> -> vector<8x8xf32>
    %cst_81 = arith.constant 1.000000e+08 : f32
    %208 = vector.broadcast %cst_81 : f32 to vector<8x8xf32>
    %209 = arith.mulf %11, %208 : vector<8x8xf32>
    %210 = arith.subf %207, %209 : vector<8x8xf32>
    %cst_82 = arith.constant 0.000000e+00 : f32
    %211 = vector.broadcast %cst_82 : f32 to vector<8x8xf32>
    %212 = arith.cmpf ogt, %210, %211 : vector<8x8xf32>
    %cst_83 = arith.constant 0.00999999977 : f32
    %213 = vector.broadcast %cst_83 : f32 to vector<8x8xf32>
    %214 = arith.mulf %213, %210 : vector<8x8xf32>
    %215 = arith.select %212, %210, %214 : vector<8x8xi1>, vector<8x8xf32>
    %cst_84 = arith.constant dense<0xFF800000> : vector<8xf32>
    %216 = vector.multi_reduction <maximumf>, %215, %cst_84 [1] : vector<8x8xf32> to vector<8xf32>
    %217 = vector.shape_cast %216 : vector<8xf32> to vector<8x1xf32>
    %218 = vector.broadcast %217 : vector<8x1xf32> to vector<8x8xf32>
    %219 = arith.subf %215, %218 : vector<8x8xf32>
    %220 = math.exp %219 : vector<8x8xf32>
    %cst_85 = arith.constant dense<0.000000e+00> : vector<8xf32>
    %221 = vector.multi_reduction <add>, %220, %cst_85 [1] : vector<8x8xf32> to vector<8xf32>
    %222 = vector.shape_cast %221 : vector<8xf32> to vector<8x1xf32>
    %223 = tpu.reciprocal %222 {approx = true} : vector<8x1xf32> -> vector<8x1xf32>
    %224 = vector.broadcast %223 : vector<8x1xf32> to vector<8x8xf32>
    %225 = arith.mulf %220, %224 : vector<8x8xf32>
    %226 = arith.addf %225, %11 : vector<8x8xf32>
    %227 = arith.mulf %226, %6 : vector<8x8xf32>
    %228 = vector.broadcast %4 : vector<1x32xf32> to vector<8x32xf32>
    %229 = arith.mulf %201, %228 : vector<8x32xf32>
    %230 = vector.broadcast %5 : vector<1x32xf32> to vector<8x32xf32>
    %231 = arith.addf %229, %230 : vector<8x32xf32>
    %232 = arith.truncf %227 : vector<8x8xf32> to vector<8x8xbf16>
    %233 = arith.truncf %231 : vector<8x32xf32> to vector<8x32xbf16>
    %cst_86 = arith.constant dense<0.000000e+00> : vector<8x32xf32>
    %234 = tpu.matmul %232, %233, %cst_86 {dimension_numbers = #tpu.dot_dimension_numbers<[1], [0], [0], [1], [0, 0, 1, 1], [], []>} : vector<8x8xbf16>, vector<8x32xbf16>, vector<8x32xf32> -> vector<8x32xf32>
    %235 = arith.truncf %234 : vector<8x32xf32> to vector<8x32xbf16>
    %cst_87 = arith.constant dense<0.000000e+00> : vector<8x16xf32>
    %236 = tpu.matmul %235, %1, %cst_87 {dimension_numbers = #tpu.dot_dimension_numbers<[1], [0], [0], [1], [0, 0, 1, 1], [], []>} : vector<8x32xbf16>, vector<32x16xbf16>, vector<8x16xf32> -> vector<8x16xf32>
    %237 = vector.broadcast %3 : vector<1x16xf32> to vector<8x16xf32>
    %238 = arith.addf %236, %237 : vector<8x16xf32>
    %cst_88 = arith.constant 0.000000e+00 : f32
    %239 = vector.broadcast %cst_88 : f32 to vector<8x16xf32>
    %240 = arith.cmpf ogt, %238, %239 : vector<8x16xf32>
    %cst_89 = arith.constant 0.00999999977 : f32
    %241 = vector.broadcast %cst_89 : f32 to vector<8x16xf32>
    %242 = arith.mulf %241, %238 : vector<8x16xf32>
    %243 = arith.select %240, %238, %242 : vector<8x16xi1>, vector<8x16xf32>
    %c4_90 = arith.constant 4 : index
    %c0_91 = arith.constant 0 : index
    %c0_92 = arith.constant 0 : index
    %244 = vector.load %arg9[%c4_90, %c0_91, %c0_92] : memref<7x8x16xf32, #tpu.memory_space<vmem>>, vector<1x8x16xf32>
    %245 = vector.shape_cast %244 : vector<1x8x16xf32> to vector<8x16xf32>
    %246 = vector.shape_cast %243 : vector<8x16xf32> to vector<1x8x16xf32>
    tpu.vector_store %arg9[%c4_90, %c0_91, %c0_92], %246 {strides = array<i32>} : memref<7x8x16xf32, #tpu.memory_space<vmem>>, vector<1x8x16xf32>,
    %c5 = arith.constant 5 : index
    %c0_93 = arith.constant 0 : index
    %c0_94 = arith.constant 0 : index
    %247 = vector.load %arg1[%c5, %c0_93, %c0_94] : memref<7x8x32xf32, #tpu.memory_space<vmem>>, vector<1x8x32xf32>
    %248 = vector.shape_cast %247 : vector<1x8x32xf32> to vector<8x32xf32>
    %249 = arith.truncf %248 : vector<8x32xf32> to vector<8x32xbf16>
    %cst_95 = arith.constant dense<0.000000e+00> : vector<8x32xf32>
    %250 = tpu.matmul %249, %0, %cst_95 {dimension_numbers = #tpu.dot_dimension_numbers<[1], [0], [0], [1], [0, 0, 1, 1], [], []>} : vector<8x32xbf16>, vector<32x32xbf16>, vector<8x32xf32> -> vector<8x32xf32>
    %251 = vector.broadcast %2 : vector<1x32xf32> to vector<8x32xf32>
    %252 = arith.addf %250, %251 : vector<8x32xf32>
    %253 = arith.truncf %252 : vector<8x32xf32> to vector<8x32xbf16>
    %cst_96 = arith.constant dense<0.000000e+00> : vector<8x8xf32>
    %254 = tpu.matmul %253, %253, %cst_96 {dimension_numbers = #tpu.dot_dimension_numbers<[1], [1], [0], [0], [0, 0, 1, 0], [], []>} : vector<8x32xbf16>, vector<8x32xbf16>, vector<8x8xf32> -> vector<8x8xf32>
    %cst_97 = arith.constant 1.000000e+08 : f32
    %255 = vector.broadcast %cst_97 : f32 to vector<8x8xf32>
    %256 = arith.mulf %11, %255 : vector<8x8xf32>
    %257 = arith.subf %254, %256 : vector<8x8xf32>
    %cst_98 = arith.constant 0.000000e+00 : f32
    %258 = vector.broadcast %cst_98 : f32 to vector<8x8xf32>
    %259 = arith.cmpf ogt, %257, %258 : vector<8x8xf32>
    %cst_99 = arith.constant 0.00999999977 : f32
    %260 = vector.broadcast %cst_99 : f32 to vector<8x8xf32>
    %261 = arith.mulf %260, %257 : vector<8x8xf32>
    %262 = arith.select %259, %257, %261 : vector<8x8xi1>, vector<8x8xf32>
    %cst_100 = arith.constant dense<0xFF800000> : vector<8xf32>
    %263 = vector.multi_reduction <maximumf>, %262, %cst_100 [1] : vector<8x8xf32> to vector<8xf32>
    %264 = vector.shape_cast %263 : vector<8xf32> to vector<8x1xf32>
    %265 = vector.broadcast %264 : vector<8x1xf32> to vector<8x8xf32>
    %266 = arith.subf %262, %265 : vector<8x8xf32>
    %267 = math.exp %266 : vector<8x8xf32>
    %cst_101 = arith.constant dense<0.000000e+00> : vector<8xf32>
    %268 = vector.multi_reduction <add>, %267, %cst_101 [1] : vector<8x8xf32> to vector<8xf32>
    %269 = vector.shape_cast %268 : vector<8xf32> to vector<8x1xf32>
    %270 = tpu.reciprocal %269 {approx = true} : vector<8x1xf32> -> vector<8x1xf32>
    %271 = vector.broadcast %270 : vector<8x1xf32> to vector<8x8xf32>
    %272 = arith.mulf %267, %271 : vector<8x8xf32>
    %273 = arith.addf %272, %11 : vector<8x8xf32>
    %274 = arith.mulf %273, %6 : vector<8x8xf32>
    %275 = vector.broadcast %4 : vector<1x32xf32> to vector<8x32xf32>
    %276 = arith.mulf %248, %275 : vector<8x32xf32>
    %277 = vector.broadcast %5 : vector<1x32xf32> to vector<8x32xf32>
    %278 = arith.addf %276, %277 : vector<8x32xf32>
    %279 = arith.truncf %274 : vector<8x8xf32> to vector<8x8xbf16>
    %280 = arith.truncf %278 : vector<8x32xf32> to vector<8x32xbf16>
    %cst_102 = arith.constant dense<0.000000e+00> : vector<8x32xf32>
    %281 = tpu.matmul %279, %280, %cst_102 {dimension_numbers = #tpu.dot_dimension_numbers<[1], [0], [0], [1], [0, 0, 1, 1], [], []>} : vector<8x8xbf16>, vector<8x32xbf16>, vector<8x32xf32> -> vector<8x32xf32>
    %282 = arith.truncf %281 : vector<8x32xf32> to vector<8x32xbf16>
    %cst_103 = arith.constant dense<0.000000e+00> : vector<8x16xf32>
    %283 = tpu.matmul %282, %1, %cst_103 {dimension_numbers = #tpu.dot_dimension_numbers<[1], [0], [0], [1], [0, 0, 1, 1], [], []>} : vector<8x32xbf16>, vector<32x16xbf16>, vector<8x16xf32> -> vector<8x16xf32>
    %284 = vector.broadcast %3 : vector<1x16xf32> to vector<8x16xf32>
    %285 = arith.addf %283, %284 : vector<8x16xf32>
    %cst_104 = arith.constant 0.000000e+00 : f32
    %286 = vector.broadcast %cst_104 : f32 to vector<8x16xf32>
    %287 = arith.cmpf ogt, %285, %286 : vector<8x16xf32>
    %cst_105 = arith.constant 0.00999999977 : f32
    %288 = vector.broadcast %cst_105 : f32 to vector<8x16xf32>
    %289 = arith.mulf %288, %285 : vector<8x16xf32>
    %290 = arith.select %287, %285, %289 : vector<8x16xi1>, vector<8x16xf32>
    %c5_106 = arith.constant 5 : index
    %c0_107 = arith.constant 0 : index
    %c0_108 = arith.constant 0 : index
    %291 = vector.load %arg9[%c5_106, %c0_107, %c0_108] : memref<7x8x16xf32, #tpu.memory_space<vmem>>, vector<1x8x16xf32>
    %292 = vector.shape_cast %291 : vector<1x8x16xf32> to vector<8x16xf32>
    %293 = vector.shape_cast %290 : vector<8x16xf32> to vector<1x8x16xf32>
    tpu.vector_store %arg9[%c5_106, %c0_107, %c0_108], %293 {strides = array<i32>} : memref<7x8x16xf32, #tpu.memory_space<vmem>>, vector<1x8x16xf32>,
    %c6 = arith.constant 6 : index
    %c0_109 = arith.constant 0 : index
    %c0_110 = arith.constant 0 : index
    %294 = vector.load %arg1[%c6, %c0_109, %c0_110] : memref<7x8x32xf32, #tpu.memory_space<vmem>>, vector<1x8x32xf32>
    %295 = vector.shape_cast %294 : vector<1x8x32xf32> to vector<8x32xf32>
    %296 = arith.truncf %295 : vector<8x32xf32> to vector<8x32xbf16>
    %cst_111 = arith.constant dense<0.000000e+00> : vector<8x32xf32>
    %297 = tpu.matmul %296, %0, %cst_111 {dimension_numbers = #tpu.dot_dimension_numbers<[1], [0], [0], [1], [0, 0, 1, 1], [], []>} : vector<8x32xbf16>, vector<32x32xbf16>, vector<8x32xf32> -> vector<8x32xf32>
    %298 = vector.broadcast %2 : vector<1x32xf32> to vector<8x32xf32>
    %299 = arith.addf %297, %298 : vector<8x32xf32>
    %300 = arith.truncf %299 : vector<8x32xf32> to vector<8x32xbf16>
    %cst_112 = arith.constant dense<0.000000e+00> : vector<8x8xf32>
    %301 = tpu.matmul %300, %300, %cst_112 {dimension_numbers = #tpu.dot_dimension_numbers<[1], [1], [0], [0], [0, 0, 1, 0], [], []>} : vector<8x32xbf16>, vector<8x32xbf16>, vector<8x8xf32> -> vector<8x8xf32>
    %cst_113 = arith.constant 1.000000e+08 : f32
    %302 = vector.broadcast %cst_113 : f32 to vector<8x8xf32>
    %303 = arith.mulf %11, %302 : vector<8x8xf32>
    %304 = arith.subf %301, %303 : vector<8x8xf32>
    %cst_114 = arith.constant 0.000000e+00 : f32
    %305 = vector.broadcast %cst_114 : f32 to vector<8x8xf32>
    %306 = arith.cmpf ogt, %304, %305 : vector<8x8xf32>
    %cst_115 = arith.constant 0.00999999977 : f32
    %307 = vector.broadcast %cst_115 : f32 to vector<8x8xf32>
    %308 = arith.mulf %307, %304 : vector<8x8xf32>
    %309 = arith.select %306, %304, %308 : vector<8x8xi1>, vector<8x8xf32>
    %cst_116 = arith.constant dense<0xFF800000> : vector<8xf32>
    %310 = vector.multi_reduction <maximumf>, %309, %cst_116 [1] : vector<8x8xf32> to vector<8xf32>
    %311 = vector.shape_cast %310 : vector<8xf32> to vector<8x1xf32>
    %312 = vector.broadcast %311 : vector<8x1xf32> to vector<8x8xf32>
    %313 = arith.subf %309, %312 : vector<8x8xf32>
    %314 = math.exp %313 : vector<8x8xf32>
    %cst_117 = arith.constant dense<0.000000e+00> : vector<8xf32>
    %315 = vector.multi_reduction <add>, %314, %cst_117 [1] : vector<8x8xf32> to vector<8xf32>
    %316 = vector.shape_cast %315 : vector<8xf32> to vector<8x1xf32>
    %317 = tpu.reciprocal %316 {approx = true} : vector<8x1xf32> -> vector<8x1xf32>
    %318 = vector.broadcast %317 : vector<8x1xf32> to vector<8x8xf32>
    %319 = arith.mulf %314, %318 : vector<8x8xf32>
    %320 = arith.addf %319, %11 : vector<8x8xf32>
    %321 = arith.mulf %320, %6 : vector<8x8xf32>
    %322 = vector.broadcast %4 : vector<1x32xf32> to vector<8x32xf32>
    %323 = arith.mulf %295, %322 : vector<8x32xf32>
    %324 = vector.broadcast %5 : vector<1x32xf32> to vector<8x32xf32>
    %325 = arith.addf %323, %324 : vector<8x32xf32>
    %326 = arith.truncf %321 : vector<8x8xf32> to vector<8x8xbf16>
    %327 = arith.truncf %325 : vector<8x32xf32> to vector<8x32xbf16>
    %cst_118 = arith.constant dense<0.000000e+00> : vector<8x32xf32>
    %328 = tpu.matmul %326, %327, %cst_118 {dimension_numbers = #tpu.dot_dimension_numbers<[1], [0], [0], [1], [0, 0, 1, 1], [], []>} : vector<8x8xbf16>, vector<8x32xbf16>, vector<8x32xf32> -> vector<8x32xf32>
    %329 = arith.truncf %328 : vector<8x32xf32> to vector<8x32xbf16>
    %cst_119 = arith.constant dense<0.000000e+00> : vector<8x16xf32>
    %330 = tpu.matmul %329, %1, %cst_119 {dimension_numbers = #tpu.dot_dimension_numbers<[1], [0], [0], [1], [0, 0, 1, 1], [], []>} : vector<8x32xbf16>, vector<32x16xbf16>, vector<8x16xf32> -> vector<8x16xf32>
    %331 = vector.broadcast %3 : vector<1x16xf32> to vector<8x16xf32>
    %332 = arith.addf %330, %331 : vector<8x16xf32>
    %cst_120 = arith.constant 0.000000e+00 : f32
    %333 = vector.broadcast %cst_120 : f32 to vector<8x16xf32>
    %334 = arith.cmpf ogt, %332, %333 : vector<8x16xf32>
    %cst_121 = arith.constant 0.00999999977 : f32
    %335 = vector.broadcast %cst_121 : f32 to vector<8x16xf32>
    %336 = arith.mulf %335, %332 : vector<8x16xf32>
    %337 = arith.select %334, %332, %336 : vector<8x16xi1>, vector<8x16xf32>
    %c6_122 = arith.constant 6 : index
    %c0_123 = arith.constant 0 : index
    %c0_124 = arith.constant 0 : index
    %338 = vector.load %arg9[%c6_122, %c0_123, %c0_124] : memref<7x8x16xf32, #tpu.memory_space<vmem>>, vector<1x8x16xf32>
    %339 = vector.shape_cast %338 : vector<1x8x16xf32> to vector<8x16xf32>
    %340 = vector.shape_cast %337 : vector<8x16xf32> to vector<1x8x16xf32>
    tpu.vector_store %arg9[%c6_122, %c0_123, %c0_124], %340 {strides = array<i32>} : memref<7x8x16xf32, #tpu.memory_space<vmem>>, vector<1x8x16xf32>,
    return
  }
  func.func @transform_0(%arg0: i32) -> (i32, i32, i32) {
    %c0_i32 = arith.constant 0 : i32
    %c0_i32_0 = arith.constant 0 : i32
    %c0_i32_1 = arith.constant 0 : i32
    return %arg0, %c0_i32, %c0_i32_0 : i32, i32, i32
  }
  func.func @transform_1(%arg0: i32) -> (i32, i32) {
    %c0_i32 = arith.constant 0 : i32
    %c0_i32_0 = arith.constant 0 : i32
    %c0_i32_1 = arith.constant 0 : i32
    return %c0_i32, %c0_i32_0 : i32, i32
  }
  func.func @transform_2(%arg0: i32) -> (i32, i32) {
    %c0_i32 = arith.constant 0 : i32
    %c0_i32_0 = arith.constant 0 : i32
    %c0_i32_1 = arith.constant 0 : i32
    return %c0_i32, %c0_i32_0 : i32, i32
  }
  func.func @transform_3(%arg0: i32) -> (i32, i32) {
    %c0_i32 = arith.constant 0 : i32
    %c0_i32_0 = arith.constant 0 : i32
    %c0_i32_1 = arith.constant 0 : i32
    return %c0_i32, %c0_i32_0 : i32, i32
  }
  func.func @transform_4(%arg0: i32) -> (i32, i32) {
    %c0_i32 = arith.constant 0 : i32
    %c0_i32_0 = arith.constant 0 : i32
    %c0_i32_1 = arith.constant 0 : i32
    return %c0_i32, %c0_i32_0 : i32, i32
  }
  func.func @transform_5(%arg0: i32) -> (i32, i32) {
    %c0_i32 = arith.constant 0 : i32
    %c0_i32_0 = arith.constant 0 : i32
    %c0_i32_1 = arith.constant 0 : i32
    return %c0_i32, %c0_i32_0 : i32, i32
  }
  func.func @transform_6(%arg0: i32) -> (i32, i32) {
    %c0_i32 = arith.constant 0 : i32
    %c0_i32_0 = arith.constant 0 : i32
    %c0_i32_1 = arith.constant 0 : i32
    return %c0_i32, %c0_i32_0 : i32, i32
  }
  func.func @transform_7(%arg0: i32) -> (i32, i32) {
    %c0_i32 = arith.constant 0 : i32
    %c0_i32_0 = arith.constant 0 : i32
    %c0_i32_1 = arith.constant 0 : i32
    return %c0_i32, %c0_i32_0 : i32, i32
  }
  func.func @transform_8(%arg0: i32) -> (i32, i32, i32) {
    %c0_i32 = arith.constant 0 : i32
    %c0_i32_0 = arith.constant 0 : i32
    %c0_i32_1 = arith.constant 0 : i32
    return %arg0, %c0_i32, %c0_i32_0 : i32, i32, i32
  }
}

module attributes {stable_mosaic.version = 11 : i64} {
  func.func @_fc_head_kernel(%arg0: i32, %arg1: memref<8x160xf32, #tpu.memory_space<vmem>>, %arg2: memref<160x300xbf16, #tpu.memory_space<vmem>>, %arg3: memref<1x300xf32, #tpu.memory_space<vmem>>, %arg4: memref<300x150xbf16, #tpu.memory_space<vmem>>, %arg5: memref<1x150xf32, #tpu.memory_space<vmem>>, %arg6: memref<150x60xbf16, #tpu.memory_space<vmem>>, %arg7: memref<1x60xf32, #tpu.memory_space<vmem>>, %arg8: memref<60x5xbf16, #tpu.memory_space<vmem>>, %arg9: memref<1x5xf32, #tpu.memory_space<vmem>>, %arg10: memref<8x5xf32, #tpu.memory_space<vmem>>) attributes {dimension_semantics = [#tpu.dimension_semantics<parallel>], iteration_bounds = array<i64: 1>, scalar_prefetch = 0 : i64, scratch_operands = 0 : i64, tpu.core_type = #tpu.core_type<tc>, window_params = [{transform_indices = @transform_0, window_bounds = array<i64: 8, 160>}, {pipeline_mode = #tpu.pipeline_mode<synchronous>, transform_indices = @transform_1, window_bounds = array<i64: 160, 300>}, {pipeline_mode = #tpu.pipeline_mode<synchronous>, transform_indices = @transform_2, window_bounds = array<i64: 1, 300>}, {pipeline_mode = #tpu.pipeline_mode<synchronous>, transform_indices = @transform_3, window_bounds = array<i64: 300, 150>}, {pipeline_mode = #tpu.pipeline_mode<synchronous>, transform_indices = @transform_4, window_bounds = array<i64: 1, 150>}, {pipeline_mode = #tpu.pipeline_mode<synchronous>, transform_indices = @transform_5, window_bounds = array<i64: 150, 60>}, {pipeline_mode = #tpu.pipeline_mode<synchronous>, transform_indices = @transform_6, window_bounds = array<i64: 1, 60>}, {pipeline_mode = #tpu.pipeline_mode<synchronous>, transform_indices = @transform_7, window_bounds = array<i64: 60, 5>}, {pipeline_mode = #tpu.pipeline_mode<synchronous>, transform_indices = @transform_8, window_bounds = array<i64: 1, 5>}, {transform_indices = @transform_9, window_bounds = array<i64: 8, 5>}]} {
    %c0 = arith.constant 0 : index
    %c0_0 = arith.constant 0 : index
    %0 = vector.load %arg1[%c0, %c0_0] : memref<8x160xf32, #tpu.memory_space<vmem>>, vector<8x160xf32>
    %1 = arith.truncf %0 : vector<8x160xf32> to vector<8x160xbf16>
    %c0_1 = arith.constant 0 : index
    %c0_2 = arith.constant 0 : index
    %2 = vector.load %arg2[%c0_1, %c0_2] : memref<160x300xbf16, #tpu.memory_space<vmem>>, vector<160x300xbf16>
    %cst = arith.constant dense<0.000000e+00> : vector<8x300xf32>
    %3 = tpu.matmul %1, %2, %cst {dimension_numbers = #tpu.dot_dimension_numbers<[1], [0], [0], [1], [0, 0, 1, 1], [], []>} : vector<8x160xbf16>, vector<160x300xbf16>, vector<8x300xf32> -> vector<8x300xf32>
    %c0_3 = arith.constant 0 : index
    %c0_4 = arith.constant 0 : index
    %4 = vector.load %arg3[%c0_3, %c0_4] : memref<1x300xf32, #tpu.memory_space<vmem>>, vector<1x300xf32>
    %5 = vector.broadcast %4 : vector<1x300xf32> to vector<8x300xf32>
    %6 = arith.addf %3, %5 : vector<8x300xf32>
    %cst_5 = arith.constant 0.000000e+00 : f32
    %7 = vector.broadcast %cst_5 : f32 to vector<8x300xf32>
    %8 = arith.maximumf %6, %7 : vector<8x300xf32>
    %9 = arith.truncf %8 : vector<8x300xf32> to vector<8x300xbf16>
    %c0_6 = arith.constant 0 : index
    %c0_7 = arith.constant 0 : index
    %10 = vector.load %arg4[%c0_6, %c0_7] : memref<300x150xbf16, #tpu.memory_space<vmem>>, vector<300x150xbf16>
    %cst_8 = arith.constant dense<0.000000e+00> : vector<8x150xf32>
    %11 = tpu.matmul %9, %10, %cst_8 {dimension_numbers = #tpu.dot_dimension_numbers<[1], [0], [0], [1], [0, 0, 1, 1], [], []>} : vector<8x300xbf16>, vector<300x150xbf16>, vector<8x150xf32> -> vector<8x150xf32>
    %c0_9 = arith.constant 0 : index
    %c0_10 = arith.constant 0 : index
    %12 = vector.load %arg5[%c0_9, %c0_10] : memref<1x150xf32, #tpu.memory_space<vmem>>, vector<1x150xf32>
    %13 = vector.broadcast %12 : vector<1x150xf32> to vector<8x150xf32>
    %14 = arith.addf %11, %13 : vector<8x150xf32>
    %cst_11 = arith.constant 0.000000e+00 : f32
    %15 = vector.broadcast %cst_11 : f32 to vector<8x150xf32>
    %16 = arith.maximumf %14, %15 : vector<8x150xf32>
    %17 = arith.truncf %16 : vector<8x150xf32> to vector<8x150xbf16>
    %c0_12 = arith.constant 0 : index
    %c0_13 = arith.constant 0 : index
    %18 = vector.load %arg6[%c0_12, %c0_13] : memref<150x60xbf16, #tpu.memory_space<vmem>>, vector<150x60xbf16>
    %cst_14 = arith.constant dense<0.000000e+00> : vector<8x60xf32>
    %19 = tpu.matmul %17, %18, %cst_14 {dimension_numbers = #tpu.dot_dimension_numbers<[1], [0], [0], [1], [0, 0, 1, 1], [], []>} : vector<8x150xbf16>, vector<150x60xbf16>, vector<8x60xf32> -> vector<8x60xf32>
    %c0_15 = arith.constant 0 : index
    %c0_16 = arith.constant 0 : index
    %20 = vector.load %arg7[%c0_15, %c0_16] : memref<1x60xf32, #tpu.memory_space<vmem>>, vector<1x60xf32>
    %21 = vector.broadcast %20 : vector<1x60xf32> to vector<8x60xf32>
    %22 = arith.addf %19, %21 : vector<8x60xf32>
    %cst_17 = arith.constant 0.000000e+00 : f32
    %23 = vector.broadcast %cst_17 : f32 to vector<8x60xf32>
    %24 = arith.maximumf %22, %23 : vector<8x60xf32>
    %25 = arith.truncf %24 : vector<8x60xf32> to vector<8x60xbf16>
    %c0_18 = arith.constant 0 : index
    %c0_19 = arith.constant 0 : index
    %26 = vector.load %arg8[%c0_18, %c0_19] : memref<60x5xbf16, #tpu.memory_space<vmem>>, vector<60x5xbf16>
    %cst_20 = arith.constant dense<0.000000e+00> : vector<8x5xf32>
    %27 = tpu.matmul %25, %26, %cst_20 {dimension_numbers = #tpu.dot_dimension_numbers<[1], [0], [0], [1], [0, 0, 1, 1], [], []>} : vector<8x60xbf16>, vector<60x5xbf16>, vector<8x5xf32> -> vector<8x5xf32>
    %c0_21 = arith.constant 0 : index
    %c0_22 = arith.constant 0 : index
    %28 = vector.load %arg9[%c0_21, %c0_22] : memref<1x5xf32, #tpu.memory_space<vmem>>, vector<1x5xf32>
    %29 = vector.broadcast %28 : vector<1x5xf32> to vector<8x5xf32>
    %30 = arith.addf %27, %29 : vector<8x5xf32>
    %c0_23 = arith.constant 0 : index
    %c0_24 = arith.constant 0 : index
    %31 = vector.load %arg10[%c0_23, %c0_24] : memref<8x5xf32, #tpu.memory_space<vmem>>, vector<8x5xf32>
    tpu.vector_store %arg10[%c0_23, %c0_24], %30 {strides = array<i32>} : memref<8x5xf32, #tpu.memory_space<vmem>>, vector<8x5xf32>,
    return
  }
  func.func @transform_0(%arg0: i32) -> (i32, i32) {
    %c0_i32 = arith.constant 0 : i32
    %c0_i32_0 = arith.constant 0 : i32
    return %arg0, %c0_i32 : i32, i32
  }
  func.func @transform_1(%arg0: i32) -> (i32, i32) {
    %c0_i32 = arith.constant 0 : i32
    %c0_i32_0 = arith.constant 0 : i32
    %c0_i32_1 = arith.constant 0 : i32
    return %c0_i32, %c0_i32_0 : i32, i32
  }
  func.func @transform_2(%arg0: i32) -> (i32, i32) {
    %c0_i32 = arith.constant 0 : i32
    %c0_i32_0 = arith.constant 0 : i32
    %c0_i32_1 = arith.constant 0 : i32
    return %c0_i32, %c0_i32_0 : i32, i32
  }
  func.func @transform_3(%arg0: i32) -> (i32, i32) {
    %c0_i32 = arith.constant 0 : i32
    %c0_i32_0 = arith.constant 0 : i32
    %c0_i32_1 = arith.constant 0 : i32
    return %c0_i32, %c0_i32_0 : i32, i32
  }
  func.func @transform_4(%arg0: i32) -> (i32, i32) {
    %c0_i32 = arith.constant 0 : i32
    %c0_i32_0 = arith.constant 0 : i32
    %c0_i32_1 = arith.constant 0 : i32
    return %c0_i32, %c0_i32_0 : i32, i32
  }
  func.func @transform_5(%arg0: i32) -> (i32, i32) {
    %c0_i32 = arith.constant 0 : i32
    %c0_i32_0 = arith.constant 0 : i32
    %c0_i32_1 = arith.constant 0 : i32
    return %c0_i32, %c0_i32_0 : i32, i32
  }
  func.func @transform_6(%arg0: i32) -> (i32, i32) {
    %c0_i32 = arith.constant 0 : i32
    %c0_i32_0 = arith.constant 0 : i32
    %c0_i32_1 = arith.constant 0 : i32
    return %c0_i32, %c0_i32_0 : i32, i32
  }
  func.func @transform_7(%arg0: i32) -> (i32, i32) {
    %c0_i32 = arith.constant 0 : i32
    %c0_i32_0 = arith.constant 0 : i32
    %c0_i32_1 = arith.constant 0 : i32
    return %c0_i32, %c0_i32_0 : i32, i32
  }
  func.func @transform_8(%arg0: i32) -> (i32, i32) {
    %c0_i32 = arith.constant 0 : i32
    %c0_i32_0 = arith.constant 0 : i32
    %c0_i32_1 = arith.constant 0 : i32
    return %c0_i32, %c0_i32_0 : i32, i32
  }
  func.func @transform_9(%arg0: i32) -> (i32, i32) {
    %c0_i32 = arith.constant 0 : i32
    %c0_i32_0 = arith.constant 0 : i32
    return %arg0, %c0_i32 : i32, i32
  }
}

</mosaic_0001>

<bundles_post_ra>
// kernel: reverse
= control target key start
LH: loop header
LB: loop body
LE: loop exit
PB: predicated region body
PF: predicated region fallthrough
CT: control target
= control target key end

     0   :  { %v20_v3 = vmov 0.0   ;;  %s49_s0 = inlined_call_operand.vmem [shape: f32[8,1,3], index: 0, kind: input, shape index: {}]   ;;  %s50_s1 = inlined_call_operand.vmem [shape: bf16[8,1,3], index: 1, kind: output, shape index: {}]  }
   0x1   :  { %v15_v0 = vld [vmem:[%s49_s0 + $0x2] sm:$0x1]  ;;  %v16_v1 = vld [vmem:[%s49_s0 + $0x1] sm:$0x1]  ;;  %v11_v2 = vld [vmem:[%s49_s0] sm:$0x1] }
   0x2   :  { %v4_v4 = vpack.c.bf16 %v20_v3, %v15_v0  ;;  %v9_v5 = vpack.c.bf16 %v20_v3, %v16_v1  ;;  %v13_v6 = vpack.c.bf16 %v20_v3, %v11_v2 }
   0x4   :  { %5 = vst [vmem:[%s50_s1] sm:$0x1] %v4_v4  ;;  %17 = vst [vmem:[%s50_s1 + $0x1] sm:$0x1] %v9_v5 }
   0x5   :  { %18 = vst [vmem:[%s50_s1 + $0x2] sm:$0x1] %v13_v6 }

// kernel: reverse.1
= control target key start
LH: loop header
LB: loop body
LE: loop exit
PB: predicated region body
PF: predicated region fallthrough
CT: control target
= control target key end

     0   :  { %v25_v4 = vmov 0.0   ;;  %s51_s0 = inlined_call_operand.vmem [shape: f32[8,8,3], index: 0, kind: input, shape index: {}]   ;;  %s52_s1 = inlined_call_operand.vmem [shape: bf16[8,8,3], index: 1, kind: output, shape index: {}]  }
   0x1   :  { %v15_v0 = vld [vmem:[%s51_s0 + $0x10] sm:$0xff]  ;;  %v16_v1 = vld [vmem:[%s51_s0 + $0x8] sm:$0xff]  ;;  %v11_v2 = vld [vmem:[%s51_s0] sm:$0xff] }
   0x2   :  { %v22_v3 = vpack.c.bf16 %v16_v1, %v15_v0  ;;  %v13_v5 = vpack.c.bf16 %v25_v4, %v11_v2 }
   0x4   :  { %23 = vst [vmem:[%s52_s1] sm:$0xff] %v22_v3   ;;  %18 = vst [vmem:[%s52_s1 + $0x8] sm:$0xf] %v13_v5 }

// kernel: _lambda_.4
= control target key start
LH: loop header
LB: loop body
LE: loop exit
PB: predicated region body
PF: predicated region fallthrough
CT: control target
= control target key end

     0   :  { %s668_s24 = smov 0   ;;  %s722_s0 = inlined_call_operand.vmem [shape: f32[64,8], index: 0, kind: input, shape index: {}]   ;;  %s723_s1 = inlined_call_operand.vmem [shape: bf16[8,8], index: 1, kind: input, shape index: {}]   ;;  %s724_s2 = inlined_call_operand.vmem [shape: f32[1,8], index: 2, kind: input, shape index: {}]   ;;  %s725_s3 = inlined_call_operand.vmem [shape: bf16[8,8], index: 3, kind: input, shape index: {}]   ;;  %s726_s4 = inlined_call_operand.vmem [shape: f32[1,8], index: 4, kind: input, shape index: {}]   ;;  %s727_s5 = inlined_call_operand.vmem [shape: bf16[8,32], index: 5, kind: input, shape index: {}]   ;;  %s728_s6 = inlined_call_operand.vmem [shape: f32[1,32], index: 6, kind: input, shape index: {}]   ;;  %s729_s7 = inlined_call_operand.vmem [shape: f32[64,32], index: 7, kind: output, shape index: {}]  }
   0x1 LB: > { %s562_s25 = sadd.s32 4294967295, %s626_s24   ;;  %p566_p0 = scmp.ge.s32.totalorder %s626_s24, 1  ;;  %s626_s24 = sphi %s668_s24, %s17_s24  }
   0x2   : > { %p238_p1 = scmp.lt.s32.totalorder %s626_s24, 3 }
   0x4   : > { %p239_p2 = pnand %p566_p0, %p238_p1 }
   0x5   : > { %s567_s28 = sshll.u32 (!%p239_p2), %s562_s25, 2 }
   0x6   : > { %242 = sbr.rel (%p239_p2) target bundleno = 632 (0x278), region = 48  ;;  %p271_p3 = scmp.lt.s32.totalorder (!%p239_p2), %s567_s28, 7 }
   0xb   : > { %v289_v0 = vld [vmem:[%s723_s1] sm:$0xf]  ;;  %vm304_vm0 = vcmask 1043456   ;;  %s731_s28 = smov (!%p271_p3, %s567_s28), 7  ;;  %vm297_vm1 = vcmask 64512   ;;  %vm501_vm2 = vcmask 261120  }
   0xc   : > { %609 = vmatprep.subr.msk.bf16.mxu0 %vm304_vm0, %v289_v0  ;;  %v306_v1 = vsel %vm304_vm0, %v289_v0, 0  ;;  %s568_s29 = sshll.u32 %s731_s28, 3  ;;  %v363_v8 = vld [vmem:[%s725_s3] sm:$0xf] }
   0xd   : > { %592 = vmatpush3.bf16.msra.mxu0 %v306_v1  ;;  %s274_s9 = scalar_lea.vmem %s722_s0, %s568_s29  ;;  %610 = vmatprep.subr.msk.bf16.mxu1 %vm304_vm0, %v363_v8  ;;  %v378_v9 = vsel %vm304_vm0, %v363_v8, 0  ;;  %v571_v12 = vld [vmem:[%s724_s2] ss:$0 sm:$0xff]  ;;  %s280_s20 = scalar_lea.vmem %s729_s7, %s568_s29 }
   0xe   : > { %v283_v2 = vld [vmem:[%s274_s9] sm:$0xff]  ;;  %v284_v3 = vld [vmem:[%s274_s9 + $0x8] sm:$0xff]  ;;  %v285_v4 = vld [vmem:[%s274_s9 + $0x10] sm:$0xff]  ;;  %598 = vmatpush3.bf16.msra.mxu1 %v378_v9 }
   0xf   : > { %v287_v5 = vpack.c.bf16 %v284_v3, %v283_v2  ;;  %v286_v6 = vld [vmem:[%s274_s9 + $0x18] sm:$0xff]  ;;  %v435_v25 = vld [vmem:[%s727_s5] sm:$0xf] }
  0x10   : > { %v288_v7 = vpack.c.bf16 %v286_v6, %v285_v4  ;;  %611 = vmatprep.subr.msk.bf16.mxu0 %vm304_vm0, %v435_v25  ;;  %v450_v26 = vsel %vm304_vm0, %v435_v25, 0  ;;  %v574_v29 = vld [vmem:[%s726_s4] ss:$0 sm:$0xff] }
  0x11   : > { %593 = vmatprep.mubr.msk.bf16.mxu0 %vm297_vm1, %v287_v5  ;;  %v577_v43 = vld [vmem:[%s728_s6] ss:$0 sm:$0xff] }
  0x12   : > { %594 = vmatmul.mubr.msk.bf16.vlgmr.msra.gmra.mxu0 %vm297_vm1, %v288_v7 }
  0x13   : > { %604 = vmatpush3.bf16.msra.mxu0 %v450_v26 }
  0xd2   : > { %v595_v10 = vpop.f32.mrf.mxu0 }
  0xd3   : > { %v351_v16 = vadd.f32 %v595_v10, %v571_v12 }
  0xd4   : > { %v342_v11 = vpop.f32.mrf.mxu0 }
  0xd5   : > { %v343_v14 = vadd.f32 %v571_v12, %v342_v11  ;;  %v359_v22 = vmax.f32 %v351_v16, 0.0 }
  0xd6   : > { %v596_v13 = vpop.f32.mrf.mxu0 }
  0xd7   : > { %v354_v15 = vadd.f32 %v596_v13, %v571_v12  ;;  %v357_v20 = vmax.f32 %v343_v14, 0.0 }
  0xd8   : > { %v345_v17 = vpop.f32.mrf.mxu0 }
  0xd9   : > { %v346_v18 = vadd.f32 %v571_v12, %v345_v17  ;;  %v360_v19 = vmax.f32 %v354_v15, 0.0 }
  0xdb   : > { %v358_v21 = vmax.f32 %v346_v18, 0.0  ;;  %v362_v24 = vpack.c.bf16 %v360_v19, %v359_v22 }
  0xdd   : > { %v361_v23 = vpack.c.bf16 %v358_v21, %v357_v20 }
  0xdf   : > { %599 = vmatprep.mubr.msk.bf16.mxu1 %vm297_vm1, %v361_v23 }
  0xe0   : > { %600 = vmatmul.mubr.msk.bf16.vlgmr.msra.gmra.mxu1 %vm297_vm1, %v362_v24 }
 0x1a0   : > { %v601_v27 = vpop.f32.mrf.mxu1 }
 0x1a1   : > { %v423_v33 = vadd.f32 %v601_v27, %v574_v29 }
 0x1a2   : > { %v414_v28 = vpop.f32.mrf.mxu1 }
 0x1a3   : > { %v415_v31 = vadd.f32 %v574_v29, %v414_v28  ;;  %v431_v39 = vmax.f32 %v423_v33, 0.0 }
 0x1a4   : > { %v602_v30 = vpop.f32.mrf.mxu1 }
 0x1a5   : > { %v426_v32 = vadd.f32 %v602_v30, %v574_v29  ;;  %v429_v37 = vmax.f32 %v415_v31, 0.0 }
 0x1a6   : > { %v417_v34 = vpop.f32.mrf.mxu1 }
 0x1a7   : > { %v418_v35 = vadd.f32 %v574_v29, %v417_v34  ;;  %v432_v36 = vmax.f32 %v426_v32, 0.0 }
 0x1a9   : > { %v430_v38 = vmax.f32 %v418_v35, 0.0  ;;  %v434_v41 = vpack.c.bf16 %v432_v36, %v431_v39 }
 0x1ab   : > { %v433_v40 = vpack.c.bf16 %v430_v38, %v429_v37 }
 0x1ad   : > { %605 = vmatprep.mubr.msk.bf16.mxu0 %vm297_vm1, %v433_v40 }
 0x1ae   : > { %606 = vmatmul.mubr.msk.bf16.vlgmr.msra.gmra.mxu0 %vm297_vm1, %v434_v41 }
 0x26e   : > { %v607_v42 = vpop.f32.mrf.mxu0 }
 0x26f   : > { %v495_v49 = vadd.f32 %v607_v42, %v577_v43 }
 0x270   : > { %v486_v44 = vpop.f32.mrf.mxu0 }
 0x271   : > { %v487_v45 = vadd.f32 %v577_v43, %v486_v44  ;;  %504 = vst.msk [vmem:[%s280_s20 + $0x10] sm:$0xff] %vm501_vm2, %v495_v49 }
 0x272   : > { %v608_v46 = vpop.f32.mrf.mxu0 }
 0x273   : > { %502 = vst.msk [vmem:[%s280_s20] sm:$0xff] %vm501_vm2, %v487_v45  ;;  %v498_v50 = vadd.f32 %v608_v46, %v577_v43 }
 0x274   : > { %v489_v47 = vpop.f32.mrf.mxu0 }
 0x275   : > { %v490_v48 = vadd.f32 %v577_v43, %v489_v47  ;;  %505 = vst.msk [vmem:[%s280_s20 + $0x18] sm:$0xff] %vm501_vm2, %v498_v50 }
 0x277   : > { %503 = vst.msk [vmem:[%s280_s20 + $0x8] sm:$0xff] %vm501_vm2, %v490_v48 }
 0x278 PF: > { %s17_s24 = sadd.s32 1, %s626_s24  }
 0x279   : > { %p14_p4 = scmp.ge.s32.totalorder %s17_s24, 4  }
 0x27b   :  { %16 = sbr.rel (!%p14_p4) target bundleno = 1 (0x1), region = 78 }

// kernel: _lambda_.6
= control target key start
LH: loop header
LB: loop body
LE: loop exit
PB: predicated region body
PF: predicated region fallthrough
CT: control target
= control target key end

     0   :  { %s1404_s27 = smov 0   ;;  %s1654_s0 = inlined_call_operand.vmem [shape: f32[6,12,32], index: 0, kind: input, shape index: {}]   ;;  %s1655_s1 = inlined_call_operand.vmem [shape: f32[12,12], index: 1, kind: input, shape index: {}]   ;;  %s1656_s2 = inlined_call_operand.vmem [shape: bf16[32,32], index: 2, kind: input, shape index: {}]   ;;  %s1657_s3 = inlined_call_operand.vmem [shape: f32[1,32], index: 3, kind: input, shape index: {}]   ;;  %s1658_s4 = inlined_call_operand.vmem [shape: f32[1,32], index: 4, kind: input, shape index: {}]   ;;  %s1659_s5 = inlined_call_operand.vmem [shape: f32[1,32], index: 5, kind: input, shape index: {}]   ;;  %s1660_s6 = inlined_call_operand.vmem [shape: bf16[32,16], index: 6, kind: input, shape index: {}]   ;;  %s1661_s7 = inlined_call_operand.vmem [shape: f32[1,16], index: 7, kind: input, shape index: {}]   ;;  %s1662_s8 = inlined_call_operand.vmem [shape: f32[6,12,16], index: 8, kind: output, shape index: {}]  }
   0x1 LB: > { %s1154_s28 = sadd.s32 4294967295, %s1355_s27   ;;  %p1158_p0 = scmp.ge.s32.totalorder %s1355_s27, 1  ;;  %s1355_s27 = sphi %s1404_s27, %s18_s27  }
   0x2   : > { %p264_p1 = scmp.lt.s32.totalorder %s1355_s27, 3 }
   0x4   : > { %p265_p2 = pnand %p1158_p0, %p264_p1 }
   0x5   : > { %s300_s11 = smul.u32 (!%p265_p2), 3, %s1154_s28 }
   0x6   : > { %268 = sbr.rel (%p265_p2) target bundleno = 2625 (0xa41), region = 52 }
   0x7   : > { %p301_p3 = scmp.lt.s32.totalorder (!%p265_p2), %s300_s11, 5 }
   0xb   : > { %v1415_v0 = vld [vmem:[%s1656_s2 + $0x8] sm:$0xff]   ;;  %v1357_v1 = vmov 0.0   ;;  %v1423_v2 = vld [vmem:[%s1656_s2] sm:$0xff]   ;;  %vm1358_vm0 = vmmov 0   ;;  %s1664_s11 = smov (!%p301_p3, %s300_s11), 5  ;;  %vm361_vm1 = vcmask 261120   ;;  %v329_v15 = vlaneseq }
   0xc   : > { %1227 = vmatprep.subr.bf16.mxu0 %v1357_v1  ;;  %1235 = vmatprep.subr.bf16.mxu1 %v1357_v1  ;;  %s1195_s12 = sshll.u32 %s1664_s11, 4  ;;  %v1450_v7 = vld [vmem:[%s1657_s3] ss:$0 sm:$0xff]  ;;  %vm461_vm5 = vcmask 97280   ;;  %vm465_vm7 = vcmask 93184   ;;  %vm510_vm8 = vcmask 1045504  }
   0xd   : > { %1228 = vmatpush3.bf16.msra.mxu0 %v1415_v0  ;;  %1231 = vmatprep.mubr.msk.bf16.mxu0 %vm1358_vm0, %v1357_v1  ;;  %s1440_s15 = scalar_lea.vmem %s1654_s0, %s1195_s12  ;;  %v330_v16 = vshrl.u32 %v329_v15, 7  ;;  %v333_v17 = vand.u32 127, %v329_v15  ;;  %v1480_v45 = vld [vmem:[%s1658_s4] ss:$0 sm:$0xff]  ;;  %v1502_v61 = vld [vmem:[%s1655_s1 + $0x8] sm:$0xf]  ;;  %s1564_s16 = scalar_lea.vmem %s1662_s8, %s1195_s12 }
   0xe   : > { %1229 = vmatprep.subr.bf16.mxu0 %v1357_v1  ;;  %1237 = vmatprep.mubr.msk.bf16.mxu1 %vm1358_vm0, %v1357_v1  ;;  %v340_v3 = vld [vmem:[%s1440_s15] sm:$0xff]  ;;  %v341_v4 = vld [vmem:[%s1440_s15 + $0x8] sm:$0xf]  ;;  %vm624_vm10 = vcmask 130048   ;;  %vm626_vm12 = vcmask 125952  }
   0xf   : > { %v342_v5 = vpack.c.bf16 %v341_v4, %v340_v3  ;;  %vm334_vm2 = vcmp.eq.s32.totalorder %v330_v16, %v333_v17  ;;  %v331_v18 = vadd.s32 8, %v330_v16  ;;  %v495_v46 = vmul.f32 %v1480_v45, %v340_v3  ;;  %v1487_v48 = vld [vmem:[%s1659_s5] ss:$0 sm:$0xff] }
  0x10   : > { %v1460_v19 = vsel %vm334_vm2, 1.0, %v1357_v1  ;;  %v496_v47 = vmul.f32 %v1480_v45, %v341_v4  ;;  %v1497_v60 = vld [vmem:[%s1655_s1] sm:$0xff] }
  0x11   : > { %1230 = vmatpush3.bf16.msra.mxu0 %v1423_v2  ;;  %vm335_vm3 = vcmp.eq.s32.totalorder %v331_v18, %v333_v17  ;;  %v1463_v20 = vmul.f32 1e+08, %v1460_v19  ;;  %v503_v49 = vadd.f32 %v1487_v48, %v495_v46 }
  0x12   : > { %1241 = vmatprep.subr.bf16.mxu0 %v1357_v1  ;;  %v1466_v21 = vsel %vm335_vm3, 1.0, %v1357_v1  ;;  %v504_v50 = vadd.f32 %v1487_v48, %v496_v47 }
  0x13   : > { %v1470_v24 = vmul.f32 1e+08, %v1466_v21 }
  0x14   : > { %1232 = vmatmul.mubr.msk.bf16.vlgmr.msra.gmra.mxu0 %vm361_vm1, %v342_v5  ;;  %v506_v51 = vpack.c.bf16 %v504_v50, %v503_v49  ;;  %v1512_v5 = vld [vmem:[%s1440_s15 + $0x10] sm:$0xff] }
  0x15   : > { %1243 = vmatprep.mubr.msk.bf16.mxu0 %vm1358_vm0, %v1357_v1 }
  0x16   : > { %v512_v52 = vsel %vm510_vm8, %v506_v51, 0 }
  0x17   : > { %1242 = vmatpush3.bf16.msra.mxu0 %v512_v52 }
  0x18   : > { %1255 = vmatprep.subr.bf16.mxu0 %v1357_v1 }
  0xd4   : > { %v399_v6 = vpop.f32.mrf.mxu0 }
  0xd5   : > { %v400_v10 = vadd.f32 %v1450_v7, %v399_v6  ;;  %v1515_v6 = vld [vmem:[%s1440_s15 + $0x18] sm:$0xf] }
  0xd6   : > { %v1233_v8 = vpop.f32.mrf.mxu0 }
  0xd7   : > { %v631_v8 = vpack.c.bf16 %v1515_v6, %v1512_v5 }
  0xd8   : > { %v402_v9 = vpop.f32.mrf.mxu0 }
  0xd9   : > { %v403_v11 = vadd.f32 %v1450_v7, %v402_v9  ;;  %v1528_v9 = vld [vmem:[%s1660_s6 + $0x8] sm:$0xff]  }
  0xda   : > { %v1234_v12 = vpop.f32.mrf.mxu0 }
  0xdb   : > { %v406_v13 = vpack.c.bf16 %v403_v11, %v400_v10  ;;  %v1535_v10 = vld [vmem:[%s1660_s6] sm:$0xff]  }
  0xdd   : > { %v408_v14 = vsel %vm361_vm1, %v406_v13, 0 }
  0xde   : > { %1236 = vmatpush3.bf16.xpose.msra.mxu1 %v408_v14 }
  0xdf   : > { %1247 = vmatprep.subr.bf16.mxu1 %v1357_v1 }
  0xe5   : > { %1238 = vmatmul.mubr.msk.bf16.vlgmr.msra.gmra.mxu1 %vm361_vm1, %v406_v13 }
  0xe6   : > { %1251 = vmatprep.mubr.msk.bf16.mxu1 %vm1358_vm0, %v1357_v1  ;;  %1248 = vmatpush3.bf16.msra.mxu1 %v1528_v9 }
  0xe7   : > { %1249 = vmatprep.subr.bf16.mxu1 %v1357_v1 }
  0xea   : > { %1250 = vmatpush3.bf16.msra.mxu1 %v1535_v10 }
  0xeb   : > { %1263 = vmatprep.subr.bf16.mxu1 %v1357_v1 }
 0x1a5   : > { %v444_v22 = vpop.f32.mrf.mxu1 }
 0x1a6   : > { %v453_v23 = vsub.f32 %v444_v22, %v1463_v20 }
 0x1a7   : > { %v1239_v25 = vpop.f32.mrf.mxu1 }
 0x1a8   : > { %v457_v26 = vmul.f32 0.01, %v453_v23  ;;  %vm455_vm4 = vcmp.gt.f32.partialorder %v453_v23, 0.0 }
 0x1a9   : > { %v447_v27 = vpop.f32.mrf.mxu1 }
 0x1aa   : > { %v454_v28 = vsub.f32 %v447_v27, %v1470_v24  ;;  %v459_v29 = vsel %vm455_vm4, %v453_v23, %v457_v26 }
 0x1ab   : > { %v1240_v30 = vpop.f32.mrf.mxu1  ;;  %v462_v31 = vsel %vm461_vm5, %v459_v29, -inf }
 0x1ac   : > { %v458_v32 = vmul.f32 0.01, %v454_v28  ;;  %463 = vmax.xlane.f32.xlu0 %v462_v31  ;;  %vm456_vm6 = vcmp.gt.f32.partialorder %v454_v28, 0.0 }
 0x1ae   : > { %v460_v33 = vsel %vm456_vm6, %v454_v28, %v458_v32  ;;  %v1556_v28 = vld [vmem:[%s1661_s7] ss:$0 sm:$0xff] }
 0x1af   : > { %v466_v34 = vsel %vm465_vm7, %v460_v33, -inf }
 0x1b0   : > { %467 = vmax.xlane.f32.xlu0 %v466_v34 }
 0x235   : > { %v464_v35 = vpop.xlane.xlu0 %463 }
 0x236   : > { %v469_v36 = vsub.f32 %v459_v29, %v464_v35 }
 0x238   : > { %v471_v37 = vmul.f32 1.442695, %v469_v36 }
 0x239   : > { %v468_v38 = vpop.xlane.xlu0 %467 }
 0x23a   : > { %1325 = vpow2.f32 %v471_v37  ;;  %v470_v39 = vsub.f32 %v460_v33, %v468_v38 }
 0x23c   : > { %v473_v40 = vmul.f32 1.442695, %v470_v39 }
 0x23e   : > { %1327 = vpow2.f32 %v473_v40 }
 0x247   : > { %v1326_v41 = vpop.eup %1325 }
 0x248   : > { %v475_v42 = vsel %vm461_vm5, %v1326_v41, 0.0 }
 0x249   : > { %476 = vadd.xlane.f32.xlu1 %v475_v42 }
 0x24b   : > { %v1328_v43 = vpop.eup %1327 }
 0x24c   : > { %v478_v44 = vsel %vm465_vm7, %v1328_v43, 0.0 }
 0x24d   : > { %479 = vadd.xlane.f32.xlu1 %v478_v44 }
 0x2d2   : > { %v477_v53 = vpop.xlane.xlu1 %476 }
 0x2d3   : > { %1329 = vrcp.f32 %v477_v53 }
 0x2d6   : > { %v480_v54 = vpop.xlane.xlu1 %479 }
 0x2d7   : > { %1331 = vrcp.f32 %v480_v54 }
 0x2e0   : > { %v1330_v55 = vpop.eup %1329 }
 0x2e1   : > { %v483_v56 = vmul.f32 %v1330_v55, %v1326_v41 }
 0x2e3   : > { %v485_v59 = vadd.f32 %v1460_v19, %v483_v56 }
 0x2e4   : > { %v1332_v57 = vpop.eup %1331 }
 0x2e5   : > { %v484_v58 = vmul.f32 %v1332_v57, %v1328_v43  ;;  %v487_v63 = vmul.f32 %v485_v59, %v1497_v60 }
 0x2e7   : > { %v486_v62 = vadd.f32 %v1466_v21, %v484_v58 }
 0x2e9   : > { %v488_v3 = vmul.f32 %v486_v62, %v1502_v61 }
 0x2eb   : > { %v505_v4 = vpack.c.bf16 %v488_v3, %v487_v63 }
 0x2ed   : > { %1244 = vmatmul.mubr.msk.bf16.vlgmr.msra.gmra.mxu0 %vm461_vm5, %v505_v4  ;;  %v755_v4 = vmul.f32 %v1512_v5, %v1480_v45 }
 0x2ee   : > { %1256 = vmatpush3.bf16.msra.mxu0 %v1415_v0  ;;  %1259 = vmatprep.mubr.msk.bf16.mxu0 %vm1358_vm0, %v1357_v1 }
 0x2ef   : > { %1257 = vmatprep.subr.bf16.mxu0 %v1357_v1 }
 0x2f2   : > { %1258 = vmatpush3.bf16.msra.mxu0 %v1423_v2 }
 0x2f3   : > { %1269 = vmatprep.subr.bf16.mxu0 %v1357_v1 }
 0x2f5   : > { %1260 = vmatmul.mubr.msk.bf16.vlgmr.msra.gmra.mxu0 %vm361_vm1, %v631_v8  ;;  %v756_v8 = vmul.f32 %v1515_v6, %v1480_v45 }
 0x2f6   : > { %1271 = vmatprep.mubr.msk.bf16.mxu0 %vm1358_vm0, %v1357_v1 }
 0x3ad   : > { %v548_v11 = vpop.f32.mrf.mxu0 }
 0x3af   : > { %v1245_v12 = vpop.f32.mrf.mxu0 }
 0x3b0   : > { %v758_v12 = vadd.f32 %v1487_v48, %v756_v8 }
 0x3b1   : > { %v551_v13 = vpop.f32.mrf.mxu0 }
 0x3b2   : > { %v555_v14 = vpack.c.bf16 %v551_v13, %v548_v11  ;;  %v757_v11 = vadd.f32 %v1487_v48, %v755_v4 }
 0x3b3   : > { %v1246_v15 = vpop.f32.mrf.mxu0 }
 0x3b4   : > { %1252 = vmatmul.mubr.msk.bf16.vlgmr.msra.gmra.mxu1 %vm361_vm1, %v555_v14  ;;  %v760_v13 = vpack.c.bf16 %v758_v12, %v757_v11 }
 0x3b5   : > { %v669_v16 = vpop.f32.mrf.mxu0  ;;  %1265 = vmatprep.mubr.msk.bf16.mxu1 %vm1358_vm0, %v1357_v1 }
 0x3b6   : > { %v670_v22 = vadd.f32 %v1450_v7, %v669_v16  ;;  %v765_v14 = vsel %vm510_vm8, %v760_v13, 0 }
 0x3b7   : > { %v1261_v17 = vpop.f32.mrf.mxu0  ;;  %1270 = vmatpush3.bf16.msra.mxu0 %v765_v14 }
 0x3b8   : > { %1283 = vmatprep.subr.bf16.mxu0 %v1357_v1 }
 0x3b9   : > { %v672_v18 = vpop.f32.mrf.mxu0 }
 0x3ba   : > { %v673_v23 = vadd.f32 %v1450_v7, %v672_v18 }
 0x3bb   : > { %v1262_v25 = vpop.f32.mrf.mxu0 }
 0x3bc   : > { %v676_v26 = vpack.c.bf16 %v673_v23, %v670_v22 }
 0x3be   : > { %v678_v27 = vsel %vm361_vm1, %v676_v26, 0 }
 0x3bf   : > { %1264 = vmatpush3.bf16.xpose.msra.mxu1 %v678_v27 }
 0x3c0   : > { %1275 = vmatprep.subr.bf16.mxu1 %v1357_v1 }
 0x3c6   : > { %1266 = vmatmul.mubr.msk.bf16.vlgmr.msra.gmra.mxu1 %vm361_vm1, %v676_v26 }
 0x3c7   : > { %1276 = vmatpush3.bf16.msra.mxu1 %v1528_v9  ;;  %1279 = vmatprep.mubr.msk.bf16.mxu1 %vm1358_vm0, %v1357_v1 }
 0x3c8   : > { %1277 = vmatprep.subr.bf16.mxu1 %v1357_v1 }
 0x3cb   : > { %1278 = vmatpush3.bf16.msra.mxu1 %v1535_v10 }
 0x3cc   : > { %1291 = vmatprep.subr.bf16.mxu1 %v1357_v1 }
 0x474   : > { %v611_v29 = vpop.f32.mrf.mxu1 }
 0x475   : > { %v612_v30 = vadd.f32 %v1556_v28, %v611_v29  ;;  %v1594_v29 = vld [vmem:[%s1440_s15 + $0x20] sm:$0xff] }
 0x476   : > { %v1253_v31 = vpop.f32.mrf.mxu1 }
 0x477   : > { %vm618_vm9 = vcmp.gt.f32.partialorder %v612_v30, 0.0  ;;  %v620_v32 = vmul.f32 0.01, %v612_v30 }
 0x478   : > { %v614_v33 = vpop.f32.mrf.mxu1 }
 0x479   : > { %v622_v34 = vsel %vm618_vm9, %v612_v30, %v620_v32  ;;  %v615_v35 = vadd.f32 %v1556_v28, %v614_v33  ;;  %v1597_v30 = vld [vmem:[%s1440_s15 + $0x28] sm:$0xf] }
 0x47a   : > { %625 = vst.msk [vmem:[%s1564_s16] sm:$0xff] %vm624_vm10, %v622_v34  ;;  %v1254_v36 = vpop.f32.mrf.mxu1  ;;  %v865_v31 = vpack.c.bf16 %v1597_v30, %v1594_v29 }
 0x47b   : > { %vm619_vm11 = vcmp.gt.f32.partialorder %v615_v35, 0.0  ;;  %v621_v37 = vmul.f32 0.01, %v615_v35 }
 0x47d   : > { %v623_v38 = vsel %vm619_vm11, %v615_v35, %v621_v37 }
 0x47e   : > { %627 = vst.msk [vmem:[%s1564_s16 + $0x8] sm:$0xf] %vm626_vm12, %v623_v38 }
 0x486   : > { %v714_v39 = vpop.f32.mrf.mxu1 }
 0x487   : > { %v721_v40 = vsub.f32 %v714_v39, %v1463_v20 }
 0x488   : > { %v1267_v41 = vpop.f32.mrf.mxu1 }
 0x489   : > { %v725_v42 = vmul.f32 0.01, %v721_v40  ;;  %vm723_vm13 = vcmp.gt.f32.partialorder %v721_v40, 0.0 }
 0x48a   : > { %v717_v43 = vpop.f32.mrf.mxu1 }
 0x48b   : > { %v722_v44 = vsub.f32 %v717_v43, %v1470_v24  ;;  %v727_v46 = vsel %vm723_vm13, %v721_v40, %v725_v42 }
 0x48c   : > { %v1268_v47 = vpop.f32.mrf.mxu1  ;;  %v729_v49 = vsel %vm461_vm5, %v727_v46, -inf }
 0x48d   : > { %v726_v50 = vmul.f32 0.01, %v722_v44  ;;  %730 = vmax.xlane.f32.xlu0 %v729_v49  ;;  %vm724_vm14 = vcmp.gt.f32.partialorder %v722_v44, 0.0 }
 0x48f   : > { %v728_v51 = vsel %vm724_vm14, %v722_v44, %v726_v50 }
 0x490   : > { %v732_v52 = vsel %vm465_vm7, %v728_v51, -inf }
 0x491   : > { %733 = vmax.xlane.f32.xlu1 %v732_v52 }
 0x516   : > { %v731_v53 = vpop.xlane.xlu0 %730 }
 0x517   : > { %v735_v54 = vsub.f32 %v727_v46, %v731_v53 }
 0x519   : > { %v737_v55 = vmul.f32 1.442695, %v735_v54 }
 0x51a   : > { %v734_v56 = vpop.xlane.xlu1 %733 }
 0x51b   : > { %1333 = vpow2.f32 %v737_v55  ;;  %v736_v57 = vsub.f32 %v728_v51, %v734_v56 }
 0x51d   : > { %v739_v58 = vmul.f32 1.442695, %v736_v57 }
 0x51f   : > { %1335 = vpow2.f32 %v739_v58 }
 0x528   : > { %v1334_v59 = vpop.eup %1333 }
 0x529   : > { %v741_v62 = vsel %vm461_vm5, %v1334_v59, 0.0 }
 0x52a   : > { %742 = vadd.xlane.f32.xlu0 %v741_v62 }
 0x52c   : > { %v1336_v63 = vpop.eup %1335 }
 0x52d   : > { %v744_v3 = vsel %vm465_vm7, %v1336_v63, 0.0 }
 0x52e   : > { %745 = vadd.xlane.f32.xlu1 %v744_v3 }
 0x5b3   : > { %v743_v15 = vpop.xlane.xlu0 %742 }
 0x5b4   : > { %1337 = vrcp.f32 %v743_v15 }
 0x5b7   : > { %v746_v16 = vpop.xlane.xlu1 %745 }
 0x5b8   : > { %1339 = vrcp.f32 %v746_v16 }
 0x5c1   : > { %v1338_v5 = vpop.eup %1337 }
 0x5c2   : > { %v749_v17 = vmul.f32 %v1338_v5, %v1334_v59  ;;  %v989_v5 = vmul.f32 %v1594_v29, %v1480_v45 }
 0x5c4   : > { %v751_v22 = vadd.f32 %v1460_v19, %v749_v17  ;;  %v990_v17 = vmul.f32 %v1597_v30, %v1480_v45 }
 0x5c5   : > { %v1340_v18 = vpop.eup %1339 }
 0x5c6   : > { %v750_v6 = vmul.f32 %v1340_v18, %v1336_v63  ;;  %v753_v25 = vmul.f32 %v751_v22, %v1497_v60  ;;  %v991_v18 = vadd.f32 %v1487_v48, %v989_v5 }
 0x5c8   : > { %v752_v23 = vadd.f32 %v1466_v21, %v750_v6  ;;  %v992_v6 = vadd.f32 %v1487_v48, %v990_v17 }
 0x5ca   : > { %v754_v26 = vmul.f32 %v752_v23, %v1502_v61  ;;  %v994_v22 = vpack.c.bf16 %v992_v6, %v991_v18 }
 0x5cc   : > { %v759_v27 = vpack.c.bf16 %v754_v26, %v753_v25  ;;  %v999_v23 = vsel %vm510_vm8, %v994_v22, 0 }
 0x5ce   : > { %1272 = vmatmul.mubr.msk.bf16.vlgmr.msra.gmra.mxu0 %vm461_vm5, %v759_v27 }
 0x5cf   : > { %1284 = vmatpush3.bf16.msra.mxu0 %v1415_v0  ;;  %1287 = vmatprep.mubr.msk.bf16.mxu0 %vm1358_vm0, %v1357_v1 }
 0x5d0   : > { %1285 = vmatprep.subr.bf16.mxu0 %v1357_v1 }
 0x5d3   : > { %1286 = vmatpush3.bf16.msra.mxu0 %v1423_v2 }
 0x5d4   : > { %1297 = vmatprep.subr.bf16.mxu0 %v1357_v1 }
 0x5d6   : > { %1288 = vmatmul.mubr.msk.bf16.vlgmr.msra.gmra.mxu0 %vm361_vm1, %v865_v31 }
 0x5d7   : > { %1299 = vmatprep.mubr.msk.bf16.mxu0 %vm1358_vm0, %v1357_v1  ;;  %1298 = vmatpush3.bf16.msra.mxu0 %v999_v23 }
 0x68e   : > { %v801_v0 = vpop.f32.mrf.mxu0 }
 0x690   : > { %v1273_v32 = vpop.f32.mrf.mxu0 }
 0x692   : > { %v804_v33 = vpop.f32.mrf.mxu0 }
 0x693   : > { %v808_v34 = vpack.c.bf16 %v804_v33, %v801_v0 }
 0x694   : > { %v1274_v35 = vpop.f32.mrf.mxu0 }
 0x695   : > { %1280 = vmatmul.mubr.msk.bf16.vlgmr.msra.gmra.mxu1 %vm361_vm1, %v808_v34 }
 0x696   : > { %v903_v36 = vpop.f32.mrf.mxu0  ;;  %1293 = vmatprep.mubr.msk.bf16.mxu1 %vm1358_vm0, %v1357_v1 }
 0x697   : > { %v904_v38 = vadd.f32 %v1450_v7, %v903_v36 }
 0x698   : > { %v1289_v37 = vpop.f32.mrf.mxu0 }
 0x69a   : > { %v906_v2 = vpop.f32.mrf.mxu0 }
 0x69b   : > { %v907_v39 = vadd.f32 %v1450_v7, %v906_v2 }
 0x69c   : > { %v1290_v40 = vpop.f32.mrf.mxu0 }
 0x69d   : > { %v910_v41 = vpack.c.bf16 %v907_v39, %v904_v38 }
 0x69f   : > { %v912_v42 = vsel %vm361_vm1, %v910_v41, 0 }
 0x6a0   : > { %1292 = vmatpush3.bf16.xpose.msra.mxu1 %v912_v42 }
 0x6a1   : > { %1303 = vmatprep.subr.bf16.mxu1 %v1357_v1 }
 0x6a7   : > { %1294 = vmatmul.mubr.msk.bf16.vlgmr.msra.gmra.mxu1 %vm361_vm1, %v910_v41 }
 0x6a8   : > { %1304 = vmatpush3.bf16.msra.mxu1 %v1528_v9  ;;  %1307 = vmatprep.mubr.msk.bf16.mxu1 %vm1358_vm0, %v1357_v1 }
 0x6a9   : > { %1305 = vmatprep.subr.bf16.mxu1 %v1357_v1 }
 0x6ac   : > { %1306 = vmatpush3.bf16.msra.mxu1 %v1535_v10 }
 0x755   : > { %v846_v7 = vpop.f32.mrf.mxu1 }
 0x756   : > { %v847_v43 = vadd.f32 %v1556_v28, %v846_v7 }
 0x757   : > { %v1281_v44 = vpop.f32.mrf.mxu1 }
 0x758   : > { %vm853_vm15 = vcmp.gt.f32.partialorder %v847_v43, 0.0  ;;  %v855_v46 = vmul.f32 0.01, %v847_v43 }
 0x759   : > { %v849_v47 = vpop.f32.mrf.mxu1 }
 0x75a   : > { %v857_v49 = vsel %vm853_vm15, %v847_v43, %v855_v46  ;;  %v850_v50 = vadd.f32 %v1556_v28, %v849_v47 }
 0x75b   : > { %1183 = vst.msk [vmem:[%s1564_s16 + $0x10] sm:$0xff] %vm624_vm10, %v857_v49  ;;  %v1282_v9 = vpop.f32.mrf.mxu1 }
 0x75c   : > { %vm854_vm2 = vcmp.gt.f32.partialorder %v850_v50, 0.0  ;;  %v856_v51 = vmul.f32 0.01, %v850_v50 }
 0x75e   : > { %v858_v52 = vsel %vm854_vm2, %v850_v50, %v856_v51 }
 0x75f   : > { %1184 = vst.msk [vmem:[%s1564_s16 + $0x18] sm:$0xf] %vm626_vm12, %v858_v52 }
 0x767   : > { %v948_v1 = vpop.f32.mrf.mxu1 }
 0x768   : > { %v955_v10 = vsub.f32 %v948_v1, %v1463_v20 }
 0x769   : > { %v1295_v53 = vpop.f32.mrf.mxu1 }
 0x76a   : > { %v959_v54 = vmul.f32 0.01, %v955_v10  ;;  %vm957_vm0 = vcmp.gt.f32.partialorder %v955_v10, 0.0 }
 0x76b   : > { %v951_v55 = vpop.f32.mrf.mxu1 }
 0x76c   : > { %v956_v56 = vsub.f32 %v951_v55, %v1470_v24  ;;  %v961_v57 = vsel %vm957_vm0, %v955_v10, %v959_v54 }
 0x76d   : > { %v1296_v58 = vpop.f32.mrf.mxu1  ;;  %v963_v59 = vsel %vm461_vm5, %v961_v57, -inf }
 0x76e   : > { %v960_v62 = vmul.f32 0.01, %v956_v56  ;;  %964 = vmax.xlane.f32.xlu0 %v963_v59  ;;  %vm958_vm3 = vcmp.gt.f32.partialorder %v956_v56, 0.0 }
 0x770   : > { %v962_v63 = vsel %vm958_vm3, %v956_v56, %v960_v62 }
 0x771   : > { %v966_v3 = vsel %vm465_vm7, %v962_v63, -inf }
 0x772   : > { %967 = vmax.xlane.f32.xlu1 %v966_v3 }
 0x7f7   : > { %v965_v4 = vpop.xlane.xlu0 %964 }
 0x7f8   : > { %v969_v8 = vsub.f32 %v961_v57, %v965_v4 }
 0x7fa   : > { %v971_v20 = vmul.f32 1.442695, %v969_v8 }
 0x7fb   : > { %v968_v11 = vpop.xlane.xlu1 %967 }
 0x7fc   : > { %1341 = vpow2.f32 %v971_v20  ;;  %v970_v12 = vsub.f32 %v962_v63, %v968_v11 }
 0x7fe   : > { %v973_v13 = vmul.f32 1.442695, %v970_v12 }
 0x800   : > { %1343 = vpow2.f32 %v973_v13 }
 0x809   : > { %v1342_v24 = vpop.eup %1341 }
 0x80a   : > { %v975_v14 = vsel %vm461_vm5, %v1342_v24, 0.0 }
 0x80b   : > { %976 = vadd.xlane.f32.xlu0 %v975_v14 }
 0x80d   : > { %v1344_v15 = vpop.eup %1343 }
 0x80e   : > { %v978_v16 = vsel %vm465_vm7, %v1344_v15, 0.0 }
 0x80f   : > { %979 = vadd.xlane.f32.xlu1 %v978_v16 }
 0x894   : > { %v977_v25 = vpop.xlane.xlu0 %976 }
 0x895   : > { %1345 = vrcp.f32 %v977_v25 }
 0x898   : > { %v980_v26 = vpop.xlane.xlu1 %979 }
 0x899   : > { %1347 = vrcp.f32 %v980_v26 }
 0x8a2   : > { %v1346_v27 = vpop.eup %1345 }
 0x8a3   : > { %v983_v31 = vmul.f32 %v1346_v27, %v1342_v24 }
 0x8a5   : > { %v985_v29 = vadd.f32 %v1460_v19, %v983_v31 }
 0x8a6   : > { %v1348_v0 = vpop.eup %1347 }
 0x8a7   : > { %v984_v32 = vmul.f32 %v1348_v0, %v1344_v15  ;;  %v987_v30 = vmul.f32 %v985_v29, %v1497_v60 }
 0x8a9   : > { %v986_v45 = vadd.f32 %v1466_v21, %v984_v32 }
 0x8ab   : > { %v988_v48 = vmul.f32 %v986_v45, %v1502_v61 }
 0x8ad   : > { %v993_v33 = vpack.c.bf16 %v988_v48, %v987_v30 }
 0x8af   : > { %1300 = vmatmul.mubr.msk.bf16.vlgmr.msra.gmra.mxu0 %vm461_vm5, %v993_v33 }
 0x96f   : > { %v1035_v34 = vpop.f32.mrf.mxu0 }
 0x971   : > { %v1301_v35 = vpop.f32.mrf.mxu0 }
 0x973   : > { %v1038_v36 = vpop.f32.mrf.mxu0 }
 0x974   : > { %v1042_v37 = vpack.c.bf16 %v1038_v36, %v1035_v34 }
 0x975   : > { %v1302_v2 = vpop.f32.mrf.mxu0 }
 0x976   : > { %1308 = vmatmul.mubr.msk.bf16.vlgmr.msra.gmra.mxu1 %vm361_vm1, %v1042_v37 }
 0xa36   : > { %v1080_v19 = vpop.f32.mrf.mxu1 }
 0xa37   : > { %v1081_v38 = vadd.f32 %v1556_v28, %v1080_v19 }
 0xa38   : > { %v1309_v21 = vpop.f32.mrf.mxu1 }
 0xa39   : > { %vm1087_vm4 = vcmp.gt.f32.partialorder %v1081_v38, 0.0  ;;  %v1089_v60 = vmul.f32 0.01, %v1081_v38 }
 0xa3a   : > { %v1083_v39 = vpop.f32.mrf.mxu1 }
 0xa3b   : > { %v1091_v61 = vsel %vm1087_vm4, %v1081_v38, %v1089_v60  ;;  %v1084_v40 = vadd.f32 %v1556_v28, %v1083_v39 }
 0xa3c   : > { %1191 = vst.msk [vmem:[%s1564_s16 + $0x20] sm:$0xff] %vm624_vm10, %v1091_v61  ;;  %v1310_v41 = vpop.f32.mrf.mxu1 }
 0xa3d   : > { %vm1088_vm5 = vcmp.gt.f32.partialorder %v1084_v40, 0.0  ;;  %v1090_v42 = vmul.f32 0.01, %v1084_v40 }
 0xa3f   : > { %v1092_v7 = vsel %vm1088_vm5, %v1084_v40, %v1090_v42 }
 0xa40   : > { %1192 = vst.msk [vmem:[%s1564_s16 + $0x28] sm:$0xf] %vm626_vm12, %v1092_v7 }
 0xa41 PF: > { %s18_s27 = sadd.s32 1, %s1355_s27  }
 0xa42   : > { %p15_p4 = scmp.ge.s32.totalorder %s18_s27, 4  }
 0xa44   :  { %17 = sbr.rel (!%p15_p4) target bundleno = 1 (0x1), region = 86 }

// kernel: _lambda_.5
= control target key start
LH: loop header
LB: loop body
LE: loop exit
PB: predicated region body
PF: predicated region fallthrough
CT: control target
= control target key end

     0   :  { %s2300_s27 = smov 0   ;;  %s2631_s0 = inlined_call_operand.vmem [shape: f32[14,8,32], index: 0, kind: input, shape index: {}]   ;;  %s2632_s1 = inlined_call_operand.vmem [shape: f32[8,8], index: 1, kind: input, shape index: {}]   ;;  %s2633_s2 = inlined_call_operand.vmem [shape: bf16[32,32], index: 2, kind: input, shape index: {}]   ;;  %s2634_s3 = inlined_call_operand.vmem [shape: f32[1,32], index: 3, kind: input, shape index: {}]   ;;  %s2635_s4 = inlined_call_operand.vmem [shape: f32[1,32], index: 4, kind: input, shape index: {}]   ;;  %s2636_s5 = inlined_call_operand.vmem [shape: f32[1,32], index: 5, kind: input, shape index: {}]   ;;  %s2637_s6 = inlined_call_operand.vmem [shape: bf16[32,16], index: 6, kind: input, shape index: {}]   ;;  %s2638_s7 = inlined_call_operand.vmem [shape: f32[1,16], index: 7, kind: input, shape index: {}]   ;;  %s2639_s8 = inlined_call_operand.vmem [shape: f32[14,8,16], index: 8, kind: output, shape index: {}]  }
   0x1 LB: > { %s1879_s28 = sadd.s32 4294967295, %s2251_s27   ;;  %p1883_p0 = scmp.ge.s32.totalorder %s2251_s27, 1  ;;  %s2251_s27 = sphi %s2300_s27, %s18_s27  }
   0x2   : > { %p263_p1 = scmp.lt.s32.totalorder %s2251_s27, 3 }
   0x4   : > { %p264_p2 = pnand %p1883_p0, %p263_p1 }
   0x5   : > { %s297_s11 = smul.u32 (!%p264_p2), 7, %s1879_s28 }
   0x6   : > { %267 = sbr.rel (%p264_p2) target bundleno = 5509 (0x1585), region = 52 }
   0x7   : > { %p298_p3 = scmp.lt.s32.totalorder (!%p264_p2), %s297_s11, 13 }
   0xb   : > { %v2311_v0 = vld [vmem:[%s2633_s2 + $0x8] sm:$0xff]   ;;  %v2253_v1 = vmov 0.0   ;;  %v2319_v2 = vld [vmem:[%s2633_s2] sm:$0xff]   ;;  %vm2254_vm0 = vmmov 0   ;;  %s2641_s11 = smov (!%p298_p3, %s297_s11), 13  ;;  %vm350_vm1 = vcmask 261120   ;;  %v323_v13 = vlaneseq }
   0xc   : > { %2007 = vmatprep.subr.bf16.mxu0 %v2253_v1  ;;  %2015 = vmatprep.subr.bf16.mxu1 %v2253_v1  ;;  %s1884_s12 = sshll.u32 %s2641_s11, 3  ;;  %v2345_v5 = vld [vmem:[%s2634_s3] ss:$0 sm:$0xff]  ;;  %vm443_vm4 = vcmask 64512   ;;  %vm476_vm5 = vcmask 1043456   ;;  %v2379_v37 = vld [vmem:[%s2637_s6 + $0x8] sm:$0xff]  }
   0xd   : > { %2008 = vmatpush3.bf16.msra.mxu0 %v2311_v0  ;;  %2011 = vmatprep.mubr.msk.bf16.mxu0 %vm2254_vm0, %v2253_v1  ;;  %s2336_s15 = scalar_lea.vmem %s2631_s0, %s1884_s12  ;;  %v324_v14 = vshrl.u32 %v323_v13, 7  ;;  %v326_v15 = vand.u32 127, %v323_v13  ;;  %v2365_v31 = vld [vmem:[%s2635_s4] ss:$0 sm:$0xff]  ;;  %s2432_s13 = scalar_lea.vmem %s2639_s8, %s1884_s12  ;;  %vm585_vm7 = vcmask 130048  }
   0xe   : > { %2009 = vmatprep.subr.bf16.mxu0 %v2253_v1  ;;  %2017 = vmatprep.mubr.msk.bf16.mxu1 %vm2254_vm0, %v2253_v1  ;;  %v330_v3 = vld [vmem:[%s2336_s15] sm:$0xff]  ;;  %v1899_v45 = vld [vmem:[%s2336_s15 + $0x8] sm:$0xff] }
   0xf   : > { %v331_v4 = vpack.c.bf16 %v330_v3, %v330_v3  ;;  %vm327_vm2 = vcmp.eq.s32.totalorder %v324_v14, %v326_v15  ;;  %v463_v32 = vmul.f32 %v2365_v31, %v330_v3  ;;  %v2371_v33 = vld [vmem:[%s2636_s5] ss:$0 sm:$0xff]  ;;  %v589_v46 = vpack.c.bf16 %v1899_v45, %v1899_v45 }
  0x10   : > { %v2354_v16 = vsel %vm327_vm2, 1.0, %v2253_v1  ;;  %v2386_v41 = vld [vmem:[%s2632_s1] sm:$0xff] }
  0x11   : > { %2010 = vmatpush3.bf16.msra.mxu0 %v2319_v2  ;;  %v2357_v17 = vmul.f32 1e+08, %v2354_v16  ;;  %v470_v34 = vadd.f32 %v2371_v33, %v463_v32  ;;  %v2404_v47 = vld [vmem:[%s2637_s6] sm:$0xff]  }
  0x12   : > { %2021 = vmatprep.subr.bf16.mxu0 %v2253_v1  ;;  %v2424_v60 = vld [vmem:[%s2638_s7] ss:$0 sm:$0xff] }
  0x13   : > { %v472_v35 = vpack.c.bf16 %v470_v34, %v470_v34 }
  0x14   : > { %2012 = vmatmul.mubr.msk.bf16.vlgmr.msra.gmra.mxu0 %vm350_vm1, %v331_v4 }
  0x15   : > { %2023 = vmatprep.mubr.msk.bf16.mxu0 %vm2254_vm0, %v2253_v1  ;;  %v478_v36 = vsel %vm476_vm5, %v472_v35, 0  ;;  %v1905_v35 = vld [vmem:[%s2336_s15 + $0x10] sm:$0xff] }
  0x16   : > { %2022 = vmatpush3.bf16.msra.mxu0 %v478_v36  ;;  %v795_v36 = vpack.c.bf16 %v1905_v35, %v1905_v35 }
  0x17   : > { %2035 = vmatprep.subr.bf16.mxu0 %v2253_v1 }
  0xd4   : > { %v388_v6 = vpop.f32.mrf.mxu0 }
  0xd5   : > { %v389_v7 = vadd.f32 %v2345_v5, %v388_v6 }
  0xd6   : > { %v2013_v8 = vpop.f32.mrf.mxu0 }
  0xd7   : > { %v394_v9 = vpack.c.bf16 %v389_v7, %v389_v7 }
  0xd8   : > { %v391_v10 = vpop.f32.mrf.mxu0 }
  0xd9   : > { %v396_v11 = vsel %vm350_vm1, %v394_v9, 0 }
  0xda   : > { %v2014_v12 = vpop.f32.mrf.mxu0  ;;  %2016 = vmatpush3.bf16.xpose.msra.mxu1 %v396_v11 }
  0xdb   : > { %2027 = vmatprep.subr.bf16.mxu1 %v2253_v1 }
  0xe1   : > { %2018 = vmatmul.mubr.msk.bf16.vlgmr.msra.gmra.mxu1 %vm350_vm1, %v394_v9 }
  0xe2   : > { %2031 = vmatprep.mubr.msk.bf16.mxu1 %vm2254_vm0, %v2253_v1  ;;  %2028 = vmatpush3.bf16.msra.mxu1 %v2379_v37 }
  0xe3   : > { %2029 = vmatprep.subr.bf16.mxu1 %v2253_v1 }
  0xe6   : > { %2030 = vmatpush3.bf16.msra.mxu1 %v2404_v47 }
  0xe7   : > { %2043 = vmatprep.subr.bf16.mxu1 %v2253_v1 }
 0x1a1   : > { %v432_v18 = vpop.f32.mrf.mxu1 }
 0x1a2   : > { %v439_v19 = vsub.f32 %v432_v18, %v2357_v17 }
 0x1a3   : > { %v2019_v20 = vpop.f32.mrf.mxu1 }
 0x1a4   : > { %v441_v21 = vmul.f32 0.01, %v439_v19  ;;  %vm440_vm3 = vcmp.gt.f32.partialorder %v439_v19, 0.0 }
 0x1a5   : > { %v435_v22 = vpop.f32.mrf.mxu1 }
 0x1a6   : > { %v442_v23 = vsel %vm440_vm3, %v439_v19, %v441_v21 }
 0x1a7   : > { %v2020_v24 = vpop.f32.mrf.mxu1  ;;  %v444_v25 = vsel %vm443_vm4, %v442_v23, -inf }
 0x1a8   : > { %445 = vmax.xlane.f32.xlu0 %v444_v25 }
 0x231   : > { %v446_v26 = vpop.xlane.xlu0 %445 }
 0x232   : > { %v447_v27 = vsub.f32 %v442_v23, %v446_v26  ;;  %v694_v23 = vmul.f32 %v1899_v45, %v2365_v31 }
 0x234   : > { %v448_v28 = vmul.f32 1.442695, %v447_v27  ;;  %v695_v24 = vadd.f32 %v2371_v33, %v694_v23 }
 0x236   : > { %2217 = vpow2.f32 %v448_v28  ;;  %v697_v25 = vpack.c.bf16 %v695_v24, %v695_v24 }
 0x238   : > { %v702_v26 = vsel %vm476_vm5, %v697_v25, 0  ;;  %v1911_v25 = vld [vmem:[%s2336_s15 + $0x18] sm:$0xff] }
 0x243   : > { %v2218_v29 = vpop.eup %2217 }
 0x244   : > { %v450_v30 = vsel %vm443_vm4, %v2218_v29, 0.0 }
 0x245   : > { %451 = vadd.xlane.f32.xlu0 %v450_v30 }
 0x2ce   : > { %v452_v38 = vpop.xlane.xlu0 %451 }
 0x2cf   : > { %2219 = vrcp.f32 %v452_v38 }
 0x2dc   : > { %v2220_v39 = vpop.eup %2219 }
 0x2dd   : > { %v454_v40 = vmul.f32 %v2220_v39, %v2218_v29 }
 0x2df   : > { %v455_v42 = vadd.f32 %v2354_v16, %v454_v40 }
 0x2e1   : > { %v456_v43 = vmul.f32 %v455_v42, %v2386_v41 }
 0x2e3   : > { %v471_v44 = vpack.c.bf16 %v456_v43, %v456_v43 }
 0x2e5   : > { %2024 = vmatmul.mubr.msk.bf16.vlgmr.msra.gmra.mxu0 %vm443_vm4, %v471_v44 }
 0x2e6   : > { %2036 = vmatpush3.bf16.msra.mxu0 %v2311_v0  ;;  %2039 = vmatprep.mubr.msk.bf16.mxu0 %vm2254_vm0, %v2253_v1 }
 0x2e7   : > { %2037 = vmatprep.subr.bf16.mxu0 %v2253_v1 }
 0x2ea   : > { %2038 = vmatpush3.bf16.msra.mxu0 %v2319_v2 }
 0x2eb   : > { %2049 = vmatprep.subr.bf16.mxu0 %v2253_v1 }
 0x2ed   : > { %2040 = vmatmul.mubr.msk.bf16.vlgmr.msra.gmra.mxu0 %vm350_vm1, %v589_v46 }
 0x2ee   : > { %2051 = vmatprep.mubr.msk.bf16.mxu0 %vm2254_vm0, %v2253_v1  ;;  %2050 = vmatpush3.bf16.msra.mxu0 %v702_v26  ;;  %v1001_v26 = vpack.c.bf16 %v1911_v25, %v1911_v25 }
 0x2ef   : > { %2063 = vmatprep.subr.bf16.mxu0 %v2253_v1 }
 0x3a5   : > { %v514_v48 = vpop.f32.mrf.mxu0 }
 0x3a6   : > { %v520_v49 = vpack.c.bf16 %v514_v48, %v514_v48 }
 0x3a7   : > { %v2025_v50 = vpop.f32.mrf.mxu0 }
 0x3a8   : > { %2032 = vmatmul.mubr.msk.bf16.vlgmr.msra.gmra.mxu1 %vm350_vm1, %v520_v49 }
 0x3a9   : > { %v517_v51 = vpop.f32.mrf.mxu0  ;;  %2045 = vmatprep.mubr.msk.bf16.mxu1 %vm2254_vm0, %v2253_v1 }
 0x3ab   : > { %v2026_v52 = vpop.f32.mrf.mxu0 }
 0x3ad   : > { %v627_v53 = vpop.f32.mrf.mxu0 }
 0x3ae   : > { %v628_v54 = vadd.f32 %v2345_v5, %v627_v53 }
 0x3af   : > { %v2041_v55 = vpop.f32.mrf.mxu0 }
 0x3b0   : > { %v633_v56 = vpack.c.bf16 %v628_v54, %v628_v54 }
 0x3b1   : > { %v630_v57 = vpop.f32.mrf.mxu0 }
 0x3b2   : > { %v635_v58 = vsel %vm350_vm1, %v633_v56, 0 }
 0x3b3   : > { %v2042_v59 = vpop.f32.mrf.mxu0  ;;  %2044 = vmatpush3.bf16.xpose.msra.mxu1 %v635_v58 }
 0x3b4   : > { %2055 = vmatprep.subr.bf16.mxu1 %v2253_v1 }
 0x3ba   : > { %2046 = vmatmul.mubr.msk.bf16.vlgmr.msra.gmra.mxu1 %vm350_vm1, %v633_v56 }
 0x3bb   : > { %2056 = vmatpush3.bf16.msra.mxu1 %v2379_v37  ;;  %2059 = vmatprep.mubr.msk.bf16.mxu1 %vm2254_vm0, %v2253_v1 }
 0x3bc   : > { %2057 = vmatprep.subr.bf16.mxu1 %v2253_v1 }
 0x3bf   : > { %2058 = vmatpush3.bf16.msra.mxu1 %v2404_v47 }
 0x3c0   : > { %2071 = vmatprep.subr.bf16.mxu1 %v2253_v1 }
 0x468   : > { %v576_v61 = vpop.f32.mrf.mxu1 }
 0x469   : > { %v577_v62 = vadd.f32 %v2424_v60, %v576_v61 }
 0x46a   : > { %v2033_v63 = vpop.f32.mrf.mxu1 }
 0x46b   : > { %vm582_vm6 = vcmp.gt.f32.partialorder %v577_v62, 0.0  ;;  %v583_v3 = vmul.f32 0.01, %v577_v62 }
 0x46c   : > { %v579_v4 = vpop.f32.mrf.mxu1 }
 0x46d   : > { %v584_v6 = vsel %vm582_vm6, %v577_v62, %v583_v3 }
 0x46e   : > { %586 = vst.msk [vmem:[%s2432_s13] sm:$0xff] %vm585_vm7, %v584_v6  ;;  %v2034_v7 = vpop.f32.mrf.mxu1 }
 0x47a   : > { %v671_v8 = vpop.f32.mrf.mxu1 }
 0x47b   : > { %v677_v9 = vsub.f32 %v671_v8, %v2357_v17 }
 0x47c   : > { %v2047_v10 = vpop.f32.mrf.mxu1 }
 0x47d   : > { %v679_v11 = vmul.f32 0.01, %v677_v9  ;;  %vm678_vm8 = vcmp.gt.f32.partialorder %v677_v9, 0.0 }
 0x47e   : > { %v674_v12 = vpop.f32.mrf.mxu1 }
 0x47f   : > { %v680_v13 = vsel %vm678_vm8, %v677_v9, %v679_v11 }
 0x480   : > { %v2048_v14 = vpop.f32.mrf.mxu1  ;;  %v681_v15 = vsel %vm443_vm4, %v680_v13, -inf }
 0x481   : > { %682 = vmax.xlane.f32.xlu1 %v681_v15 }
 0x50a   : > { %v683_v18 = vpop.xlane.xlu1 %682 }
 0x50b   : > { %v684_v19 = vsub.f32 %v680_v13, %v683_v18  ;;  %v900_v13 = vmul.f32 %v1905_v35, %v2365_v31 }
 0x50d   : > { %v685_v20 = vmul.f32 1.442695, %v684_v19  ;;  %v901_v14 = vadd.f32 %v2371_v33, %v900_v13 }
 0x50f   : > { %2221 = vpow2.f32 %v685_v20  ;;  %v903_v15 = vpack.c.bf16 %v901_v14, %v901_v14 }
 0x511   : > { %v908_v18 = vsel %vm476_vm5, %v903_v15, 0  ;;  %v1917_v15 = vld [vmem:[%s2336_s15 + $0x20] sm:$0xff] }
 0x51c   : > { %v2222_v21 = vpop.eup %2221 }
 0x51d   : > { %v687_v22 = vsel %vm443_vm4, %v2222_v21, 0.0 }
 0x51e   : > { %688 = vadd.xlane.f32.xlu1 %v687_v22 }
 0x5a7   : > { %v689_v27 = vpop.xlane.xlu1 %688 }
 0x5a8   : > { %2223 = vrcp.f32 %v689_v27 }
 0x5b5   : > { %v2224_v28 = vpop.eup %2223 }
 0x5b6   : > { %v691_v29 = vmul.f32 %v2224_v28, %v2222_v21 }
 0x5b8   : > { %v692_v30 = vadd.f32 %v2354_v16, %v691_v29 }
 0x5ba   : > { %v693_v32 = vmul.f32 %v692_v30, %v2386_v41 }
 0x5bc   : > { %v696_v34 = vpack.c.bf16 %v693_v32, %v693_v32 }
 0x5be   : > { %2052 = vmatmul.mubr.msk.bf16.vlgmr.msra.gmra.mxu0 %vm443_vm4, %v696_v34 }
 0x5bf   : > { %2064 = vmatpush3.bf16.msra.mxu0 %v2311_v0  ;;  %2067 = vmatprep.mubr.msk.bf16.mxu0 %vm2254_vm0, %v2253_v1 }
 0x5c0   : > { %2065 = vmatprep.subr.bf16.mxu0 %v2253_v1 }
 0x5c3   : > { %2066 = vmatpush3.bf16.msra.mxu0 %v2319_v2 }
 0x5c4   : > { %2077 = vmatprep.subr.bf16.mxu0 %v2253_v1 }
 0x5c6   : > { %2068 = vmatmul.mubr.msk.bf16.vlgmr.msra.gmra.mxu0 %vm350_vm1, %v795_v36 }
 0x5c7   : > { %2079 = vmatprep.mubr.msk.bf16.mxu0 %vm2254_vm0, %v2253_v1  ;;  %2078 = vmatpush3.bf16.msra.mxu0 %v908_v18  ;;  %v1207_v18 = vpack.c.bf16 %v1917_v15, %v1917_v15 }
 0x5c8   : > { %2091 = vmatprep.subr.bf16.mxu0 %v2253_v1 }
 0x67e   : > { %v738_v38 = vpop.f32.mrf.mxu0 }
 0x67f   : > { %v744_v39 = vpack.c.bf16 %v738_v38, %v738_v38 }
 0x680   : > { %v2053_v40 = vpop.f32.mrf.mxu0 }
 0x681   : > { %2060 = vmatmul.mubr.msk.bf16.vlgmr.msra.gmra.mxu1 %vm350_vm1, %v744_v39 }
 0x682   : > { %v741_v42 = vpop.f32.mrf.mxu0  ;;  %2073 = vmatprep.mubr.msk.bf16.mxu1 %vm2254_vm0, %v2253_v1 }
 0x684   : > { %v2054_v43 = vpop.f32.mrf.mxu0 }
 0x686   : > { %v833_v44 = vpop.f32.mrf.mxu0 }
 0x687   : > { %v834_v45 = vadd.f32 %v2345_v5, %v833_v44 }
 0x688   : > { %v2069_v46 = vpop.f32.mrf.mxu0 }
 0x689   : > { %v839_v48 = vpack.c.bf16 %v834_v45, %v834_v45 }
 0x68a   : > { %v836_v49 = vpop.f32.mrf.mxu0 }
 0x68b   : > { %v841_v50 = vsel %vm350_vm1, %v839_v48, 0 }
 0x68c   : > { %v2070_v51 = vpop.f32.mrf.mxu0  ;;  %2072 = vmatpush3.bf16.xpose.msra.mxu1 %v841_v50 }
 0x68d   : > { %2083 = vmatprep.subr.bf16.mxu1 %v2253_v1 }
 0x693   : > { %2074 = vmatmul.mubr.msk.bf16.vlgmr.msra.gmra.mxu1 %vm350_vm1, %v839_v48 }
 0x694   : > { %2084 = vmatpush3.bf16.msra.mxu1 %v2379_v37  ;;  %2087 = vmatprep.mubr.msk.bf16.mxu1 %vm2254_vm0, %v2253_v1 }
 0x695   : > { %2085 = vmatprep.subr.bf16.mxu1 %v2253_v1 }
 0x698   : > { %2086 = vmatpush3.bf16.msra.mxu1 %v2404_v47 }
 0x699   : > { %2099 = vmatprep.subr.bf16.mxu1 %v2253_v1 }
 0x741   : > { %v782_v52 = vpop.f32.mrf.mxu1 }
 0x742   : > { %v783_v53 = vadd.f32 %v2424_v60, %v782_v52 }
 0x743   : > { %v2061_v54 = vpop.f32.mrf.mxu1 }
 0x744   : > { %vm788_vm9 = vcmp.gt.f32.partialorder %v783_v53, 0.0  ;;  %v789_v55 = vmul.f32 0.01, %v783_v53 }
 0x745   : > { %v785_v56 = vpop.f32.mrf.mxu1 }
 0x746   : > { %v790_v57 = vsel %vm788_vm9, %v783_v53, %v789_v55 }
 0x747   : > { %1904 = vst.msk [vmem:[%s2432_s13 + $0x8] sm:$0xff] %vm585_vm7, %v790_v57  ;;  %v2062_v58 = vpop.f32.mrf.mxu1 }
 0x753   : > { %v877_v59 = vpop.f32.mrf.mxu1 }
 0x754   : > { %v883_v61 = vsub.f32 %v877_v59, %v2357_v17 }
 0x755   : > { %v2075_v62 = vpop.f32.mrf.mxu1 }
 0x756   : > { %v885_v63 = vmul.f32 0.01, %v883_v61  ;;  %vm884_vm10 = vcmp.gt.f32.partialorder %v883_v61, 0.0 }
 0x757   : > { %v880_v3 = vpop.f32.mrf.mxu1 }
 0x758   : > { %v886_v4 = vsel %vm884_vm10, %v883_v61, %v885_v63 }
 0x759   : > { %v2076_v6 = vpop.f32.mrf.mxu1  ;;  %v887_v7 = vsel %vm443_vm4, %v886_v4, -inf }
 0x75a   : > { %888 = vmax.xlane.f32.xlu0 %v887_v7 }
 0x7e3   : > { %v889_v8 = vpop.xlane.xlu0 %888 }
 0x7e4   : > { %v890_v9 = vsub.f32 %v886_v4, %v889_v8  ;;  %v1106_v4 = vmul.f32 %v1911_v25, %v2365_v31 }
 0x7e6   : > { %v891_v10 = vmul.f32 1.442695, %v890_v9  ;;  %v1107_v6 = vadd.f32 %v2371_v33, %v1106_v4 }
 0x7e8   : > { %2225 = vpow2.f32 %v891_v10  ;;  %v1109_v7 = vpack.c.bf16 %v1107_v6, %v1107_v6 }
 0x7ea   : > { %v1114_v8 = vsel %vm476_vm5, %v1109_v7, 0  ;;  %v1923_v7 = vld [vmem:[%s2336_s15 + $0x28] sm:$0xff] }
 0x7f5   : > { %v2226_v11 = vpop.eup %2225 }
 0x7f6   : > { %v893_v12 = vsel %vm443_vm4, %v2226_v11, 0.0 }
 0x7f7   : > { %894 = vadd.xlane.f32.xlu1 %v893_v12 }
 0x880   : > { %v895_v19 = vpop.xlane.xlu1 %894 }
 0x881   : > { %2227 = vrcp.f32 %v895_v19 }
 0x88e   : > { %v2228_v20 = vpop.eup %2227 }
 0x88f   : > { %v897_v21 = vmul.f32 %v2228_v20, %v2226_v11 }
 0x891   : > { %v898_v22 = vadd.f32 %v2354_v16, %v897_v21 }
 0x893   : > { %v899_v23 = vmul.f32 %v898_v22, %v2386_v41 }
 0x895   : > { %v902_v24 = vpack.c.bf16 %v899_v23, %v899_v23 }
 0x897   : > { %2080 = vmatmul.mubr.msk.bf16.vlgmr.msra.gmra.mxu0 %vm443_vm4, %v902_v24 }
 0x898   : > { %2092 = vmatpush3.bf16.msra.mxu0 %v2311_v0  ;;  %2095 = vmatprep.mubr.msk.bf16.mxu0 %vm2254_vm0, %v2253_v1 }
 0x899   : > { %2093 = vmatprep.subr.bf16.mxu0 %v2253_v1 }
 0x89c   : > { %2094 = vmatpush3.bf16.msra.mxu0 %v2319_v2 }
 0x89d   : > { %2105 = vmatprep.subr.bf16.mxu0 %v2253_v1 }
 0x89f   : > { %2096 = vmatmul.mubr.msk.bf16.vlgmr.msra.gmra.mxu0 %vm350_vm1, %v1001_v26 }
 0x8a0   : > { %2107 = vmatprep.mubr.msk.bf16.mxu0 %vm2254_vm0, %v2253_v1  ;;  %2106 = vmatpush3.bf16.msra.mxu0 %v1114_v8  ;;  %v1413_v8 = vpack.c.bf16 %v1923_v7, %v1923_v7 }
 0x8a1   : > { %2119 = vmatprep.subr.bf16.mxu0 %v2253_v1 }
 0x957   : > { %v944_v27 = vpop.f32.mrf.mxu0 }
 0x958   : > { %v950_v28 = vpack.c.bf16 %v944_v27, %v944_v27 }
 0x959   : > { %v2081_v29 = vpop.f32.mrf.mxu0 }
 0x95a   : > { %2088 = vmatmul.mubr.msk.bf16.vlgmr.msra.gmra.mxu1 %vm350_vm1, %v950_v28 }
 0x95b   : > { %v947_v30 = vpop.f32.mrf.mxu0  ;;  %2101 = vmatprep.mubr.msk.bf16.mxu1 %vm2254_vm0, %v2253_v1 }
 0x95d   : > { %v2082_v32 = vpop.f32.mrf.mxu0 }
 0x95f   : > { %v1039_v34 = vpop.f32.mrf.mxu0 }
 0x960   : > { %v1040_v35 = vadd.f32 %v2345_v5, %v1039_v34 }
 0x961   : > { %v2097_v36 = vpop.f32.mrf.mxu0 }
 0x962   : > { %v1045_v38 = vpack.c.bf16 %v1040_v35, %v1040_v35 }
 0x963   : > { %v1042_v39 = vpop.f32.mrf.mxu0 }
 0x964   : > { %v1047_v40 = vsel %vm350_vm1, %v1045_v38, 0 }
 0x965   : > { %v2098_v42 = vpop.f32.mrf.mxu0  ;;  %2100 = vmatpush3.bf16.xpose.msra.mxu1 %v1047_v40 }
 0x966   : > { %2111 = vmatprep.subr.bf16.mxu1 %v2253_v1 }
 0x96c   : > { %2102 = vmatmul.mubr.msk.bf16.vlgmr.msra.gmra.mxu1 %vm350_vm1, %v1045_v38 }
 0x96d   : > { %2112 = vmatpush3.bf16.msra.mxu1 %v2379_v37  ;;  %2115 = vmatprep.mubr.msk.bf16.mxu1 %vm2254_vm0, %v2253_v1 }
 0x96e   : > { %2113 = vmatprep.subr.bf16.mxu1 %v2253_v1 }
 0x971   : > { %2114 = vmatpush3.bf16.msra.mxu1 %v2404_v47 }
 0x972   : > { %2127 = vmatprep.subr.bf16.mxu1 %v2253_v1 }
 0xa1a   : > { %v988_v43 = vpop.f32.mrf.mxu1 }
 0xa1b   : > { %v989_v44 = vadd.f32 %v2424_v60, %v988_v43 }
 0xa1c   : > { %v2089_v45 = vpop.f32.mrf.mxu1 }
 0xa1d   : > { %vm994_vm11 = vcmp.gt.f32.partialorder %v989_v44, 0.0  ;;  %v995_v46 = vmul.f32 0.01, %v989_v44 }
 0xa1e   : > { %v991_v48 = vpop.f32.mrf.mxu1 }
 0xa1f   : > { %v996_v49 = vsel %vm994_vm11, %v989_v44, %v995_v46 }
 0xa20   : > { %1910 = vst.msk [vmem:[%s2432_s13 + $0x10] sm:$0xff] %vm585_vm7, %v996_v49  ;;  %v2090_v50 = vpop.f32.mrf.mxu1 }
 0xa2c   : > { %v1083_v51 = vpop.f32.mrf.mxu1 }
 0xa2d   : > { %v1089_v52 = vsub.f32 %v1083_v51, %v2357_v17 }
 0xa2e   : > { %v2103_v53 = vpop.f32.mrf.mxu1 }
 0xa2f   : > { %v1091_v54 = vmul.f32 0.01, %v1089_v52  ;;  %vm1090_vm12 = vcmp.gt.f32.partialorder %v1089_v52, 0.0 }
 0xa30   : > { %v1086_v55 = vpop.f32.mrf.mxu1 }
 0xa31   : > { %v1092_v56 = vsel %vm1090_vm12, %v1089_v52, %v1091_v54 }
 0xa32   : > { %v2104_v57 = vpop.f32.mrf.mxu1  ;;  %v1093_v58 = vsel %vm443_vm4, %v1092_v56, -inf }
 0xa33   : > { %1094 = vmax.xlane.f32.xlu0 %v1093_v58 }
 0xabc   : > { %v1095_v59 = vpop.xlane.xlu0 %1094 }
 0xabd   : > { %v1096_v61 = vsub.f32 %v1092_v56, %v1095_v59  ;;  %v1312_v56 = vmul.f32 %v1917_v15, %v2365_v31 }
 0xabf   : > { %v1097_v62 = vmul.f32 1.442695, %v1096_v61  ;;  %v1313_v57 = vadd.f32 %v2371_v33, %v1312_v56 }
 0xac1   : > { %2229 = vpow2.f32 %v1097_v62  ;;  %v1315_v58 = vpack.c.bf16 %v1313_v57, %v1313_v57 }
 0xac3   : > { %v1320_v59 = vsel %vm476_vm5, %v1315_v58, 0  ;;  %v1929_v58 = vld [vmem:[%s2336_s15 + $0x30] sm:$0xff] }
 0xace   : > { %v2230_v63 = vpop.eup %2229 }
 0xacf   : > { %v1099_v3 = vsel %vm443_vm4, %v2230_v63, 0.0 }
 0xad0   : > { %1100 = vadd.xlane.f32.xlu1 %v1099_v3 }
 0xb59   : > { %v1101_v9 = vpop.xlane.xlu1 %1100 }
 0xb5a   : > { %2231 = vrcp.f32 %v1101_v9 }
 0xb67   : > { %v2232_v10 = vpop.eup %2231 }
 0xb68   : > { %v1103_v11 = vmul.f32 %v2232_v10, %v2230_v63 }
 0xb6a   : > { %v1104_v12 = vadd.f32 %v2354_v16, %v1103_v11 }
 0xb6c   : > { %v1105_v13 = vmul.f32 %v1104_v12, %v2386_v41 }
 0xb6e   : > { %v1108_v14 = vpack.c.bf16 %v1105_v13, %v1105_v13 }
 0xb70   : > { %2108 = vmatmul.mubr.msk.bf16.vlgmr.msra.gmra.mxu0 %vm443_vm4, %v1108_v14 }
 0xb71   : > { %2120 = vmatpush3.bf16.msra.mxu0 %v2311_v0  ;;  %2123 = vmatprep.mubr.msk.bf16.mxu0 %vm2254_vm0, %v2253_v1 }
 0xb72   : > { %2121 = vmatprep.subr.bf16.mxu0 %v2253_v1 }
 0xb75   : > { %2122 = vmatpush3.bf16.msra.mxu0 %v2319_v2 }
 0xb76   : > { %2133 = vmatprep.subr.bf16.mxu0 %v2253_v1 }
 0xb78   : > { %2124 = vmatmul.mubr.msk.bf16.vlgmr.msra.gmra.mxu0 %vm350_vm1, %v1207_v18 }
 0xb79   : > { %2135 = vmatprep.mubr.msk.bf16.mxu0 %vm2254_vm0, %v2253_v1  ;;  %2134 = vmatpush3.bf16.msra.mxu0 %v1320_v59  ;;  %v1619_v59 = vpack.c.bf16 %v1929_v58, %v1929_v58 }
 0xb7a   : > { %2147 = vmatprep.subr.bf16.mxu0 %v2253_v1 }
 0xc30   : > { %v1150_v19 = vpop.f32.mrf.mxu0 }
 0xc31   : > { %v1156_v20 = vpack.c.bf16 %v1150_v19, %v1150_v19 }
 0xc32   : > { %v2109_v21 = vpop.f32.mrf.mxu0 }
 0xc33   : > { %2116 = vmatmul.mubr.msk.bf16.vlgmr.msra.gmra.mxu1 %vm350_vm1, %v1156_v20 }
 0xc34   : > { %v1153_v22 = vpop.f32.mrf.mxu0  ;;  %2129 = vmatprep.mubr.msk.bf16.mxu1 %vm2254_vm0, %v2253_v1 }
 0xc36   : > { %v2110_v23 = vpop.f32.mrf.mxu0 }
 0xc38   : > { %v1245_v24 = vpop.f32.mrf.mxu0 }
 0xc39   : > { %v1246_v25 = vadd.f32 %v2345_v5, %v1245_v24 }
 0xc3a   : > { %v2125_v26 = vpop.f32.mrf.mxu0 }
 0xc3b   : > { %v1251_v27 = vpack.c.bf16 %v1246_v25, %v1246_v25 }
 0xc3c   : > { %v1248_v28 = vpop.f32.mrf.mxu0 }
 0xc3d   : > { %v1253_v29 = vsel %vm350_vm1, %v1251_v27, 0 }
 0xc3e   : > { %v2126_v30 = vpop.f32.mrf.mxu0  ;;  %2128 = vmatpush3.bf16.xpose.msra.mxu1 %v1253_v29 }
 0xc3f   : > { %2139 = vmatprep.subr.bf16.mxu1 %v2253_v1 }
 0xc45   : > { %2130 = vmatmul.mubr.msk.bf16.vlgmr.msra.gmra.mxu1 %vm350_vm1, %v1251_v27 }
 0xc46   : > { %2140 = vmatpush3.bf16.msra.mxu1 %v2379_v37  ;;  %2143 = vmatprep.mubr.msk.bf16.mxu1 %vm2254_vm0, %v2253_v1 }
 0xc47   : > { %2141 = vmatprep.subr.bf16.mxu1 %v2253_v1 }
 0xc4a   : > { %2142 = vmatpush3.bf16.msra.mxu1 %v2404_v47 }
 0xc4b   : > { %2155 = vmatprep.subr.bf16.mxu1 %v2253_v1 }
 0xcf3   : > { %v1194_v32 = vpop.f32.mrf.mxu1 }
 0xcf4   : > { %v1195_v34 = vadd.f32 %v2424_v60, %v1194_v32 }
 0xcf5   : > { %v2117_v35 = vpop.f32.mrf.mxu1 }
 0xcf6   : > { %vm1200_vm13 = vcmp.gt.f32.partialorder %v1195_v34, 0.0  ;;  %v1201_v36 = vmul.f32 0.01, %v1195_v34 }
 0xcf7   : > { %v1197_v38 = vpop.f32.mrf.mxu1 }
 0xcf8   : > { %v1202_v39 = vsel %vm1200_vm13, %v1195_v34, %v1201_v36 }
 0xcf9   : > { %1916 = vst.msk [vmem:[%s2432_s13 + $0x18] sm:$0xff] %vm585_vm7, %v1202_v39  ;;  %v2118_v40 = vpop.f32.mrf.mxu1 }
 0xd05   : > { %v1289_v42 = vpop.f32.mrf.mxu1 }
 0xd06   : > { %v1295_v43 = vsub.f32 %v1289_v42, %v2357_v17 }
 0xd07   : > { %v2131_v44 = vpop.f32.mrf.mxu1 }
 0xd08   : > { %v1297_v45 = vmul.f32 0.01, %v1295_v43  ;;  %vm1296_vm14 = vcmp.gt.f32.partialorder %v1295_v43, 0.0 }
 0xd09   : > { %v1292_v46 = vpop.f32.mrf.mxu1 }
 0xd0a   : > { %v1298_v48 = vsel %vm1296_vm14, %v1295_v43, %v1297_v45 }
 0xd0b   : > { %v2132_v49 = vpop.f32.mrf.mxu1  ;;  %v1299_v50 = vsel %vm443_vm4, %v1298_v48, -inf }
 0xd0c   : > { %1300 = vmax.xlane.f32.xlu0 %v1299_v50 }
 0xd95   : > { %v1301_v51 = vpop.xlane.xlu0 %1300 }
 0xd96   : > { %v1302_v52 = vsub.f32 %v1298_v48, %v1301_v51  ;;  %v1518_v48 = vmul.f32 %v1923_v7, %v2365_v31 }
 0xd98   : > { %v1303_v53 = vmul.f32 1.442695, %v1302_v52  ;;  %v1519_v49 = vadd.f32 %v2371_v33, %v1518_v48 }
 0xd9a   : > { %2233 = vpow2.f32 %v1303_v53  ;;  %v1521_v50 = vpack.c.bf16 %v1519_v49, %v1519_v49 }
 0xd9c   : > { %v1526_v51 = vsel %vm476_vm5, %v1521_v50, 0 }
 0xda7   : > { %v2234_v54 = vpop.eup %2233 }
 0xda8   : > { %v1305_v55 = vsel %vm443_vm4, %v2234_v54, 0.0 }
 0xda9   : > { %1306 = vadd.xlane.f32.xlu1 %v1305_v55 }
 0xe32   : > { %v1307_v61 = vpop.xlane.xlu1 %1306 }
 0xe33   : > { %2235 = vrcp.f32 %v1307_v61 }
 0xe40   : > { %v2236_v62 = vpop.eup %2235 }
 0xe41   : > { %v1309_v63 = vmul.f32 %v2236_v62, %v2234_v54 }
 0xe43   : > { %v1310_v3 = vadd.f32 %v2354_v16, %v1309_v63 }
 0xe45   : > { %v1311_v4 = vmul.f32 %v1310_v3, %v2386_v41 }
 0xe47   : > { %v1314_v6 = vpack.c.bf16 %v1311_v4, %v1311_v4 }
 0xe49   : > { %2136 = vmatmul.mubr.msk.bf16.vlgmr.msra.gmra.mxu0 %vm443_vm4, %v1314_v6 }
 0xe4a   : > { %2148 = vmatpush3.bf16.msra.mxu0 %v2311_v0  ;;  %2151 = vmatprep.mubr.msk.bf16.mxu0 %vm2254_vm0, %v2253_v1 }
 0xe4b   : > { %2149 = vmatprep.subr.bf16.mxu0 %v2253_v1 }
 0xe4e   : > { %2150 = vmatpush3.bf16.msra.mxu0 %v2319_v2 }
 0xe4f   : > { %2161 = vmatprep.subr.bf16.mxu0 %v2253_v1 }
 0xe51   : > { %2152 = vmatmul.mubr.msk.bf16.vlgmr.msra.gmra.mxu0 %vm350_vm1, %v1413_v8 }
 0xe52   : > { %2163 = vmatprep.mubr.msk.bf16.mxu0 %vm2254_vm0, %v2253_v1  ;;  %2162 = vmatpush3.bf16.msra.mxu0 %v1526_v51 }
 0xe53   : > { %2175 = vmatprep.subr.bf16.mxu0 %v2253_v1 }
 0xf09   : > { %v1356_v9 = vpop.f32.mrf.mxu0 }
 0xf0a   : > { %v1362_v10 = vpack.c.bf16 %v1356_v9, %v1356_v9 }
 0xf0b   : > { %v2137_v11 = vpop.f32.mrf.mxu0 }
 0xf0c   : > { %2144 = vmatmul.mubr.msk.bf16.vlgmr.msra.gmra.mxu1 %vm350_vm1, %v1362_v10 }
 0xf0d   : > { %v1359_v12 = vpop.f32.mrf.mxu0  ;;  %2157 = vmatprep.mubr.msk.bf16.mxu1 %vm2254_vm0, %v2253_v1 }
 0xf0f   : > { %v2138_v13 = vpop.f32.mrf.mxu0 }
 0xf11   : > { %v1451_v14 = vpop.f32.mrf.mxu0 }
 0xf12   : > { %v1452_v15 = vadd.f32 %v2345_v5, %v1451_v14 }
 0xf13   : > { %v2153_v18 = vpop.f32.mrf.mxu0 }
 0xf14   : > { %v1457_v19 = vpack.c.bf16 %v1452_v15, %v1452_v15 }
 0xf15   : > { %v1454_v20 = vpop.f32.mrf.mxu0 }
 0xf16   : > { %v1459_v21 = vsel %vm350_vm1, %v1457_v19, 0 }
 0xf17   : > { %v2154_v22 = vpop.f32.mrf.mxu0  ;;  %2156 = vmatpush3.bf16.xpose.msra.mxu1 %v1459_v21 }
 0xf18   : > { %2167 = vmatprep.subr.bf16.mxu1 %v2253_v1 }
 0xf1e   : > { %2158 = vmatmul.mubr.msk.bf16.vlgmr.msra.gmra.mxu1 %vm350_vm1, %v1457_v19 }
 0xf1f   : > { %2168 = vmatpush3.bf16.msra.mxu1 %v2379_v37  ;;  %2171 = vmatprep.mubr.msk.bf16.mxu1 %vm2254_vm0, %v2253_v1 }
 0xf20   : > { %2169 = vmatprep.subr.bf16.mxu1 %v2253_v1 }
 0xf23   : > { %2170 = vmatpush3.bf16.msra.mxu1 %v2404_v47 }
 0xf24   : > { %2183 = vmatprep.subr.bf16.mxu1 %v2253_v1 }
 0xfcc   : > { %v1400_v23 = vpop.f32.mrf.mxu1 }
 0xfcd   : > { %v1401_v24 = vadd.f32 %v2424_v60, %v1400_v23 }
 0xfce   : > { %v2145_v25 = vpop.f32.mrf.mxu1 }
 0xfcf   : > { %vm1406_vm15 = vcmp.gt.f32.partialorder %v1401_v24, 0.0  ;;  %v1407_v26 = vmul.f32 0.01, %v1401_v24 }
 0xfd0   : > { %v1403_v27 = vpop.f32.mrf.mxu1 }
 0xfd1   : > { %v1408_v28 = vsel %vm1406_vm15, %v1401_v24, %v1407_v26 }
 0xfd2   : > { %1922 = vst.msk [vmem:[%s2432_s13 + $0x20] sm:$0xff] %vm585_vm7, %v1408_v28  ;;  %v2146_v29 = vpop.f32.mrf.mxu1 }
 0xfd3   : > { %v1724_v29 = vmul.f32 %v1929_v58, %v2365_v31 }
 0xfde   : > { %v1495_v30 = vpop.f32.mrf.mxu1 }
 0xfdf   : > { %v1501_v32 = vsub.f32 %v1495_v30, %v2357_v17 }
 0xfe0   : > { %v2159_v34 = vpop.f32.mrf.mxu1 }
 0xfe1   : > { %v1503_v35 = vmul.f32 0.01, %v1501_v32  ;;  %vm1502_vm2 = vcmp.gt.f32.partialorder %v1501_v32, 0.0 }
 0xfe2   : > { %v1498_v36 = vpop.f32.mrf.mxu1 }
 0xfe3   : > { %v1504_v38 = vsel %vm1502_vm2, %v1501_v32, %v1503_v35 }
 0xfe4   : > { %v2160_v39 = vpop.f32.mrf.mxu1  ;;  %v1505_v40 = vsel %vm443_vm4, %v1504_v38, -inf }
 0xfe5   : > { %1506 = vmax.xlane.f32.xlu0 %v1505_v40 }
0x106e   : > { %v1507_v42 = vpop.xlane.xlu0 %1506 }
0x106f   : > { %v1508_v43 = vsub.f32 %v1504_v38, %v1507_v42 }
0x1071   : > { %v1509_v44 = vmul.f32 1.442695, %v1508_v43 }
0x1073   : > { %2237 = vpow2.f32 %v1509_v44 }
0x1080   : > { %v2238_v45 = vpop.eup %2237 }
0x1081   : > { %v1511_v46 = vsel %vm443_vm4, %v2238_v45, 0.0 }
0x1082   : > { %1512 = vadd.xlane.f32.xlu1 %v1511_v46 }
0x110b   : > { %v1513_v52 = vpop.xlane.xlu1 %1512 }
0x110c   : > { %2239 = vrcp.f32 %v1513_v52 }
0x1119   : > { %v2240_v53 = vpop.eup %2239 }
0x111a   : > { %v1515_v54 = vmul.f32 %v2240_v53, %v2238_v45 }
0x111c   : > { %v1516_v55 = vadd.f32 %v2354_v16, %v1515_v54 }
0x111e   : > { %v1517_v56 = vmul.f32 %v1516_v55, %v2386_v41 }
0x1120   : > { %v1520_v57 = vpack.c.bf16 %v1517_v56, %v1517_v56 }
0x1122   : > { %2164 = vmatmul.mubr.msk.bf16.vlgmr.msra.gmra.mxu0 %vm443_vm4, %v1520_v57 }
0x1123   : > { %2176 = vmatpush3.bf16.msra.mxu0 %v2311_v0  ;;  %2179 = vmatprep.mubr.msk.bf16.mxu0 %vm2254_vm0, %v2253_v1 }
0x1124   : > { %2177 = vmatprep.subr.bf16.mxu0 %v2253_v1 }
0x1127   : > { %2178 = vmatpush3.bf16.msra.mxu0 %v2319_v2 }
0x1128   : > { %2189 = vmatprep.subr.bf16.mxu0 %v2253_v1 }
0x112a   : > { %2180 = vmatmul.mubr.msk.bf16.vlgmr.msra.gmra.mxu0 %vm350_vm1, %v1619_v59 }
0x112b   : > { %2191 = vmatprep.mubr.msk.bf16.mxu0 %vm2254_vm0, %v2253_v1 }
0x11e2   : > { %v1562_v61 = vpop.f32.mrf.mxu0 }
0x11e3   : > { %v1568_v62 = vpack.c.bf16 %v1562_v61, %v1562_v61 }
0x11e4   : > { %v2165_v63 = vpop.f32.mrf.mxu0 }
0x11e5   : > { %2172 = vmatmul.mubr.msk.bf16.vlgmr.msra.gmra.mxu1 %vm350_vm1, %v1568_v62 }
0x11e6   : > { %v1565_v0 = vpop.f32.mrf.mxu0  ;;  %2185 = vmatprep.mubr.msk.bf16.mxu1 %vm2254_vm0, %v2253_v1 }
0x11e8   : > { %v2166_v3 = vpop.f32.mrf.mxu0 }
0x11ea   : > { %v1657_v4 = vpop.f32.mrf.mxu0 }
0x11eb   : > { %v1658_v2 = vadd.f32 %v2345_v5, %v1657_v4 }
0x11ec   : > { %v2181_v6 = vpop.f32.mrf.mxu0 }
0x11ed   : > { %v1663_v7 = vpack.c.bf16 %v1658_v2, %v1658_v2 }
0x11ee   : > { %v1660_v8 = vpop.f32.mrf.mxu0 }
0x11ef   : > { %v1665_v9 = vsel %vm350_vm1, %v1663_v7, 0 }
0x11f0   : > { %v2182_v10 = vpop.f32.mrf.mxu0  ;;  %2184 = vmatpush3.bf16.xpose.msra.mxu1 %v1665_v9 }
0x11f1   : > { %2195 = vmatprep.subr.bf16.mxu1 %v2253_v1 }
0x11f7   : > { %2186 = vmatmul.mubr.msk.bf16.vlgmr.msra.gmra.mxu1 %vm350_vm1, %v1663_v7 }
0x11f8   : > { %2196 = vmatpush3.bf16.msra.mxu1 %v2379_v37  ;;  %2199 = vmatprep.mubr.msk.bf16.mxu1 %vm2254_vm0, %v2253_v1 }
0x11f9   : > { %2197 = vmatprep.subr.bf16.mxu1 %v2253_v1 }
0x11fc   : > { %2198 = vmatpush3.bf16.msra.mxu1 %v2404_v47 }
0x12a5   : > { %v1606_v5 = vpop.f32.mrf.mxu1 }
0x12a6   : > { %v1607_v11 = vadd.f32 %v2424_v60, %v1606_v5 }
0x12a7   : > { %v2173_v12 = vpop.f32.mrf.mxu1 }
0x12a8   : > { %vm1612_vm3 = vcmp.gt.f32.partialorder %v1607_v11, 0.0  ;;  %v1613_v13 = vmul.f32 0.01, %v1607_v11 }
0x12a9   : > { %v1609_v14 = vpop.f32.mrf.mxu1 }
0x12aa   : > { %v1614_v15 = vsel %vm1612_vm3, %v1607_v11, %v1613_v13 }
0x12ab   : > { %1928 = vst.msk [vmem:[%s2432_s13 + $0x28] sm:$0xff] %vm585_vm7, %v1614_v15  ;;  %v2174_v18 = vpop.f32.mrf.mxu1 }
0x12b7   : > { %v1701_v19 = vpop.f32.mrf.mxu1 }
0x12b8   : > { %v1707_v37 = vsub.f32 %v1701_v19, %v2357_v17  ;;  %v1725_v17 = vadd.f32 %v2371_v33, %v1724_v29 }
0x12b9   : > { %v2187_v20 = vpop.f32.mrf.mxu1 }
0x12ba   : > { %v1709_v21 = vmul.f32 0.01, %v1707_v37  ;;  %vm1708_vm0 = vcmp.gt.f32.partialorder %v1707_v37, 0.0  ;;  %v1727_v30 = vpack.c.bf16 %v1725_v17, %v1725_v17 }
0x12bb   : > { %v1704_v1 = vpop.f32.mrf.mxu1 }
0x12bc   : > { %v1710_v22 = vsel %vm1708_vm0, %v1707_v37, %v1709_v21  ;;  %v1732_v32 = vsel %vm476_vm5, %v1727_v30, 0 }
0x12bd   : > { %v2188_v47 = vpop.f32.mrf.mxu1  ;;  %v1711_v23 = vsel %vm443_vm4, %v1710_v22, -inf  ;;  %2190 = vmatpush3.bf16.msra.mxu0 %v1732_v32 }
0x12be   : > { %1712 = vmax.xlane.f32.xlu0 %v1711_v23 }
0x1347   : > { %v1713_v24 = vpop.xlane.xlu0 %1712 }
0x1348   : > { %v1714_v25 = vsub.f32 %v1710_v22, %v1713_v24 }
0x134a   : > { %v1715_v26 = vmul.f32 1.442695, %v1714_v25 }
0x134c   : > { %2241 = vpow2.f32 %v1715_v26 }
0x1359   : > { %v2242_v27 = vpop.eup %2241 }
0x135a   : > { %v1717_v28 = vsel %vm443_vm4, %v2242_v27, 0.0 }
0x135b   : > { %1718 = vadd.xlane.f32.xlu1 %v1717_v28 }
0x13e4   : > { %v1719_v34 = vpop.xlane.xlu1 %1718 }
0x13e5   : > { %2243 = vrcp.f32 %v1719_v34 }
0x13f2   : > { %v2244_v35 = vpop.eup %2243 }
0x13f3   : > { %v1721_v36 = vmul.f32 %v2244_v35, %v2242_v27 }
0x13f5   : > { %v1722_v38 = vadd.f32 %v2354_v16, %v1721_v36 }
0x13f7   : > { %v1723_v39 = vmul.f32 %v1722_v38, %v2386_v41 }
0x13f9   : > { %v1726_v40 = vpack.c.bf16 %v1723_v39, %v1723_v39 }
0x13fb   : > { %2192 = vmatmul.mubr.msk.bf16.vlgmr.msra.gmra.mxu0 %vm443_vm4, %v1726_v40 }
0x14bb   : > { %v1768_v42 = vpop.f32.mrf.mxu0 }
0x14bc   : > { %v1774_v31 = vpack.c.bf16 %v1768_v42, %v1768_v42 }
0x14bd   : > { %v2193_v43 = vpop.f32.mrf.mxu0 }
0x14be   : > { %2200 = vmatmul.mubr.msk.bf16.vlgmr.msra.gmra.mxu1 %vm350_vm1, %v1774_v31 }
0x14bf   : > { %v1771_v33 = vpop.f32.mrf.mxu0 }
0x14c1   : > { %v2194_v44 = vpop.f32.mrf.mxu0 }
0x157e   : > { %v1812_v45 = vpop.f32.mrf.mxu1 }
0x157f   : > { %v1813_v46 = vadd.f32 %v2424_v60, %v1812_v45 }
0x1580   : > { %v2201_v48 = vpop.f32.mrf.mxu1 }
0x1581   : > { %vm1818_vm5 = vcmp.gt.f32.partialorder %v1813_v46, 0.0  ;;  %v1819_v49 = vmul.f32 0.01, %v1813_v46 }
0x1582   : > { %v1815_v16 = vpop.f32.mrf.mxu1 }
0x1583   : > { %v1820_v50 = vsel %vm1818_vm5, %v1813_v46, %v1819_v49 }
0x1584   : > { %1934 = vst.msk [vmem:[%s2432_s13 + $0x30] sm:$0xff] %vm585_vm7, %v1820_v50  ;;  %v2202_v41 = vpop.f32.mrf.mxu1 }
0x1585 PF: > { %s18_s27 = sadd.s32 1, %s2251_s27  }
0x1586   : > { %p15_p4 = scmp.ge.s32.totalorder %s18_s27, 4  }
0x1588   :  { %17 = sbr.rel (!%p15_p4) target bundleno = 1 (0x1), region = 94 }

// kernel: _lambda_.7
= control target key start
LH: loop header
LB: loop body
LE: loop exit
PB: predicated region body
PF: predicated region fallthrough
CT: control target
= control target key end

     0   :  { %v1159_v1 = vmov 0   ;;  %vm255_vm0 = vcmask 261120   ;;  %vm588_vm1 = vcmask 1045504   ;;  %s1509_s0 = inlined_call_operand.vmem [shape: f32[8,160], index: 0, kind: input, shape index: {}]   ;;  %s1510_s1 = inlined_call_operand.vmem [shape: bf16[160,300], index: 1, kind: input, shape index: {}]   ;;  %s1511_s2 = inlined_call_operand.vmem [shape: f32[1,300], index: 2, kind: input, shape index: {}]   ;;  %s1512_s3 = inlined_call_operand.vmem [shape: bf16[300,150], index: 3, kind: input, shape index: {}]   ;;  %s1513_s4 = inlined_call_operand.vmem [shape: f32[1,150], index: 4, kind: input, shape index: {}]   ;;  %s1514_s5 = inlined_call_operand.vmem [shape: bf16[150,60], index: 5, kind: input, shape index: {}]   ;;  %s1515_s6 = inlined_call_operand.vmem [shape: f32[1,60], index: 6, kind: input, shape index: {}]   ;;  %s1516_s7 = inlined_call_operand.vmem [shape: bf16[60,5], index: 7, kind: input, shape index: {}]   ;;  %s1517_s8 = inlined_call_operand.vmem [shape: f32[1,5], index: 8, kind: input, shape index: {}]   ;;  %s1518_s9 = inlined_call_operand.hbm [shape: f32[8,5], index: 9, kind: output, shape index: {}]  }
   0x1   :  { %v1026_v0 = vld [vmem:[%s1510_s1 + $0xac] ss:$12 sps:$4 sm:$0xff]   ;;  %300 = vmatprep.subr.bf16.mxu1 %v1159_v1  ;;  %v1028_v2 = vld [vmem:[%s1510_s1 + $0xb0] ss:$12 sps:$4 sm:$0xff]   ;;  %v1029_v3 = vld [vmem:[%s1510_s1 + $0xa8] ss:$12 sps:$4 sm:$0xff]  }
   0x2   :  { %259 = vmatprep.subr.bf16.mxu0 %v1026_v0  ;;  %301 = vmatpush1.bf16.msra.mxu1 %v1028_v2  ;;  %v1030_v4 = vld [vmem:[%s1510_s1 + $0x94] ss:$12 sps:$4 sm:$0xff]   ;;  %v1032_v5 = vld [vmem:[%s1510_s1 + $0x98] ss:$12 sps:$4 sm:$0xff]   ;;  %v1033_v6 = vld [vmem:[%s1510_s1 + $0x90] ss:$12 sps:$4 sm:$0xff]  }
   0x3   :  { %260 = vmatpush1.bf16.msra.mxu0 %v1029_v3  ;;  %302 = vmatprep.subr.bf16.mxu1 %v1159_v1  ;;  %v1034_v7 = vld [vmem:[%s1510_s1 + $0x7c] ss:$12 sps:$4 sm:$0xff]   ;;  %v1036_v8 = vld [vmem:[%s1510_s1 + $0x80] ss:$12 sps:$4 sm:$0xff]   ;;  %v1037_v9 = vld [vmem:[%s1510_s1 + $0x78] ss:$12 sps:$4 sm:$0xff]  }
   0x4   :  { %261 = vmatprep.subr.bf16.mxu0 %v1030_v4  ;;  %v1038_v10 = vld [vmem:[%s1510_s1 + $0x64] ss:$12 sps:$4 sm:$0xff]   ;;  %v1040_v11 = vld [vmem:[%s1510_s1 + $0x68] ss:$12 sps:$4 sm:$0xff]   ;;  %v1041_v12 = vld [vmem:[%s1510_s1 + $0x60] ss:$12 sps:$4 sm:$0xff]  }
   0x5   :  { %v1042_v13 = vld [vmem:[%s1510_s1 + $0x4c] ss:$12 sps:$4 sm:$0xff]   ;;  %v1044_v14 = vld [vmem:[%s1510_s1 + $0x50] ss:$12 sps:$4 sm:$0xff]   ;;  %v1045_v15 = vld [vmem:[%s1510_s1 + $0x48] ss:$12 sps:$4 sm:$0xff]  }
   0x6   :  { %303 = vmatpush1.bf16.msra.mxu1 %v1032_v5  ;;  %v1046_v16 = vld [vmem:[%s1510_s1 + $0x34] ss:$12 sps:$4 sm:$0xff]   ;;  %v1048_v17 = vld [vmem:[%s1510_s1 + $0x38] ss:$12 sps:$4 sm:$0xff]   ;;  %v1049_v18 = vld [vmem:[%s1510_s1 + $0x30] ss:$12 sps:$4 sm:$0xff]  }
   0x7   :  { %262 = vmatpush1.bf16.msra.mxu0 %v1033_v6  ;;  %304 = vmatprep.subr.bf16.mxu1 %v1159_v1  ;;  %v1050_v19 = vld [vmem:[%s1510_s1 + $0x1c] ss:$12 sps:$4 sm:$0xff]   ;;  %v1052_v20 = vld [vmem:[%s1510_s1 + $0x20] ss:$12 sps:$4 sm:$0xff]   ;;  %v1053_v22 = vld [vmem:[%s1510_s1 + $0x18] ss:$12 sps:$4 sm:$0xff]  }
   0x8   :  { %263 = vmatprep.subr.bf16.mxu0 %v1034_v7  ;;  %v35_v21 = vld [vmem:[%s1509_s0 + $0x8] sm:$0xff]  ;;  %v1054_v24 = vld [vmem:[%s1510_s1 + $0x4] ss:$12 sps:$4 sm:$0xff]   ;;  %v1068_v34 = vld [vmem:[%s1512_s3 + $0x74] ss:$8 sps:$4 sm:$0xff]  }
   0x9   :  { %v37_v23 = vpack.c.bf16 %v35_v21, %v35_v21  ;;  %v1056_v25 = vld [vmem:[%s1510_s1 + $0x8] ss:$12 sps:$4 sm:$0xff]   ;;  %v1057_v26 = vld [vmem:[%s1510_s1] ss:$12 sps:$4 sm:$0xff]   ;;  %v1061_v29 = vld [vmem:[%s1510_s1 + $0xd8] ss:$12 sps:$4 sm:$0xff]  }
   0xa   :  { %305 = vmatpush1.bf16.msra.mxu1 %v1036_v8  ;;  %v1058_v27 = vld [vmem:[%s1510_s1 + $0xdc] ss:$12 sps:$4 sm:$0xff]   ;;  %v1060_v28 = vld [vmem:[%s1510_s1 + $0xe0] ss:$12 sps:$4 sm:$0xff]   ;;  %v1062_v30 = vld [vmem:[%s1510_s1 + $0xc4] ss:$12 sps:$4 sm:$0xff]  }
   0xb   :  { %264 = vmatpush1.bf16.msra.mxu0 %v1037_v9  ;;  %306 = vmatprep.subr.bf16.mxu1 %v1159_v1  ;;  %v1064_v31 = vld [vmem:[%s1510_s1 + $0xc8] ss:$12 sps:$4 sm:$0xff]   ;;  %v34_v32 = vld [vmem:[%s1509_s0] sm:$0xff]  ;;  %v1066_v36 = vld [vmem:[%s1512_s3 + $0x70] ss:$8 sps:$4 sm:$0xff]  }
   0xc   :  { %265 = vmatprep.subr.bf16.mxu0 %v1038_v10  ;;  %946 = vmatprep.mubr.msk.bf16.mxu1 %vm255_vm0, %v37_v23  ;;  %v1065_v33 = vld [vmem:[%s1510_s1 + $0xc0] ss:$12 sps:$4 sm:$0xff]   ;;  %v36_v35 = vpack.c.bf16 %v34_v32, %v34_v32  ;;  %v1074_v42 = vld [vmem:[%s1512_s3 + $0x54] ss:$8 sps:$4 sm:$0xff]   ;;  %v1111_v43 = vld [vmem:[%s1512_s3 + $0x110] ss:$8 sps:$4 sm:$0xff]  }
   0xd   :  { %945 = vmatprep.mubr.msk.bf16.mxu0 %vm255_vm0, %v37_v23  ;;  %v1071_v37 = vld [vmem:[%s1512_s3 + $0x64] ss:$8 sps:$4 sm:$0xff]   ;;  %v1107_v39 = vld [vmem:[%s1512_s3 + $0x120] ss:$8 sps:$4 sm:$0x3f]  }
   0xe   :  { %307 = vmatpush1.bf16.msra.mxu1 %v1040_v11  ;;  %v1105_v38 = vld [vmem:[%s1512_s3 + $0x124] ss:$8 sps:$4 sm:$0x3f]   ;;  %v1069_v40 = vld [vmem:[%s1512_s3 + $0x60] ss:$8 sps:$4 sm:$0xff]   ;;  %v590_v41 = vsel %vm588_vm1, %v1107_v39, 0 }
   0xf   :  { %266 = vmatpush1.bf16.msra.mxu0 %v1041_v12  ;;  %308 = vmatprep.subr.bf16.mxu1 %v1159_v1  ;;  %v1113_v44 = vld [vmem:[%s1512_s3 + $0x114] ss:$8 sps:$4 sm:$0xff]   ;;  %v1072_v45 = vld [vmem:[%s1512_s3 + $0x50] ss:$8 sps:$4 sm:$0xff]   ;;  %v1077_v46 = vld [vmem:[%s1512_s3 + $0x44] ss:$8 sps:$4 sm:$0xff]  }
  0x10   :  { %267 = vmatprep.subr.bf16.mxu0 %v1042_v13  ;;  %v1075_v47 = vld [vmem:[%s1512_s3 + $0x40] ss:$8 sps:$4 sm:$0xff]   ;;  %v1080_v48 = vld [vmem:[%s1512_s3 + $0x34] ss:$8 sps:$4 sm:$0xff]   ;;  %v1078_v49 = vld [vmem:[%s1512_s3 + $0x30] ss:$8 sps:$4 sm:$0xff]  }
  0x11   :  { %v1083_v50 = vld [vmem:[%s1512_s3 + $0x24] ss:$8 sps:$4 sm:$0xff]  }
  0x12   :  { %309 = vmatpush1.bf16.msra.mxu1 %v1044_v14 }
  0x13   :  { %268 = vmatpush1.bf16.msra.mxu0 %v1045_v15  ;;  %310 = vmatprep.subr.bf16.mxu1 %v1159_v1 }
  0x14   :  { %269 = vmatprep.subr.bf16.mxu0 %v1046_v16 }
  0x16   :  { %311 = vmatpush1.bf16.msra.mxu1 %v1048_v17 }
  0x17   :  { %270 = vmatpush1.bf16.msra.mxu0 %v1049_v18  ;;  %312 = vmatprep.subr.bf16.mxu1 %v1159_v1 }
  0x18   :  { %271 = vmatprep.subr.bf16.mxu0 %v1050_v19 }
  0x1a   :  { %313 = vmatpush1.bf16.msra.mxu1 %v1052_v20 }
  0x1b   :  { %272 = vmatpush1.bf16.msra.mxu0 %v1053_v22  ;;  %314 = vmatprep.subr.bf16.mxu1 %v1159_v1 }
  0x1c   :  { %273 = vmatprep.subr.bf16.mxu0 %v1054_v24 }
  0x1e   :  { %315 = vmatpush1.bf16.msra.mxu1 %v1056_v25 }
  0x1f   :  { %274 = vmatpush1.bf16.msra.mxu0 %v1057_v26  ;;  %328 = vmatprep.subr.bf16.mxu1 %v1159_v1 }
  0x20   :  { %287 = vmatprep.subr.bf16.mxu0 %v1058_v27 }
  0x22   :  { %329 = vmatpush2.bf16.msra.mxu1 %v1060_v28 }
  0x23   :  { %288 = vmatpush2.bf16.msra.mxu0 %v1061_v29  ;;  %330 = vmatprep.subr.bf16.mxu1 %v1159_v1 }
  0x24   :  { %289 = vmatprep.subr.bf16.mxu0 %v1062_v30 }
  0x26   :  { %331 = vmatpush2.bf16.msra.mxu1 %v1064_v31 }
  0x27   :  { %290 = vmatpush2.bf16.msra.mxu0 %v1065_v33  ;;  %985 = vmatprep.subr.msk.bf16.mxu1 %vm588_vm1, %v1105_v38 }
  0x28   :  { %595 = vmatprep.subr.bf16.mxu0 %v1068_v34 }
  0x29   :  { %333 = vmatmul.mubr.bf16.vlgmr.msra.gmra.mxu1 %v36_v35 }
  0x2a   :  { %292 = vmatmul.mubr.bf16.vlgmr.msra.gmra.mxu0 %v36_v35  ;;  %668 = vmatprep.mubr.bf16.mxu1 %v1159_v1 }
  0x2b   :  { %596 = vmatpush1.bf16.msra.mxu0 %v1066_v36  ;;  %647 = vmatpush1.bf16.msra.mxu1 %v590_v41 }
  0x2c   :  { %597 = vmatprep.subr.bf16.mxu0 %v1071_v37  ;;  %648 = vmatprep.subr.bf16.mxu1 %v1113_v44 }
  0x2f   :  { %598 = vmatpush1.bf16.msra.mxu0 %v1069_v40  ;;  %649 = vmatpush1.bf16.msra.mxu1 %v1111_v43 }
  0x30   :  { %599 = vmatprep.subr.bf16.mxu0 %v1074_v42 }
  0x33   :  { %600 = vmatpush1.bf16.msra.mxu0 %v1072_v45 }
  0x34   :  { %601 = vmatprep.subr.bf16.mxu0 %v1077_v46 }
  0x37   :  { %602 = vmatpush1.bf16.msra.mxu0 %v1075_v47 }
  0x38   :  { %603 = vmatprep.subr.bf16.mxu0 %v1080_v48 }
  0x39   :  { %14 = vsyncpa [#allocation3], 0  ;;  %v1081_v51 = vld [vmem:[%s1512_s3 + $0x20] ss:$8 sps:$4 sm:$0xff]   ;;  %v1086_v52 = vld [vmem:[%s1512_s3 + $0x14] ss:$8 sps:$4 sm:$0xff]   ;;  %v80_v11 = vlaneseq }
  0x3a   :  { %v1084_v53 = vld [vmem:[%s1512_s3 + $0x10] ss:$8 sps:$4 sm:$0xff]   ;;  %v1089_v54 = vld [vmem:[%s1512_s3 + $0x4] ss:$8 sps:$4 sm:$0xff]   ;;  %v1087_v55 = vld [vmem:[%s1512_s3] ss:$8 sps:$4 sm:$0xff]  }
  0x3b   :  { %604 = vmatpush1.bf16.msra.mxu0 %v1078_v49  ;;  %v1092_v56 = vld [vmem:[%s1512_s3 + $0xf4] ss:$8 sps:$4 sm:$0xff]   ;;  %v1090_v57 = vld [vmem:[%s1512_s3 + $0xf0] ss:$8 sps:$4 sm:$0xff]   ;;  %v1095_v58 = vld [vmem:[%s1512_s3 + $0xe4] ss:$8 sps:$4 sm:$0xff]  }
  0x3c   :  { %605 = vmatprep.subr.bf16.mxu0 %v1083_v50  ;;  %v1093_v59 = vld [vmem:[%s1512_s3 + $0xe0] ss:$8 sps:$4 sm:$0xff]   ;;  %v1098_v60 = vld [vmem:[%s1512_s3 + $0xd4] ss:$8 sps:$4 sm:$0xff]   ;;  %v1096_v61 = vld [vmem:[%s1512_s3 + $0xd0] ss:$8 sps:$4 sm:$0xff]  }
  0x3d   :  { %v1101_v62 = vld [vmem:[%s1512_s3 + $0xc4] ss:$8 sps:$4 sm:$0xff]   ;;  %v1099_v63 = vld [vmem:[%s1512_s3 + $0xc0] ss:$8 sps:$4 sm:$0xff]   ;;  %v1104_v0 = vld [vmem:[%s1512_s3 + $0xb4] ss:$8 sps:$4 sm:$0xff]  }
  0x3e   :  { %v1102_v2 = vld [vmem:[%s1512_s3 + $0xb0] ss:$8 sps:$4 sm:$0xff]   ;;  %v1110_v3 = vld [vmem:[%s1512_s3 + $0xa4] ss:$8 sps:$4 sm:$0xff]   ;;  %v1108_v4 = vld [vmem:[%s1512_s3 + $0xa0] ss:$8 sps:$4 sm:$0xff]  }
  0x3f   :  { %606 = vmatpush1.bf16.msra.mxu0 %v1081_v51  ;;  %v1116_v5 = vld [vmem:[%s1512_s3 + $0x94] ss:$8 sps:$4 sm:$0xff]   ;;  %v1119_v6 = vld [vmem:[%s1512_s3 + $0x104] ss:$8 sps:$4 sm:$0xff]   ;;  %v1114_v7 = vld [vmem:[%s1512_s3 + $0x90] ss:$8 sps:$4 sm:$0xff]  }
  0x40   :  { %607 = vmatprep.subr.bf16.mxu0 %v1086_v52  ;;  %v1117_v8 = vld [vmem:[%s1512_s3 + $0x100] ss:$8 sps:$4 sm:$0xff]   ;;  %650 = vmatprep.subr.bf16.mxu1 %v1119_v6  ;;  %v1122_v9 = vld [vmem:[%s1512_s3 + $0x84] ss:$8 sps:$4 sm:$0xff]   ;;  %v1437_v12 = vshrl.u32 %v80_v11, 7  ;;  %vm584_vm2 = vcmask 359424  }
  0x41   :  { %651 = vmatpush1.bf16.msra.mxu1 %v1117_v8  ;;  %v1120_v10 = vld [vmem:[%s1512_s3 + $0x80] ss:$8 sps:$4 sm:$0xff]   ;;  %v1123_v29 = vld [vmem:[%s1514_s5 + $0x38] sm:$0xff]   ;;  %v1124_v37 = vld [vmem:[%s1514_s5 + $0x30] sm:$0xff]   ;;  %vm768_vm3 = vcmask 1042432   ;;  %v1160_v48 = vmov 0.0  }
  0x42   :  { %772 = vmatprep.subr.bf16.mxu1 %v1159_v1  ;;  %v90_v13 = vsub.s32 2, %v1437_v12  ;;  %v78_v14 = vld [vmem:[%s1511_s2] sm:$0x7]  ;;  %v82_v15 = vsub.s32 0, %v1437_v12  ;;  %v86_v16 = vsub.s32 1, %v1437_v12  ;;  %v1125_v39 = vld [vmem:[%s1514_s5 + $0x28] sm:$0xff]  }
  0x43   :  { %608 = vmatpush1.bf16.msra.mxu0 %v1084_v53  ;;  %v1126_v40 = vld [vmem:[%s1514_s5 + $0x20] sm:$0xff]   ;;  %v1127_v41 = vld [vmem:[%s1514_s5 + $0x18] sm:$0xff]   ;;  %v1128_v42 = vld [vmem:[%s1514_s5 + $0x10] sm:$0xff]   ;;  %vm764_vm4 = vcmask 179200   ;;  %vm1161_vm5 = vmmov 0   ;;  %vm852_vm6 = vcmask 490496  }
  0x44   :  { %609 = vmatprep.subr.bf16.mxu0 %v1089_v54  ;;  %v91_v17 = vrot.slane %v78_v14, %v90_v13  ;;  %v83_v18 = vrot.slane %v78_v14, %v82_v15  ;;  %v87_v20 = vrot.slane %v78_v14, %v86_v16  ;;  %v1129_v43 = vld [vmem:[%s1514_s5 + $0x8] sm:$0xff]   ;;  %v1130_v44 = vld [vmem:[%s1514_s5] sm:$0xff]   ;;  %v1134_v6 = vld [vmem:[%s1516_s7 + $0x10] sm:$0xff]   ;;  %vm899_vm7 = vcmask 39936  }
  0x45   :  { %v1131_v45 = vld [vmem:[%s1514_s5 + $0x48] ss:$0 sps:$4 sm:$0x77]   ;;  %v1132_v47 = vld [vmem:[%s1514_s5 + $0x40] sm:$0xff]  }
  0x46   :  { %v770_v46 = vsel %vm768_vm3, %v1131_v45, 0  ;;  %v384_v49 = vld [vmem:[%s1513_s4] sm:$0x3] }
  0x47   :  { %610 = vmatpush1.bf16.msra.mxu0 %v1087_v55  ;;  %v389_v51 = vrot.slane %v384_v49, %v82_v15  ;;  %v393_v53 = vrot.slane %v384_v49, %v86_v16  ;;  %v1136_v8 = vld [vmem:[%s1516_s7] sm:$0xff]  }
  0x48   :  { %611 = vmatprep.subr.bf16.mxu0 %v1092_v56 }
  0x4b   :  { %612 = vmatpush2.bf16.msra.mxu0 %v1090_v57 }
  0x4c   :  { %613 = vmatprep.subr.bf16.mxu0 %v1095_v58 }
  0x4f   :  { %614 = vmatpush2.bf16.msra.mxu0 %v1093_v59 }
  0x50   :  { %615 = vmatprep.subr.bf16.mxu0 %v1098_v60 }
  0x53   :  { %616 = vmatpush2.bf16.msra.mxu0 %v1096_v61 }
  0x54   :  { %617 = vmatprep.subr.bf16.mxu0 %v1101_v62 }
  0x57   :  { %618 = vmatpush2.bf16.msra.mxu0 %v1099_v63 }
  0x58   :  { %619 = vmatprep.subr.bf16.mxu0 %v1104_v0  ;;  %v1133_v0 = vld [vmem:[%s1516_s7 + $0x18] sm:$0x3f]  }
  0x5b   :  { %620 = vmatpush2.bf16.msra.mxu0 %v1102_v2 }
  0x5c   :  { %621 = vmatprep.subr.bf16.mxu0 %v1110_v3 }
  0x5f   :  { %622 = vmatpush2.bf16.msra.mxu0 %v1108_v4 }
  0x60   :  { %623 = vmatprep.subr.bf16.mxu0 %v1116_v5  ;;  %v857_v5 = vsel %vm588_vm1, %v1133_v0, 0 }
  0x63   :  { %624 = vmatpush2.bf16.msra.mxu0 %v1114_v7  ;;  %v1135_v7 = vld [vmem:[%s1516_s7 + $0x8] sm:$0xff]   ;;  %s1162_s7 = smov [#allocation2]  }
  0x64   :  { %625 = vmatprep.subr.bf16.mxu0 %v1122_v9  ;;  %v987_v9 = vld [vmem:[%s1515_s6] ss:$0 sm:$0xff]  ;;  %s907_s22 = sshll.u32 %s1162_s7, 4  ;;  %s908_s22 = int_to_ptr.vmem [resolvable:$true] %s907_s22 }
  0x65   :  { %s1137_s6 = scalar_lea.vmem %s908_s22, 128  ;;  %p1142_p1 = scmp.lt.s32.totalorder %s908_s22, %s908_s22 }
  0x66   :  { %p1138_p0 = scmp.ne.s32.totalorder %s908_s22, %s1137_s6  ;;  %p1143_p2 = scmp.lt.s32.totalorder %s1137_s6, %s1137_s6 }
  0x67   :  { %626 = vmatpush2.bf16.msra.mxu0 %v1120_v10 }
  0x68   :  { %p1144_p3 = por %p1143_p2, %p1142_p1 }
  0x6a   :  { %p1145_p4 = pnand %p1144_p3, %p1138_p0 }
  0xe9   :  { %v334_v19 = vpop.f32.mrf.mxu1 }
  0xea   :  { %v335_v21 = vadd.f32 %v334_v19, %v91_v17  ;;  %v293_v22 = vpop.f32.mrf.mxu0  ;;  %v999_v17 = vld [vmem:[%s1517_s8] ss:$0 sm:$0xff] }
  0xeb   :  { %v294_v23 = vadd.f32 %v293_v22, %v83_v18  ;;  %v336_v24 = vpop.f32.mrf.mxu1 }
  0xec   :  { %v342_v25 = vmax.f32 %v335_v21, 0.0  ;;  %v295_v26 = vpop.f32.mrf.mxu0 }
  0xed   :  { %v296_v27 = vadd.f32 %v295_v26, %v87_v20  ;;  %v337_v28 = vpop.f32.mrf.mxu1  ;;  %v340_v31 = vmax.f32 %v294_v23, 0.0 }
  0xee   :  { %v345_v30 = vpack.c.bf16 %v342_v25, %v342_v25  ;;  %v297_v32 = vpop.f32.mrf.mxu0 }
  0xef   :  { %v341_v33 = vmax.f32 %v296_v27, 0.0  ;;  %v338_v34 = vpop.f32.mrf.mxu1  ;;  %v343_v38 = vpack.c.bf16 %v340_v31, %v340_v31 }
  0xf0   :  { %v298_v35 = vpop.f32.mrf.mxu0  ;;  %986 = vmatmul.mubr.msk.bf16.vlgmr.msra.gmra.mxu1 %vm584_vm2, %v345_v30 }
  0xf1   :  { %v344_v36 = vpack.c.bf16 %v341_v33, %v341_v33  ;;  %773 = vmatpush1.bf16.msra.mxu1 %v1123_v29 }
  0xf2   :  { %774 = vmatprep.subr.bf16.mxu1 %v1159_v1 }
  0xf3   :  { %627 = vmatprep.mubr.bf16.mxu0 %v344_v36 }
  0xf4   :  { %628 = vmatmul.mubr.bf16.vlgmr.msra.gmra.mxu0 %v343_v38 }
  0xf5   :  { %775 = vmatpush1.bf16.msra.mxu1 %v1124_v37 }
  0xf6   :  { %776 = vmatprep.subr.bf16.mxu1 %v1159_v1 }
  0xf9   :  { %777 = vmatpush1.bf16.msra.mxu1 %v1125_v39 }
  0xfa   :  { %778 = vmatprep.subr.bf16.mxu1 %v1159_v1 }
  0xfd   :  { %779 = vmatpush1.bf16.msra.mxu1 %v1126_v40 }
  0xfe   :  { %780 = vmatprep.subr.bf16.mxu1 %v1159_v1 }
 0x101   :  { %781 = vmatpush1.bf16.msra.mxu1 %v1127_v41 }
 0x102   :  { %782 = vmatprep.subr.bf16.mxu1 %v1159_v1 }
 0x105   :  { %783 = vmatpush1.bf16.msra.mxu1 %v1128_v42 }
 0x106   :  { %784 = vmatprep.subr.bf16.mxu1 %v1159_v1 }
 0x109   :  { %785 = vmatpush1.bf16.msra.mxu1 %v1129_v43 }
 0x10a   :  { %786 = vmatprep.subr.bf16.mxu1 %v1159_v1 }
 0x10d   :  { %787 = vmatpush1.bf16.msra.mxu1 %v1130_v44 }
 0x10e   :  { %800 = vmatprep.subr.bf16.mxu1 %v1159_v1 }
 0x111   :  { %801 = vmatpush2.bf16.msra.mxu1 %v770_v46 }
 0x112   :  { %802 = vmatprep.subr.bf16.mxu1 %v1159_v1 }
 0x115   :  { %803 = vmatpush2.bf16.msra.mxu1 %v1132_v47 }
 0x116   :  { %1010 = vmatprep.subr.bf16.mxu1 %v1160_v48 }
 0x1b0   :  { %v670_v50 = vpop.f32.mrf.mxu1 }
 0x1b2   :  { %v672_v52 = vpop.f32.mrf.mxu1 }
 0x1b4   :  { %v629_v54 = vpop.f32.mrf.mxu0  ;;  %v674_v55 = vpop.f32.mrf.mxu1 }
 0x1b5   :  { %v630_v56 = vadd.f32 %v629_v54, %v389_v51 }
 0x1b6   :  { %v631_v57 = vpop.f32.mrf.mxu0  ;;  %v675_v1 = vpop.f32.mrf.mxu1 }
 0x1b7   :  { %v671_v58 = vadd.f32 %v670_v50, %v630_v56  ;;  %v632_v59 = vadd.f32 %v631_v57, %v393_v53 }
 0x1b8   :  { %v633_v60 = vpop.f32.mrf.mxu0 }
 0x1b9   :  { %v673_v61 = vadd.f32 %v672_v52, %v632_v59  ;;  %v677_v62 = vmax.f32 %v671_v58, 0.0 }
 0x1ba   :  { %v634_v63 = vpop.f32.mrf.mxu0 }
 0x1bb   :  { %v678_v2 = vmax.f32 %v673_v61, 0.0  ;;  %v679_v4 = vpack.c.bf16 %v677_v62, %v677_v62 }
 0x1bd   :  { %v680_v3 = vpack.c.bf16 %v678_v2, %v678_v2 }
 0x1bf   :  { %998 = vmatprep.mubr.msk.bf16.mxu1 %vm764_vm4, %v680_v3 }
 0x1c0   :  { %805 = vmatmul.mubr.bf16.vlgmr.msra.gmra.mxu1 %v679_v4 }
 0x1c1   :  { %1011 = vmatpush3.bf16.msra.mxu1 %v857_v5  ;;  %1018 = vmatprep.mubr.msk.bf16.mxu1 %vm1161_vm5, %v1160_v48 }
 0x1c2   :  { %1012 = vmatprep.subr.bf16.mxu1 %v1160_v48 }
 0x1c5   :  { %1013 = vmatpush3.bf16.msra.mxu1 %v1134_v6 }
 0x1c6   :  { %1014 = vmatprep.subr.bf16.mxu1 %v1160_v48 }
 0x1c9   :  { %1015 = vmatpush3.bf16.msra.mxu1 %v1135_v7 }
 0x1ca   :  { %1016 = vmatprep.subr.bf16.mxu1 %v1160_v48 }
 0x1cd   :  { %1017 = vmatpush3.bf16.msra.mxu1 %v1136_v8 }
 0x280   :  { %v806_v10 = vpop.f32.mrf.mxu1 }
 0x281   :  { %v807_v11 = vadd.f32 %v987_v9, %v806_v10 }
 0x282   :  { %v808_v12 = vpop.f32.mrf.mxu1 }
 0x283   :  { %v812_v13 = vmax.f32 %v807_v11, 0.0 }
 0x284   :  { %v809_v14 = vpop.f32.mrf.mxu1 }
 0x285   :  { %v813_v15 = vpack.c.bf16 %v812_v13, %v812_v13 }
 0x286   :  { %v810_v16 = vpop.f32.mrf.mxu1 }
 0x287   :  { %1019 = vmatmul.mubr.msk.bf16.vlgmr.msra.gmra.mxu1 %vm852_vm6, %v813_v15 }
 0x347   :  { %v893_v18 = vpop.f32.mrf.mxu1 }
 0x348   :  { %v894_v19 = vadd.f32 %v999_v17, %v893_v18 }
 0x349   :  { %v1020_v20 = vpop.f32.mrf.mxu1 }
 0x34a   :  { %900 = vst.msk [vmem:[#allocation2] sm:$0xff] %vm899_vm7, %v894_v19 }
 0x34b   :  { %v896_v21 = vpop.f32.mrf.mxu1 }
 0x34c   :  { %1148 = shalt.err (!%p1145_p4)
}
 0x34d   :  { %910 = dma.vmem_to_hbm [thread:$0]  %s908_s22, 128, %s1518_s9, [#allocation3]   ;;  %v1021_v22 = vpop.f32.mrf.mxu1 }
 0x34e   :  { %1157 = dma.done.wait [#allocation3], 128  }
 0x34f   :  { %1158 = vsyncadd [#allocation3], 4294967168 }
 0x350   :  { %914 = vsyncpa [#allocation3], 1 }

</bundles_post_ra>
